<compile_context>
chip_gen: v5e
topology: v5e:2x2
jax: 0.10.0
libtpu: 0.0.40
codegen_flags: <defaults>
</compile_context>

<pallas_src>
import functools

import jax
import jax.numpy as jnp
from jax.experimental import pallas as pl
from jax.experimental.pallas import tpu as pltpu


# ---------------------------------------------------------------------------
# small helpers
# ---------------------------------------------------------------------------
def _round_up(x, m):
    return (x + m - 1) // m * m


def _choose_n_tiling(cout):
    """Output-channel dim: lane-dense.  256-wide tiles when cout > 128 to fill
    the 256x256 MXU on v6e/v7x; 128 otherwise (also right for v5e)."""
    if cout <= 128:
        return 128, 128
    return _round_up(cout, 256), 256


def _choose_k_tiling(k):
    """Contraction dim: pad to a multiple of 128; single tile up to 1024."""
    k_pad = _round_up(k, 128)
    if k_pad <= 1024:
        return k_pad, k_pad
    for t in (1024, 512, 256, 128):
        if k_pad % t == 0:
            return k_pad, t
    return k_pad, 128  # unreachable (k_pad is a multiple of 128)


def _choose_m_tiling(m, n_tiles):
    """Row (M) dim: pad to a multiple of 16 (bf16 sublane packing).
    If the N grid is 1, split M into >= 2 tiles so both v7x TensorCores get a
    'parallel' block; for large M use 512-row tiles."""
    m_pad = _round_up(m, 16)
    if m_pad <= 512:
        if n_tiles == 1 and m_pad >= 64:
            m_pad = _round_up(m_pad, 32)
            return m_pad, m_pad // 2
        return m_pad, m_pad
    return _round_up(m, 512), 512


# ---------------------------------------------------------------------------
# Pallas kernels: fused GEMM + folded-BN bias + optional residual + ReLU
# ---------------------------------------------------------------------------
def _gemm_bias_act_kernel(*refs, relu, has_res):
    """Single-K-tile variant: no scratch accumulator, direct fused write."""
    if has_res:
        p_ref, w_ref, b_ref, r_ref, o_ref = refs
    else:
        p_ref, w_ref, b_ref, o_ref = refs
        r_ref = None

    y = jnp.dot(p_ref[...], w_ref[...], preferred_element_type=jnp.float32)
    y = y + b_ref[...]                      # BN scale already folded into W
    if r_ref is not None:
        y = y + r_ref[...].astype(jnp.float32)
    if relu:
        y = jnp.maximum(y, 0.0)
    o_ref[...] = y.astype(o_ref.dtype)


def _gemm_bias_act_acc_kernel(*refs, relu, has_res):
    """Multi-K-tile variant: f32 VMEM accumulator on the trailing K axis."""
    if has_res:
        p_ref, w_ref, b_ref, r_ref, o_ref, acc_ref = refs
    else:
        p_ref, w_ref, b_ref, o_ref, acc_ref = refs
        r_ref = None

    kstep = pl.program_id(2)

    @pl.when(kstep == 0)
    def _():
        acc_ref[...] = jnp.zeros_like(acc_ref)

    acc_ref[...] += jnp.dot(p_ref[...], w_ref[...],
                            preferred_element_type=jnp.float32)

    @pl.when(kstep == pl.num_programs(2) - 1)
    def _():
        y = acc_ref[...] + b_ref[...]
        if r_ref is not None:
            y = y + r_ref[...].astype(jnp.float32)
        if relu:
            y = jnp.maximum(y, 0.0)
        o_ref[...] = y.astype(o_ref.dtype)


def _pallas_conv_bn(patches, w2d_scaled, bias, residual, relu):
    """patches: [M, K] bf16; w2d_scaled: [K, Cout] f32 (BN scale folded in);
    bias: [Cout] f32; residual: [M, Cout] bf16 or None.  Returns [M, Cout] bf16."""
    m, kdim = patches.shape
    cout = w2d_scaled.shape[1]

    n_pad, tn = _choose_n_tiling(cout)
    k_pad, tk = _choose_k_tiling(kdim)
    m_pad, tm = _choose_m_tiling(m, n_pad // tn)

    # Single bf16 pad pass (XLA fuses this with the im2col stack/reshape).
    p = jnp.pad(patches, ((0, m_pad - m), (0, k_pad - kdim)))
    w = jnp.pad(w2d_scaled,
                ((0, k_pad - kdim), (0, n_pad - cout))).astype(jnp.bfloat16)
    b = jnp.pad(bias.reshape(1, cout), ((0, 0), (0, n_pad - cout)))

    single_k = (k_pad == tk)
    has_res = residual is not None

    if single_k:
        grid = (m_pad // tm, n_pad // tn)
        in_specs = [
            pl.BlockSpec((tm, tk), lambda i, j: (i, 0)),
            pl.BlockSpec((tk, tn), lambda i, j: (0, j)),
            pl.BlockSpec((1, tn), lambda i, j: (0, j)),
        ]
        res_spec = pl.BlockSpec((tm, tn), lambda i, j: (i, j))
        out_spec = pl.BlockSpec((tm, tn), lambda i, j: (i, j))
        scratch = []
        dims = ("parallel", "parallel")
        kernel = functools.partial(_gemm_bias_act_kernel,
                                   relu=relu, has_res=has_res)
    else:
        grid = (m_pad // tm, n_pad // tn, k_pad // tk)
        in_specs = [
            pl.BlockSpec((tm, tk), lambda i, j, k: (i, k)),
            pl.BlockSpec((tk, tn), lambda i, j, k: (k, j)),
            pl.BlockSpec((1, tn), lambda i, j, k: (0, j)),
        ]
        res_spec = pl.BlockSpec((tm, tn), lambda i, j, k: (i, j))
        out_spec = pl.BlockSpec((tm, tn), lambda i, j, k: (i, j))
        scratch = [pltpu.VMEM((tm, tn), jnp.float32)]
        dims = ("parallel", "parallel", "arbitrary")
        kernel = functools.partial(_gemm_bias_act_acc_kernel,
                                   relu=relu, has_res=has_res)

    args = [p, w, b]
    res_bytes = 0
    if has_res:
        r = jnp.pad(residual, ((0, m_pad - m), (0, n_pad - cout)))
        args.append(r)
        in_specs.append(res_spec)
        res_bytes = r.size * 2

    out = pl.pallas_call(
        kernel,
        out_shape=jax.ShapeDtypeStruct((m_pad, n_pad), jnp.bfloat16),
        grid_spec=pltpu.PrefetchScalarGridSpec(
            num_scalar_prefetch=0,
            grid=grid,
            in_specs=in_specs,
            out_specs=out_spec,
            scratch_shapes=scratch),
        compiler_params=pltpu.CompilerParams(
            dimension_semantics=dims,
            vmem_limit_bytes=32 * 1024 * 1024),
        cost_estimate=pl.CostEstimate(
            flops=2 * m_pad * k_pad * n_pad,
            transcendentals=0,
            bytes_accessed=p.size * 2 + w.size * 2 + b.size * 4
                           + res_bytes + m_pad * n_pad * 2),
    )(*args)
    # Slice off the M / Cout padding before any reshape.
    return out[:m, :cout]


# ---------------------------------------------------------------------------
# Glue: im2col, conv+bn wrapper, maxpool, blocks
# ---------------------------------------------------------------------------
def _im2col(x, kh, kw, stride, pad):
    """x: [N,H,W,C] bf16 -> patches [N*Ho*Wo, kh*kw*C] (tap-major, ch-minor)."""
    # TODO(synk): move the kh*kw tap loop into the Pallas kernel (manual DMA
    # over the spatially-padded NHWC map) to avoid materializing the im2col
    # expansion in HBM; kept as bf16 indexing glue here for robustness.
    n, h, w, c = x.shape
    ho = (h + 2 * pad - kh) // stride + 1
    wo = (w + 2 * pad - kw) // stride + 1
    xp = jnp.pad(x, ((0, 0), (pad, pad), (pad, pad), (0, 0)))
    cols = []
    for dy in range(kh):
        for dx in range(kw):
            cols.append(xp[:, dy:dy + stride * ho:stride,
                           dx:dx + stride * wo:stride, :])
    patches = jnp.stack(cols, axis=3)                      # [N,Ho,Wo,kh*kw,C]
    return patches.reshape(n * ho * wo, kh * kw * c), ho, wo


def conv_bn(x, w_hwio, scale, bias, *, stride, pad, relu, residual=None):
    """x: [N,H,W,Cin] NHWC bf16; w: [kh,kw,Cin,Cout] f32; folded BN scale/bias."""
    kh, kw, cin, cout = w_hwio.shape
    patches, ho, wo = _im2col(x, kh, kw, stride, pad)
    # Fold BN scale into the weights once -> kernel epilogue is just +bias.
    w2d = w_hwio.reshape(kh * kw * cin, cout) * scale.reshape(1, cout)
    res = None if residual is None else residual.reshape(-1, cout)
    out = _pallas_conv_bn(patches, w2d, bias, res, relu)
    return out.reshape(x.shape[0], ho, wo, cout)


def maxpool_3x3_s2(x):
    """MaxPool2d(kernel_size=3, stride=2, padding=1) on NHWC input.
    Pairwise max of shifted slices in plain JAX: memory-bound, no 9x tap
    materialization."""
    n, h, w, c = x.shape
    k, stride, pad = 3, 2, 1
    ho = (h + 2 * pad - k) // stride + 1
    wo = (w + 2 * pad - k) // stride + 1
    if jnp.issubdtype(x.dtype, jnp.floating):
        neg = -jnp.inf
    else:
        neg = jnp.iinfo(x.dtype).min
    xp = jnp.pad(x, ((0, 0), (pad, pad), (pad, pad), (0, 0)),
                 constant_values=neg)
    out = None
    for dy in range(k):
        for dx in range(k):
            tap = xp[:, dy:dy + stride * ho:stride, dx:dx + stride * wo:stride, :]
            out = tap if out is None else jnp.maximum(out, tap)
    return out


def basic_block(x, p):
    """ResNet BasicBlock: relu(bn2(conv2(relu(bn1(conv1(x))))) + identity)."""
    # TODO(synk): fuse conv1+conv2+residual into one pallas_call
    # (emit_pipeline over the two GEMMs) to amortize per-call glue overhead.
    stride = p["stride"]
    if p["down_w"] is not None:
        identity = conv_bn(x, p["down_w"], p["down_s"], p["down_b"],
                           stride=stride, pad=0, relu=False)
    else:
        identity = x
    out = conv_bn(x, p["w1"], p["s1"], p["b1"], stride=stride, pad=1, relu=True)
    # conv2 + bn2 + residual add + relu fused in one Pallas call
    out = conv_bn(out, p["w2"], p["s2"], p["b2"], stride=1, pad=1, relu=True,
                  residual=identity)
    return out


def resnet_forward(x_nchw, params, return_feature_maps=True):
    x = jnp.transpose(x_nchw, (0, 2, 3, 1)).astype(jnp.bfloat16)   # NCHW->NHWC
    x = conv_bn(x, params["conv1_w"], params["bn1_s"], params["bn1_b"],
                stride=2, pad=3, relu=True)
    x = maxpool_3x3_s2(x)
    conv_out = []
    for li in range(4):
        for blk in params[f"layer{li + 1}"]:
            x = basic_block(x, blk)
        conv_out.append(jnp.transpose(x, (0, 3, 1, 2)).astype(jnp.float32))
    if return_feature_maps:
        return conv_out
    return [conv_out[-1]]


# ---------------------------------------------------------------------------
# Deterministic parameter construction (synthetic, small ResNet-18 widths)
# ---------------------------------------------------------------------------
def init_params(key, in_ch=3, widths=(8, 16, 32, 64), blocks_per_layer=2):
    keys = iter(jax.random.split(key, 512))
    eps = 1e-5

    def conv_w(kh, kw, cin, cout):
        fan_in = kh * kw * cin
        return (jax.random.normal(next(keys), (kh, kw, cin, cout), jnp.float32)
                * (2.0 / fan_in) ** 0.5)

    def bn(c):
        gamma = 1.0 + 0.1 * jax.random.normal(next(keys), (c,), jnp.float32)
        beta = 0.1 * jax.random.normal(next(keys), (c,), jnp.float32)
        mean = 0.1 * jax.random.normal(next(keys), (c,), jnp.float32)
        var = jnp.abs(1.0 + 0.1 * jax.random.normal(next(keys), (c,), jnp.float32))
        scale = gamma / jnp.sqrt(var + eps)
        bias = beta - mean * scale
        return scale, bias

    params = {"conv1_w": conv_w(7, 7, in_ch, widths[0])}
    params["bn1_s"], params["bn1_b"] = bn(widths[0])

    cin = widths[0]
    for li, cout in enumerate(widths):
        layer = []
        for bi in range(blocks_per_layer):
            stride = 2 if (li > 0 and bi == 0) else 1
            blk = {"stride": stride}
            blk["w1"] = conv_w(3, 3, cin, cout)
            blk["s1"], blk["b1"] = bn(cout)
            blk["w2"] = conv_w(3, 3, cout, cout)
            blk["s2"], blk["b2"] = bn(cout)
            if stride != 1 or cin != cout:
                blk["down_w"] = conv_w(1, 1, cin, cout)
                blk["down_s"], blk["down_b"] = bn(cout)
            else:
                blk["down_w"] = None
                blk["down_s"] = None
                blk["down_b"] = None
            layer.append(blk)
            cin = cout
        params[f"layer{li + 1}"] = layer
    return params


# ---------------------------------------------------------------------------
if __name__ == "__main__":
    key = jax.random.PRNGKey(0)
    pkey, xkey = jax.random.split(key)
    params = init_params(pkey)

    # small input consistent with the module's forward (ImageNet-style NCHW)
    x = jax.random.normal(xkey, (2, 3, 32, 32), jnp.float32)

    # Close over params so strides / layer structure stay static Python values.
    fwd = jax.jit(lambda inp: resnet_forward(inp, params,
                                             return_feature_maps=True))
    feats = fwd(x)
    feats = [jax.block_until_ready(f) for f in feats]

    expected = [(2, 8, 8, 8), (2, 16, 4, 4), (2, 32, 2, 2), (2, 64, 1, 1)]
    assert [tuple(f.shape) for f in feats] == expected, [f.shape for f in feats]
    assert all(bool(jnp.isfinite(f).all()) for f in feats)
    print("KERNEL_OK")
</pallas_src>

<mosaic_0001>
module attributes {stable_mosaic.version = 11 : i64} {
  func.func @_gemm_bias_act_kernel(%arg0: i32, %arg1: i32, %arg2: memref<256x256xbf16, #tpu.memory_space<vmem>>, %arg3: memref<256x128xbf16, #tpu.memory_space<vmem>>, %arg4: memref<1x128xf32, #tpu.memory_space<vmem>>, %arg5: memref<256x128xbf16, #tpu.memory_space<vmem>>) attributes {dimension_semantics = [#tpu.dimension_semantics<parallel>, #tpu.dimension_semantics<parallel>], iteration_bounds = array<i64: 2, 1>, scalar_prefetch = 0 : i64, scratch_operands = 0 : i64, tpu.core_type = #tpu.core_type<tc>, window_params = [{transform_indices = @transform_0, window_bounds = array<i64: 256, 256>}, {transform_indices = @transform_1, window_bounds = array<i64: 256, 128>}, {transform_indices = @transform_2, window_bounds = array<i64: 1, 128>}, {transform_indices = @transform_3, window_bounds = array<i64: 256, 128>}]} {
    %c0 = arith.constant 0 : index
    %c0_0 = arith.constant 0 : index
    %0 = vector.load %arg2[%c0, %c0_0] : memref<256x256xbf16, #tpu.memory_space<vmem>>, vector<256x256xbf16>
    %c0_1 = arith.constant 0 : index
    %c0_2 = arith.constant 0 : index
    %1 = vector.load %arg3[%c0_1, %c0_2] : memref<256x128xbf16, #tpu.memory_space<vmem>>, vector<256x128xbf16>
    %cst = arith.constant dense<0.000000e+00> : vector<256x128xf32>
    %2 = tpu.matmul %0, %1, %cst {dimension_numbers = #tpu.dot_dimension_numbers<[1], [0], [0], [1], [0, 0, 1, 1], [], []>} : vector<256x256xbf16>, vector<256x128xbf16>, vector<256x128xf32> -> vector<256x128xf32>
    %c0_3 = arith.constant 0 : index
    %c0_4 = arith.constant 0 : index
    %3 = vector.load %arg4[%c0_3, %c0_4] : memref<1x128xf32, #tpu.memory_space<vmem>>, vector<1x128xf32>
    %4 = vector.broadcast %3 : vector<1x128xf32> to vector<256x128xf32>
    %5 = arith.addf %2, %4 : vector<256x128xf32>
    %cst_5 = arith.constant 0.000000e+00 : f32
    %6 = vector.broadcast %cst_5 : f32 to vector<256x128xf32>
    %7 = arith.maximumf %5, %6 : vector<256x128xf32>
    %8 = arith.truncf %7 : vector<256x128xf32> to vector<256x128xbf16>
    %c0_6 = arith.constant 0 : index
    %c0_7 = arith.constant 0 : index
    %9 = vector.load %arg5[%c0_6, %c0_7] : memref<256x128xbf16, #tpu.memory_space<vmem>>, vector<256x128xbf16>
    tpu.vector_store %arg5[%c0_6, %c0_7], %8 {strides = array<i32>} : memref<256x128xbf16, #tpu.memory_space<vmem>>, vector<256x128xbf16>,
    return
  }
  func.func @transform_0(%arg0: i32, %arg1: i32) -> (i32, i32) {
    %c0_i32 = arith.constant 0 : i32
    %c0_i32_0 = arith.constant 0 : i32
    return %arg0, %c0_i32 : i32, i32
  }
  func.func @transform_1(%arg0: i32, %arg1: i32) -> (i32, i32) {
    %c0_i32 = arith.constant 0 : i32
    %c0_i32_0 = arith.constant 0 : i32
    return %c0_i32, %arg1 : i32, i32
  }
  func.func @transform_2(%arg0: i32, %arg1: i32) -> (i32, i32) {
    %c0_i32 = arith.constant 0 : i32
    %c0_i32_0 = arith.constant 0 : i32
    return %c0_i32, %arg1 : i32, i32
  }
  func.func @transform_3(%arg0: i32, %arg1: i32) -> (i32, i32) {
    %c0_i32 = arith.constant 0 : i32
    return %arg0, %arg1 : i32, i32
  }
}

module attributes {stable_mosaic.version = 11 : i64} {
  func.func @_gemm_bias_act_kernel(%arg0: i32, %arg1: i32, %arg2: memref<64x128xbf16, #tpu.memory_space<vmem>>, %arg3: memref<128x128xbf16, #tpu.memory_space<vmem>>, %arg4: memref<1x128xf32, #tpu.memory_space<vmem>>, %arg5: memref<64x128xbf16, #tpu.memory_space<vmem>>) attributes {dimension_semantics = [#tpu.dimension_semantics<parallel>, #tpu.dimension_semantics<parallel>], iteration_bounds = array<i64: 2, 1>, scalar_prefetch = 0 : i64, scratch_operands = 0 : i64, tpu.core_type = #tpu.core_type<tc>, window_params = [{transform_indices = @transform_0, window_bounds = array<i64: 64, 128>}, {transform_indices = @transform_1, window_bounds = array<i64: 128, 128>}, {transform_indices = @transform_2, window_bounds = array<i64: 1, 128>}, {transform_indices = @transform_3, window_bounds = array<i64: 64, 128>}]} {
    %c0 = arith.constant 0 : index
    %c0_0 = arith.constant 0 : index
    %0 = vector.load %arg2[%c0, %c0_0] : memref<64x128xbf16, #tpu.memory_space<vmem>>, vector<64x128xbf16>
    %c0_1 = arith.constant 0 : index
    %c0_2 = arith.constant 0 : index
    %1 = vector.load %arg3[%c0_1, %c0_2] : memref<128x128xbf16, #tpu.memory_space<vmem>>, vector<128x128xbf16>
    %cst = arith.constant dense<0.000000e+00> : vector<64x128xf32>
    %2 = tpu.matmul %0, %1, %cst {dimension_numbers = #tpu.dot_dimension_numbers<[1], [0], [0], [1], [0, 0, 1, 1], [], []>} : vector<64x128xbf16>, vector<128x128xbf16>, vector<64x128xf32> -> vector<64x128xf32>
    %c0_3 = arith.constant 0 : index
    %c0_4 = arith.constant 0 : index
    %3 = vector.load %arg4[%c0_3, %c0_4] : memref<1x128xf32, #tpu.memory_space<vmem>>, vector<1x128xf32>
    %4 = vector.broadcast %3 : vector<1x128xf32> to vector<64x128xf32>
    %5 = arith.addf %2, %4 : vector<64x128xf32>
    %cst_5 = arith.constant 0.000000e+00 : f32
    %6 = vector.broadcast %cst_5 : f32 to vector<64x128xf32>
    %7 = arith.maximumf %5, %6 : vector<64x128xf32>
    %8 = arith.truncf %7 : vector<64x128xf32> to vector<64x128xbf16>
    %c0_6 = arith.constant 0 : index
    %c0_7 = arith.constant 0 : index
    %9 = vector.load %arg5[%c0_6, %c0_7] : memref<64x128xbf16, #tpu.memory_space<vmem>>, vector<64x128xbf16>
    tpu.vector_store %arg5[%c0_6, %c0_7], %8 {strides = array<i32>} : memref<64x128xbf16, #tpu.memory_space<vmem>>, vector<64x128xbf16>,
    return
  }
  func.func @transform_0(%arg0: i32, %arg1: i32) -> (i32, i32) {
    %c0_i32 = arith.constant 0 : i32
    %c0_i32_0 = arith.constant 0 : i32
    return %arg0, %c0_i32 : i32, i32
  }
  func.func @transform_1(%arg0: i32, %arg1: i32) -> (i32, i32) {
    %c0_i32 = arith.constant 0 : i32
    %c0_i32_0 = arith.constant 0 : i32
    return %c0_i32, %arg1 : i32, i32
  }
  func.func @transform_2(%arg0: i32, %arg1: i32) -> (i32, i32) {
    %c0_i32 = arith.constant 0 : i32
    %c0_i32_0 = arith.constant 0 : i32
    return %c0_i32, %arg1 : i32, i32
  }
  func.func @transform_3(%arg0: i32, %arg1: i32) -> (i32, i32) {
    %c0_i32 = arith.constant 0 : i32
    return %arg0, %arg1 : i32, i32
  }
}

module attributes {stable_mosaic.version = 11 : i64} {
  func.func @_gemm_bias_act_kernel(%arg0: i32, %arg1: i32, %arg2: memref<64x128xbf16, #tpu.memory_space<vmem>>, %arg3: memref<128x128xbf16, #tpu.memory_space<vmem>>, %arg4: memref<1x128xf32, #tpu.memory_space<vmem>>, %arg5: memref<64x128xbf16, #tpu.memory_space<vmem>>, %arg6: memref<64x128xbf16, #tpu.memory_space<vmem>>) attributes {dimension_semantics = [#tpu.dimension_semantics<parallel>, #tpu.dimension_semantics<parallel>], iteration_bounds = array<i64: 2, 1>, scalar_prefetch = 0 : i64, scratch_operands = 0 : i64, tpu.core_type = #tpu.core_type<tc>, window_params = [{transform_indices = @transform_0, window_bounds = array<i64: 64, 128>}, {transform_indices = @transform_1, window_bounds = array<i64: 128, 128>}, {transform_indices = @transform_2, window_bounds = array<i64: 1, 128>}, {transform_indices = @transform_3, window_bounds = array<i64: 64, 128>}, {transform_indices = @transform_4, window_bounds = array<i64: 64, 128>}]} {
    %c0 = arith.constant 0 : index
    %c0_0 = arith.constant 0 : index
    %0 = vector.load %arg2[%c0, %c0_0] : memref<64x128xbf16, #tpu.memory_space<vmem>>, vector<64x128xbf16>
    %c0_1 = arith.constant 0 : index
    %c0_2 = arith.constant 0 : index
    %1 = vector.load %arg3[%c0_1, %c0_2] : memref<128x128xbf16, #tpu.memory_space<vmem>>, vector<128x128xbf16>
    %cst = arith.constant dense<0.000000e+00> : vector<64x128xf32>
    %2 = tpu.matmul %0, %1, %cst {dimension_numbers = #tpu.dot_dimension_numbers<[1], [0], [0], [1], [0, 0, 1, 1], [], []>} : vector<64x128xbf16>, vector<128x128xbf16>, vector<64x128xf32> -> vector<64x128xf32>
    %c0_3 = arith.constant 0 : index
    %c0_4 = arith.constant 0 : index
    %3 = vector.load %arg4[%c0_3, %c0_4] : memref<1x128xf32, #tpu.memory_space<vmem>>, vector<1x128xf32>
    %4 = vector.broadcast %3 : vector<1x128xf32> to vector<64x128xf32>
    %5 = arith.addf %2, %4 : vector<64x128xf32>
    %c0_5 = arith.constant 0 : index
    %c0_6 = arith.constant 0 : index
    %6 = vector.load %arg5[%c0_5, %c0_6] : memref<64x128xbf16, #tpu.memory_space<vmem>>, vector<64x128xbf16>
    %7 = arith.extf %6 : vector<64x128xbf16> to vector<64x128xf32>
    %8 = arith.addf %5, %7 : vector<64x128xf32>
    %cst_7 = arith.constant 0.000000e+00 : f32
    %9 = vector.broadcast %cst_7 : f32 to vector<64x128xf32>
    %10 = arith.maximumf %8, %9 : vector<64x128xf32>
    %11 = arith.truncf %10 : vector<64x128xf32> to vector<64x128xbf16>
    %c0_8 = arith.constant 0 : index
    %c0_9 = arith.constant 0 : index
    %12 = vector.load %arg6[%c0_8, %c0_9] : memref<64x128xbf16, #tpu.memory_space<vmem>>, vector<64x128xbf16>
    tpu.vector_store %arg6[%c0_8, %c0_9], %11 {strides = array<i32>} : memref<64x128xbf16, #tpu.memory_space<vmem>>, vector<64x128xbf16>,
    return
  }
  func.func @transform_0(%arg0: i32, %arg1: i32) -> (i32, i32) {
    %c0_i32 = arith.constant 0 : i32
    %c0_i32_0 = arith.constant 0 : i32
    return %arg0, %c0_i32 : i32, i32
  }
  func.func @transform_1(%arg0: i32, %arg1: i32) -> (i32, i32) {
    %c0_i32 = arith.constant 0 : i32
    %c0_i32_0 = arith.constant 0 : i32
    return %c0_i32, %arg1 : i32, i32
  }
  func.func @transform_2(%arg0: i32, %arg1: i32) -> (i32, i32) {
    %c0_i32 = arith.constant 0 : i32
    %c0_i32_0 = arith.constant 0 : i32
    return %c0_i32, %arg1 : i32, i32
  }
  func.func @transform_3(%arg0: i32, %arg1: i32) -> (i32, i32) {
    %c0_i32 = arith.constant 0 : i32
    return %arg0, %arg1 : i32, i32
  }
  func.func @transform_4(%arg0: i32, %arg1: i32) -> (i32, i32) {
    %c0_i32 = arith.constant 0 : i32
    return %arg0, %arg1 : i32, i32
  }
}

module attributes {stable_mosaic.version = 11 : i64} {
  func.func @_gemm_bias_act_kernel(%arg0: i32, %arg1: i32, %arg2: memref<32x128xbf16, #tpu.memory_space<vmem>>, %arg3: memref<128x128xbf16, #tpu.memory_space<vmem>>, %arg4: memref<1x128xf32, #tpu.memory_space<vmem>>, %arg5: memref<32x128xbf16, #tpu.memory_space<vmem>>) attributes {dimension_semantics = [#tpu.dimension_semantics<parallel>, #tpu.dimension_semantics<parallel>], iteration_bounds = array<i64: 1, 1>, scalar_prefetch = 0 : i64, scratch_operands = 0 : i64, tpu.core_type = #tpu.core_type<tc>, window_params = [{transform_indices = @transform_0, window_bounds = array<i64: 32, 128>}, {transform_indices = @transform_1, window_bounds = array<i64: 128, 128>}, {transform_indices = @transform_2, window_bounds = array<i64: 1, 128>}, {transform_indices = @transform_3, window_bounds = array<i64: 32, 128>}]} {
    %c0 = arith.constant 0 : index
    %c0_0 = arith.constant 0 : index
    %0 = vector.load %arg2[%c0, %c0_0] : memref<32x128xbf16, #tpu.memory_space<vmem>>, vector<32x128xbf16>
    %c0_1 = arith.constant 0 : index
    %c0_2 = arith.constant 0 : index
    %1 = vector.load %arg3[%c0_1, %c0_2] : memref<128x128xbf16, #tpu.memory_space<vmem>>, vector<128x128xbf16>
    %cst = arith.constant dense<0.000000e+00> : vector<32x128xf32>
    %2 = tpu.matmul %0, %1, %cst {dimension_numbers = #tpu.dot_dimension_numbers<[1], [0], [0], [1], [0, 0, 1, 1], [], []>} : vector<32x128xbf16>, vector<128x128xbf16>, vector<32x128xf32> -> vector<32x128xf32>
    %c0_3 = arith.constant 0 : index
    %c0_4 = arith.constant 0 : index
    %3 = vector.load %arg4[%c0_3, %c0_4] : memref<1x128xf32, #tpu.memory_space<vmem>>, vector<1x128xf32>
    %4 = vector.broadcast %3 : vector<1x128xf32> to vector<32x128xf32>
    %5 = arith.addf %2, %4 : vector<32x128xf32>
    %cst_5 = arith.constant 0.000000e+00 : f32
    %6 = vector.broadcast %cst_5 : f32 to vector<32x128xf32>
    %7 = arith.maximumf %5, %6 : vector<32x128xf32>
    %8 = arith.truncf %7 : vector<32x128xf32> to vector<32x128xbf16>
    %c0_6 = arith.constant 0 : index
    %c0_7 = arith.constant 0 : index
    %9 = vector.load %arg5[%c0_6, %c0_7] : memref<32x128xbf16, #tpu.memory_space<vmem>>, vector<32x128xbf16>
    tpu.vector_store %arg5[%c0_6, %c0_7], %8 {strides = array<i32>} : memref<32x128xbf16, #tpu.memory_space<vmem>>, vector<32x128xbf16>,
    return
  }
  func.func @transform_0(%arg0: i32, %arg1: i32) -> (i32, i32) {
    %c0_i32 = arith.constant 0 : i32
    %c0_i32_0 = arith.constant 0 : i32
    return %arg0, %c0_i32 : i32, i32
  }
  func.func @transform_1(%arg0: i32, %arg1: i32) -> (i32, i32) {
    %c0_i32 = arith.constant 0 : i32
    %c0_i32_0 = arith.constant 0 : i32
    return %c0_i32, %arg1 : i32, i32
  }
  func.func @transform_2(%arg0: i32, %arg1: i32) -> (i32, i32) {
    %c0_i32 = arith.constant 0 : i32
    %c0_i32_0 = arith.constant 0 : i32
    return %c0_i32, %arg1 : i32, i32
  }
  func.func @transform_3(%arg0: i32, %arg1: i32) -> (i32, i32) {
    %c0_i32 = arith.constant 0 : i32
    return %arg0, %arg1 : i32, i32
  }
}

module attributes {stable_mosaic.version = 11 : i64} {
  func.func @_gemm_bias_act_kernel(%arg0: i32, %arg1: i32, %arg2: memref<32x128xbf16, #tpu.memory_space<vmem>>, %arg3: memref<128x128xbf16, #tpu.memory_space<vmem>>, %arg4: memref<1x128xf32, #tpu.memory_space<vmem>>, %arg5: memref<32x128xbf16, #tpu.memory_space<vmem>>) attributes {dimension_semantics = [#tpu.dimension_semantics<parallel>, #tpu.dimension_semantics<parallel>], iteration_bounds = array<i64: 1, 1>, scalar_prefetch = 0 : i64, scratch_operands = 0 : i64, tpu.core_type = #tpu.core_type<tc>, window_params = [{transform_indices = @transform_0, window_bounds = array<i64: 32, 128>}, {transform_indices = @transform_1, window_bounds = array<i64: 128, 128>}, {transform_indices = @transform_2, window_bounds = array<i64: 1, 128>}, {transform_indices = @transform_3, window_bounds = array<i64: 32, 128>}]} {
    %c0 = arith.constant 0 : index
    %c0_0 = arith.constant 0 : index
    %0 = vector.load %arg2[%c0, %c0_0] : memref<32x128xbf16, #tpu.memory_space<vmem>>, vector<32x128xbf16>
    %c0_1 = arith.constant 0 : index
    %c0_2 = arith.constant 0 : index
    %1 = vector.load %arg3[%c0_1, %c0_2] : memref<128x128xbf16, #tpu.memory_space<vmem>>, vector<128x128xbf16>
    %cst = arith.constant dense<0.000000e+00> : vector<32x128xf32>
    %2 = tpu.matmul %0, %1, %cst {dimension_numbers = #tpu.dot_dimension_numbers<[1], [0], [0], [1], [0, 0, 1, 1], [], []>} : vector<32x128xbf16>, vector<128x128xbf16>, vector<32x128xf32> -> vector<32x128xf32>
    %c0_3 = arith.constant 0 : index
    %c0_4 = arith.constant 0 : index
    %3 = vector.load %arg4[%c0_3, %c0_4] : memref<1x128xf32, #tpu.memory_space<vmem>>, vector<1x128xf32>
    %4 = vector.broadcast %3 : vector<1x128xf32> to vector<32x128xf32>
    %5 = arith.addf %2, %4 : vector<32x128xf32>
    %6 = arith.truncf %5 : vector<32x128xf32> to vector<32x128xbf16>
    %c0_5 = arith.constant 0 : index
    %c0_6 = arith.constant 0 : index
    %7 = vector.load %arg5[%c0_5, %c0_6] : memref<32x128xbf16, #tpu.memory_space<vmem>>, vector<32x128xbf16>
    tpu.vector_store %arg5[%c0_5, %c0_6], %6 {strides = array<i32>} : memref<32x128xbf16, #tpu.memory_space<vmem>>, vector<32x128xbf16>,
    return
  }
  func.func @transform_0(%arg0: i32, %arg1: i32) -> (i32, i32) {
    %c0_i32 = arith.constant 0 : i32
    %c0_i32_0 = arith.constant 0 : i32
    return %arg0, %c0_i32 : i32, i32
  }
  func.func @transform_1(%arg0: i32, %arg1: i32) -> (i32, i32) {
    %c0_i32 = arith.constant 0 : i32
    %c0_i32_0 = arith.constant 0 : i32
    return %c0_i32, %arg1 : i32, i32
  }
  func.func @transform_2(%arg0: i32, %arg1: i32) -> (i32, i32) {
    %c0_i32 = arith.constant 0 : i32
    %c0_i32_0 = arith.constant 0 : i32
    return %c0_i32, %arg1 : i32, i32
  }
  func.func @transform_3(%arg0: i32, %arg1: i32) -> (i32, i32) {
    %c0_i32 = arith.constant 0 : i32
    return %arg0, %arg1 : i32, i32
  }
}

module attributes {stable_mosaic.version = 11 : i64} {
  func.func @_gemm_bias_act_kernel(%arg0: i32, %arg1: i32, %arg2: memref<32x256xbf16, #tpu.memory_space<vmem>>, %arg3: memref<256x128xbf16, #tpu.memory_space<vmem>>, %arg4: memref<1x128xf32, #tpu.memory_space<vmem>>, %arg5: memref<32x128xbf16, #tpu.memory_space<vmem>>, %arg6: memref<32x128xbf16, #tpu.memory_space<vmem>>) attributes {dimension_semantics = [#tpu.dimension_semantics<parallel>, #tpu.dimension_semantics<parallel>], iteration_bounds = array<i64: 1, 1>, scalar_prefetch = 0 : i64, scratch_operands = 0 : i64, tpu.core_type = #tpu.core_type<tc>, window_params = [{transform_indices = @transform_0, window_bounds = array<i64: 32, 256>}, {transform_indices = @transform_1, window_bounds = array<i64: 256, 128>}, {transform_indices = @transform_2, window_bounds = array<i64: 1, 128>}, {transform_indices = @transform_3, window_bounds = array<i64: 32, 128>}, {transform_indices = @transform_4, window_bounds = array<i64: 32, 128>}]} {
    %c0 = arith.constant 0 : index
    %c0_0 = arith.constant 0 : index
    %0 = vector.load %arg2[%c0, %c0_0] : memref<32x256xbf16, #tpu.memory_space<vmem>>, vector<32x256xbf16>
    %c0_1 = arith.constant 0 : index
    %c0_2 = arith.constant 0 : index
    %1 = vector.load %arg3[%c0_1, %c0_2] : memref<256x128xbf16, #tpu.memory_space<vmem>>, vector<256x128xbf16>
    %cst = arith.constant dense<0.000000e+00> : vector<32x128xf32>
    %2 = tpu.matmul %0, %1, %cst {dimension_numbers = #tpu.dot_dimension_numbers<[1], [0], [0], [1], [0, 0, 1, 1], [], []>} : vector<32x256xbf16>, vector<256x128xbf16>, vector<32x128xf32> -> vector<32x128xf32>
    %c0_3 = arith.constant 0 : index
    %c0_4 = arith.constant 0 : index
    %3 = vector.load %arg4[%c0_3, %c0_4] : memref<1x128xf32, #tpu.memory_space<vmem>>, vector<1x128xf32>
    %4 = vector.broadcast %3 : vector<1x128xf32> to vector<32x128xf32>
    %5 = arith.addf %2, %4 : vector<32x128xf32>
    %c0_5 = arith.constant 0 : index
    %c0_6 = arith.constant 0 : index
    %6 = vector.load %arg5[%c0_5, %c0_6] : memref<32x128xbf16, #tpu.memory_space<vmem>>, vector<32x128xbf16>
    %7 = arith.extf %6 : vector<32x128xbf16> to vector<32x128xf32>
    %8 = arith.addf %5, %7 : vector<32x128xf32>
    %cst_7 = arith.constant 0.000000e+00 : f32
    %9 = vector.broadcast %cst_7 : f32 to vector<32x128xf32>
    %10 = arith.maximumf %8, %9 : vector<32x128xf32>
    %11 = arith.truncf %10 : vector<32x128xf32> to vector<32x128xbf16>
    %c0_8 = arith.constant 0 : index
    %c0_9 = arith.constant 0 : index
    %12 = vector.load %arg6[%c0_8, %c0_9] : memref<32x128xbf16, #tpu.memory_space<vmem>>, vector<32x128xbf16>
    tpu.vector_store %arg6[%c0_8, %c0_9], %11 {strides = array<i32>} : memref<32x128xbf16, #tpu.memory_space<vmem>>, vector<32x128xbf16>,
    return
  }
  func.func @transform_0(%arg0: i32, %arg1: i32) -> (i32, i32) {
    %c0_i32 = arith.constant 0 : i32
    %c0_i32_0 = arith.constant 0 : i32
    return %arg0, %c0_i32 : i32, i32
  }
  func.func @transform_1(%arg0: i32, %arg1: i32) -> (i32, i32) {
    %c0_i32 = arith.constant 0 : i32
    %c0_i32_0 = arith.constant 0 : i32
    return %c0_i32, %arg1 : i32, i32
  }
  func.func @transform_2(%arg0: i32, %arg1: i32) -> (i32, i32) {
    %c0_i32 = arith.constant 0 : i32
    %c0_i32_0 = arith.constant 0 : i32
    return %c0_i32, %arg1 : i32, i32
  }
  func.func @transform_3(%arg0: i32, %arg1: i32) -> (i32, i32) {
    %c0_i32 = arith.constant 0 : i32
    return %arg0, %arg1 : i32, i32
  }
  func.func @transform_4(%arg0: i32, %arg1: i32) -> (i32, i32) {
    %c0_i32 = arith.constant 0 : i32
    return %arg0, %arg1 : i32, i32
  }
}

module attributes {stable_mosaic.version = 11 : i64} {
  func.func @_gemm_bias_act_kernel(%arg0: i32, %arg1: i32, %arg2: memref<32x256xbf16, #tpu.memory_space<vmem>>, %arg3: memref<256x128xbf16, #tpu.memory_space<vmem>>, %arg4: memref<1x128xf32, #tpu.memory_space<vmem>>, %arg5: memref<32x128xbf16, #tpu.memory_space<vmem>>) attributes {dimension_semantics = [#tpu.dimension_semantics<parallel>, #tpu.dimension_semantics<parallel>], iteration_bounds = array<i64: 1, 1>, scalar_prefetch = 0 : i64, scratch_operands = 0 : i64, tpu.core_type = #tpu.core_type<tc>, window_params = [{transform_indices = @transform_0, window_bounds = array<i64: 32, 256>}, {transform_indices = @transform_1, window_bounds = array<i64: 256, 128>}, {transform_indices = @transform_2, window_bounds = array<i64: 1, 128>}, {transform_indices = @transform_3, window_bounds = array<i64: 32, 128>}]} {
    %c0 = arith.constant 0 : index
    %c0_0 = arith.constant 0 : index
    %0 = vector.load %arg2[%c0, %c0_0] : memref<32x256xbf16, #tpu.memory_space<vmem>>, vector<32x256xbf16>
    %c0_1 = arith.constant 0 : index
    %c0_2 = arith.constant 0 : index
    %1 = vector.load %arg3[%c0_1, %c0_2] : memref<256x128xbf16, #tpu.memory_space<vmem>>, vector<256x128xbf16>
    %cst = arith.constant dense<0.000000e+00> : vector<32x128xf32>
    %2 = tpu.matmul %0, %1, %cst {dimension_numbers = #tpu.dot_dimension_numbers<[1], [0], [0], [1], [0, 0, 1, 1], [], []>} : vector<32x256xbf16>, vector<256x128xbf16>, vector<32x128xf32> -> vector<32x128xf32>
    %c0_3 = arith.constant 0 : index
    %c0_4 = arith.constant 0 : index
    %3 = vector.load %arg4[%c0_3, %c0_4] : memref<1x128xf32, #tpu.memory_space<vmem>>, vector<1x128xf32>
    %4 = vector.broadcast %3 : vector<1x128xf32> to vector<32x128xf32>
    %5 = arith.addf %2, %4 : vector<32x128xf32>
    %cst_5 = arith.constant 0.000000e+00 : f32
    %6 = vector.broadcast %cst_5 : f32 to vector<32x128xf32>
    %7 = arith.maximumf %5, %6 : vector<32x128xf32>
    %8 = arith.truncf %7 : vector<32x128xf32> to vector<32x128xbf16>
    %c0_6 = arith.constant 0 : index
    %c0_7 = arith.constant 0 : index
    %9 = vector.load %arg5[%c0_6, %c0_7] : memref<32x128xbf16, #tpu.memory_space<vmem>>, vector<32x128xbf16>
    tpu.vector_store %arg5[%c0_6, %c0_7], %8 {strides = array<i32>} : memref<32x128xbf16, #tpu.memory_space<vmem>>, vector<32x128xbf16>,
    return
  }
  func.func @transform_0(%arg0: i32, %arg1: i32) -> (i32, i32) {
    %c0_i32 = arith.constant 0 : i32
    %c0_i32_0 = arith.constant 0 : i32
    return %arg0, %c0_i32 : i32, i32
  }
  func.func @transform_1(%arg0: i32, %arg1: i32) -> (i32, i32) {
    %c0_i32 = arith.constant 0 : i32
    %c0_i32_0 = arith.constant 0 : i32
    return %c0_i32, %arg1 : i32, i32
  }
  func.func @transform_2(%arg0: i32, %arg1: i32) -> (i32, i32) {
    %c0_i32 = arith.constant 0 : i32
    %c0_i32_0 = arith.constant 0 : i32
    return %c0_i32, %arg1 : i32, i32
  }
  func.func @transform_3(%arg0: i32, %arg1: i32) -> (i32, i32) {
    %c0_i32 = arith.constant 0 : i32
    return %arg0, %arg1 : i32, i32
  }
}

module attributes {stable_mosaic.version = 11 : i64} {
  func.func @_gemm_bias_act_kernel(%arg0: i32, %arg1: i32, %arg2: memref<16x256xbf16, #tpu.memory_space<vmem>>, %arg3: memref<256x128xbf16, #tpu.memory_space<vmem>>, %arg4: memref<1x128xf32, #tpu.memory_space<vmem>>, %arg5: memref<16x128xbf16, #tpu.memory_space<vmem>>) attributes {dimension_semantics = [#tpu.dimension_semantics<parallel>, #tpu.dimension_semantics<parallel>], iteration_bounds = array<i64: 1, 1>, scalar_prefetch = 0 : i64, scratch_operands = 0 : i64, tpu.core_type = #tpu.core_type<tc>, window_params = [{transform_indices = @transform_0, window_bounds = array<i64: 16, 256>}, {transform_indices = @transform_1, window_bounds = array<i64: 256, 128>}, {transform_indices = @transform_2, window_bounds = array<i64: 1, 128>}, {transform_indices = @transform_3, window_bounds = array<i64: 16, 128>}]} {
    %c0 = arith.constant 0 : index
    %c0_0 = arith.constant 0 : index
    %0 = vector.load %arg2[%c0, %c0_0] : memref<16x256xbf16, #tpu.memory_space<vmem>>, vector<16x256xbf16>
    %c0_1 = arith.constant 0 : index
    %c0_2 = arith.constant 0 : index
    %1 = vector.load %arg3[%c0_1, %c0_2] : memref<256x128xbf16, #tpu.memory_space<vmem>>, vector<256x128xbf16>
    %cst = arith.constant dense<0.000000e+00> : vector<16x128xf32>
    %2 = tpu.matmul %0, %1, %cst {dimension_numbers = #tpu.dot_dimension_numbers<[1], [0], [0], [1], [0, 0, 1, 1], [], []>} : vector<16x256xbf16>, vector<256x128xbf16>, vector<16x128xf32> -> vector<16x128xf32>
    %c0_3 = arith.constant 0 : index
    %c0_4 = arith.constant 0 : index
    %3 = vector.load %arg4[%c0_3, %c0_4] : memref<1x128xf32, #tpu.memory_space<vmem>>, vector<1x128xf32>
    %4 = vector.broadcast %3 : vector<1x128xf32> to vector<16x128xf32>
    %5 = arith.addf %2, %4 : vector<16x128xf32>
    %cst_5 = arith.constant 0.000000e+00 : f32
    %6 = vector.broadcast %cst_5 : f32 to vector<16x128xf32>
    %7 = arith.maximumf %5, %6 : vector<16x128xf32>
    %8 = arith.truncf %7 : vector<16x128xf32> to vector<16x128xbf16>
    %c0_6 = arith.constant 0 : index
    %c0_7 = arith.constant 0 : index
    %9 = vector.load %arg5[%c0_6, %c0_7] : memref<16x128xbf16, #tpu.memory_space<vmem>>, vector<16x128xbf16>
    tpu.vector_store %arg5[%c0_6, %c0_7], %8 {strides = array<i32>} : memref<16x128xbf16, #tpu.memory_space<vmem>>, vector<16x128xbf16>,
    return
  }
  func.func @transform_0(%arg0: i32, %arg1: i32) -> (i32, i32) {
    %c0_i32 = arith.constant 0 : i32
    %c0_i32_0 = arith.constant 0 : i32
    return %arg0, %c0_i32 : i32, i32
  }
  func.func @transform_1(%arg0: i32, %arg1: i32) -> (i32, i32) {
    %c0_i32 = arith.constant 0 : i32
    %c0_i32_0 = arith.constant 0 : i32
    return %c0_i32, %arg1 : i32, i32
  }
  func.func @transform_2(%arg0: i32, %arg1: i32) -> (i32, i32) {
    %c0_i32 = arith.constant 0 : i32
    %c0_i32_0 = arith.constant 0 : i32
    return %c0_i32, %arg1 : i32, i32
  }
  func.func @transform_3(%arg0: i32, %arg1: i32) -> (i32, i32) {
    %c0_i32 = arith.constant 0 : i32
    return %arg0, %arg1 : i32, i32
  }
}

module attributes {stable_mosaic.version = 11 : i64} {
  func.func @_gemm_bias_act_kernel(%arg0: i32, %arg1: i32, %arg2: memref<16x128xbf16, #tpu.memory_space<vmem>>, %arg3: memref<128x128xbf16, #tpu.memory_space<vmem>>, %arg4: memref<1x128xf32, #tpu.memory_space<vmem>>, %arg5: memref<16x128xbf16, #tpu.memory_space<vmem>>) attributes {dimension_semantics = [#tpu.dimension_semantics<parallel>, #tpu.dimension_semantics<parallel>], iteration_bounds = array<i64: 1, 1>, scalar_prefetch = 0 : i64, scratch_operands = 0 : i64, tpu.core_type = #tpu.core_type<tc>, window_params = [{transform_indices = @transform_0, window_bounds = array<i64: 16, 128>}, {transform_indices = @transform_1, window_bounds = array<i64: 128, 128>}, {transform_indices = @transform_2, window_bounds = array<i64: 1, 128>}, {transform_indices = @transform_3, window_bounds = array<i64: 16, 128>}]} {
    %c0 = arith.constant 0 : index
    %c0_0 = arith.constant 0 : index
    %0 = vector.load %arg2[%c0, %c0_0] : memref<16x128xbf16, #tpu.memory_space<vmem>>, vector<16x128xbf16>
    %c0_1 = arith.constant 0 : index
    %c0_2 = arith.constant 0 : index
    %1 = vector.load %arg3[%c0_1, %c0_2] : memref<128x128xbf16, #tpu.memory_space<vmem>>, vector<128x128xbf16>
    %cst = arith.constant dense<0.000000e+00> : vector<16x128xf32>
    %2 = tpu.matmul %0, %1, %cst {dimension_numbers = #tpu.dot_dimension_numbers<[1], [0], [0], [1], [0, 0, 1, 1], [], []>} : vector<16x128xbf16>, vector<128x128xbf16>, vector<16x128xf32> -> vector<16x128xf32>
    %c0_3 = arith.constant 0 : index
    %c0_4 = arith.constant 0 : index
    %3 = vector.load %arg4[%c0_3, %c0_4] : memref<1x128xf32, #tpu.memory_space<vmem>>, vector<1x128xf32>
    %4 = vector.broadcast %3 : vector<1x128xf32> to vector<16x128xf32>
    %5 = arith.addf %2, %4 : vector<16x128xf32>
    %6 = arith.truncf %5 : vector<16x128xf32> to vector<16x128xbf16>
    %c0_5 = arith.constant 0 : index
    %c0_6 = arith.constant 0 : index
    %7 = vector.load %arg5[%c0_5, %c0_6] : memref<16x128xbf16, #tpu.memory_space<vmem>>, vector<16x128xbf16>
    tpu.vector_store %arg5[%c0_5, %c0_6], %6 {strides = array<i32>} : memref<16x128xbf16, #tpu.memory_space<vmem>>, vector<16x128xbf16>,
    return
  }
  func.func @transform_0(%arg0: i32, %arg1: i32) -> (i32, i32) {
    %c0_i32 = arith.constant 0 : i32
    %c0_i32_0 = arith.constant 0 : i32
    return %arg0, %c0_i32 : i32, i32
  }
  func.func @transform_1(%arg0: i32, %arg1: i32) -> (i32, i32) {
    %c0_i32 = arith.constant 0 : i32
    %c0_i32_0 = arith.constant 0 : i32
    return %c0_i32, %arg1 : i32, i32
  }
  func.func @transform_2(%arg0: i32, %arg1: i32) -> (i32, i32) {
    %c0_i32 = arith.constant 0 : i32
    %c0_i32_0 = arith.constant 0 : i32
    return %c0_i32, %arg1 : i32, i32
  }
  func.func @transform_3(%arg0: i32, %arg1: i32) -> (i32, i32) {
    %c0_i32 = arith.constant 0 : i32
    return %arg0, %arg1 : i32, i32
  }
}

module attributes {stable_mosaic.version = 11 : i64} {
  func.func @_gemm_bias_act_kernel(%arg0: i32, %arg1: i32, %arg2: memref<16x384xbf16, #tpu.memory_space<vmem>>, %arg3: memref<384x128xbf16, #tpu.memory_space<vmem>>, %arg4: memref<1x128xf32, #tpu.memory_space<vmem>>, %arg5: memref<16x128xbf16, #tpu.memory_space<vmem>>) attributes {dimension_semantics = [#tpu.dimension_semantics<parallel>, #tpu.dimension_semantics<parallel>], iteration_bounds = array<i64: 1, 1>, scalar_prefetch = 0 : i64, scratch_operands = 0 : i64, tpu.core_type = #tpu.core_type<tc>, window_params = [{transform_indices = @transform_0, window_bounds = array<i64: 16, 384>}, {transform_indices = @transform_1, window_bounds = array<i64: 384, 128>}, {transform_indices = @transform_2, window_bounds = array<i64: 1, 128>}, {transform_indices = @transform_3, window_bounds = array<i64: 16, 128>}]} {
    %c0 = arith.constant 0 : index
    %c0_0 = arith.constant 0 : index
    %0 = vector.load %arg2[%c0, %c0_0] : memref<16x384xbf16, #tpu.memory_space<vmem>>, vector<16x384xbf16>
    %c0_1 = arith.constant 0 : index
    %c0_2 = arith.constant 0 : index
    %1 = vector.load %arg3[%c0_1, %c0_2] : memref<384x128xbf16, #tpu.memory_space<vmem>>, vector<384x128xbf16>
    %cst = arith.constant dense<0.000000e+00> : vector<16x128xf32>
    %2 = tpu.matmul %0, %1, %cst {dimension_numbers = #tpu.dot_dimension_numbers<[1], [0], [0], [1], [0, 0, 1, 1], [], []>} : vector<16x384xbf16>, vector<384x128xbf16>, vector<16x128xf32> -> vector<16x128xf32>
    %c0_3 = arith.constant 0 : index
    %c0_4 = arith.constant 0 : index
    %3 = vector.load %arg4[%c0_3, %c0_4] : memref<1x128xf32, #tpu.memory_space<vmem>>, vector<1x128xf32>
    %4 = vector.broadcast %3 : vector<1x128xf32> to vector<16x128xf32>
    %5 = arith.addf %2, %4 : vector<16x128xf32>
    %cst_5 = arith.constant 0.000000e+00 : f32
    %6 = vector.broadcast %cst_5 : f32 to vector<16x128xf32>
    %7 = arith.maximumf %5, %6 : vector<16x128xf32>
    %8 = arith.truncf %7 : vector<16x128xf32> to vector<16x128xbf16>
    %c0_6 = arith.constant 0 : index
    %c0_7 = arith.constant 0 : index
    %9 = vector.load %arg5[%c0_6, %c0_7] : memref<16x128xbf16, #tpu.memory_space<vmem>>, vector<16x128xbf16>
    tpu.vector_store %arg5[%c0_6, %c0_7], %8 {strides = array<i32>} : memref<16x128xbf16, #tpu.memory_space<vmem>>, vector<16x128xbf16>,
    return
  }
  func.func @transform_0(%arg0: i32, %arg1: i32) -> (i32, i32) {
    %c0_i32 = arith.constant 0 : i32
    %c0_i32_0 = arith.constant 0 : i32
    return %arg0, %c0_i32 : i32, i32
  }
  func.func @transform_1(%arg0: i32, %arg1: i32) -> (i32, i32) {
    %c0_i32 = arith.constant 0 : i32
    %c0_i32_0 = arith.constant 0 : i32
    return %c0_i32, %arg1 : i32, i32
  }
  func.func @transform_2(%arg0: i32, %arg1: i32) -> (i32, i32) {
    %c0_i32 = arith.constant 0 : i32
    %c0_i32_0 = arith.constant 0 : i32
    return %c0_i32, %arg1 : i32, i32
  }
  func.func @transform_3(%arg0: i32, %arg1: i32) -> (i32, i32) {
    %c0_i32 = arith.constant 0 : i32
    return %arg0, %arg1 : i32, i32
  }
}

module attributes {stable_mosaic.version = 11 : i64} {
  func.func @_gemm_bias_act_kernel(%arg0: i32, %arg1: i32, %arg2: memref<16x384xbf16, #tpu.memory_space<vmem>>, %arg3: memref<384x128xbf16, #tpu.memory_space<vmem>>, %arg4: memref<1x128xf32, #tpu.memory_space<vmem>>, %arg5: memref<16x128xbf16, #tpu.memory_space<vmem>>, %arg6: memref<16x128xbf16, #tpu.memory_space<vmem>>) attributes {dimension_semantics = [#tpu.dimension_semantics<parallel>, #tpu.dimension_semantics<parallel>], iteration_bounds = array<i64: 1, 1>, scalar_prefetch = 0 : i64, scratch_operands = 0 : i64, tpu.core_type = #tpu.core_type<tc>, window_params = [{transform_indices = @transform_0, window_bounds = array<i64: 16, 384>}, {transform_indices = @transform_1, window_bounds = array<i64: 384, 128>}, {transform_indices = @transform_2, window_bounds = array<i64: 1, 128>}, {transform_indices = @transform_3, window_bounds = array<i64: 16, 128>}, {transform_indices = @transform_4, window_bounds = array<i64: 16, 128>}]} {
    %c0 = arith.constant 0 : index
    %c0_0 = arith.constant 0 : index
    %0 = vector.load %arg2[%c0, %c0_0] : memref<16x384xbf16, #tpu.memory_space<vmem>>, vector<16x384xbf16>
    %c0_1 = arith.constant 0 : index
    %c0_2 = arith.constant 0 : index
    %1 = vector.load %arg3[%c0_1, %c0_2] : memref<384x128xbf16, #tpu.memory_space<vmem>>, vector<384x128xbf16>
    %cst = arith.constant dense<0.000000e+00> : vector<16x128xf32>
    %2 = tpu.matmul %0, %1, %cst {dimension_numbers = #tpu.dot_dimension_numbers<[1], [0], [0], [1], [0, 0, 1, 1], [], []>} : vector<16x384xbf16>, vector<384x128xbf16>, vector<16x128xf32> -> vector<16x128xf32>
    %c0_3 = arith.constant 0 : index
    %c0_4 = arith.constant 0 : index
    %3 = vector.load %arg4[%c0_3, %c0_4] : memref<1x128xf32, #tpu.memory_space<vmem>>, vector<1x128xf32>
    %4 = vector.broadcast %3 : vector<1x128xf32> to vector<16x128xf32>
    %5 = arith.addf %2, %4 : vector<16x128xf32>
    %c0_5 = arith.constant 0 : index
    %c0_6 = arith.constant 0 : index
    %6 = vector.load %arg5[%c0_5, %c0_6] : memref<16x128xbf16, #tpu.memory_space<vmem>>, vector<16x128xbf16>
    %7 = arith.extf %6 : vector<16x128xbf16> to vector<16x128xf32>
    %8 = arith.addf %5, %7 : vector<16x128xf32>
    %cst_7 = arith.constant 0.000000e+00 : f32
    %9 = vector.broadcast %cst_7 : f32 to vector<16x128xf32>
    %10 = arith.maximumf %8, %9 : vector<16x128xf32>
    %11 = arith.truncf %10 : vector<16x128xf32> to vector<16x128xbf16>
    %c0_8 = arith.constant 0 : index
    %c0_9 = arith.constant 0 : index
    %12 = vector.load %arg6[%c0_8, %c0_9] : memref<16x128xbf16, #tpu.memory_space<vmem>>, vector<16x128xbf16>
    tpu.vector_store %arg6[%c0_8, %c0_9], %11 {strides = array<i32>} : memref<16x128xbf16, #tpu.memory_space<vmem>>, vector<16x128xbf16>,
    return
  }
  func.func @transform_0(%arg0: i32, %arg1: i32) -> (i32, i32) {
    %c0_i32 = arith.constant 0 : i32
    %c0_i32_0 = arith.constant 0 : i32
    return %arg0, %c0_i32 : i32, i32
  }
  func.func @transform_1(%arg0: i32, %arg1: i32) -> (i32, i32) {
    %c0_i32 = arith.constant 0 : i32
    %c0_i32_0 = arith.constant 0 : i32
    return %c0_i32, %arg1 : i32, i32
  }
  func.func @transform_2(%arg0: i32, %arg1: i32) -> (i32, i32) {
    %c0_i32 = arith.constant 0 : i32
    %c0_i32_0 = arith.constant 0 : i32
    return %c0_i32, %arg1 : i32, i32
  }
  func.func @transform_3(%arg0: i32, %arg1: i32) -> (i32, i32) {
    %c0_i32 = arith.constant 0 : i32
    return %arg0, %arg1 : i32, i32
  }
  func.func @transform_4(%arg0: i32, %arg1: i32) -> (i32, i32) {
    %c0_i32 = arith.constant 0 : i32
    return %arg0, %arg1 : i32, i32
  }
}

module attributes {stable_mosaic.version = 11 : i64} {
  func.func @_gemm_bias_act_kernel(%arg0: i32, %arg1: i32, %arg2: memref<16x640xbf16, #tpu.memory_space<vmem>>, %arg3: memref<640x128xbf16, #tpu.memory_space<vmem>>, %arg4: memref<1x128xf32, #tpu.memory_space<vmem>>, %arg5: memref<16x128xbf16, #tpu.memory_space<vmem>>) attributes {dimension_semantics = [#tpu.dimension_semantics<parallel>, #tpu.dimension_semantics<parallel>], iteration_bounds = array<i64: 1, 1>, scalar_prefetch = 0 : i64, scratch_operands = 0 : i64, tpu.core_type = #tpu.core_type<tc>, window_params = [{transform_indices = @transform_0, window_bounds = array<i64: 16, 640>}, {transform_indices = @transform_1, window_bounds = array<i64: 640, 128>}, {transform_indices = @transform_2, window_bounds = array<i64: 1, 128>}, {transform_indices = @transform_3, window_bounds = array<i64: 16, 128>}]} {
    %c0 = arith.constant 0 : index
    %c0_0 = arith.constant 0 : index
    %0 = vector.load %arg2[%c0, %c0_0] : memref<16x640xbf16, #tpu.memory_space<vmem>>, vector<16x640xbf16>
    %c0_1 = arith.constant 0 : index
    %c0_2 = arith.constant 0 : index
    %1 = vector.load %arg3[%c0_1, %c0_2] : memref<640x128xbf16, #tpu.memory_space<vmem>>, vector<640x128xbf16>
    %cst = arith.constant dense<0.000000e+00> : vector<16x128xf32>
    %2 = tpu.matmul %0, %1, %cst {dimension_numbers = #tpu.dot_dimension_numbers<[1], [0], [0], [1], [0, 0, 1, 1], [], []>} : vector<16x640xbf16>, vector<640x128xbf16>, vector<16x128xf32> -> vector<16x128xf32>
    %c0_3 = arith.constant 0 : index
    %c0_4 = arith.constant 0 : index
    %3 = vector.load %arg4[%c0_3, %c0_4] : memref<1x128xf32, #tpu.memory_space<vmem>>, vector<1x128xf32>
    %4 = vector.broadcast %3 : vector<1x128xf32> to vector<16x128xf32>
    %5 = arith.addf %2, %4 : vector<16x128xf32>
    %cst_5 = arith.constant 0.000000e+00 : f32
    %6 = vector.broadcast %cst_5 : f32 to vector<16x128xf32>
    %7 = arith.maximumf %5, %6 : vector<16x128xf32>
    %8 = arith.truncf %7 : vector<16x128xf32> to vector<16x128xbf16>
    %c0_6 = arith.constant 0 : index
    %c0_7 = arith.constant 0 : index
    %9 = vector.load %arg5[%c0_6, %c0_7] : memref<16x128xbf16, #tpu.memory_space<vmem>>, vector<16x128xbf16>
    tpu.vector_store %arg5[%c0_6, %c0_7], %8 {strides = array<i32>} : memref<16x128xbf16, #tpu.memory_space<vmem>>, vector<16x128xbf16>,
    return
  }
  func.func @transform_0(%arg0: i32, %arg1: i32) -> (i32, i32) {
    %c0_i32 = arith.constant 0 : i32
    %c0_i32_0 = arith.constant 0 : i32
    return %arg0, %c0_i32 : i32, i32
  }
  func.func @transform_1(%arg0: i32, %arg1: i32) -> (i32, i32) {
    %c0_i32 = arith.constant 0 : i32
    %c0_i32_0 = arith.constant 0 : i32
    return %c0_i32, %arg1 : i32, i32
  }
  func.func @transform_2(%arg0: i32, %arg1: i32) -> (i32, i32) {
    %c0_i32 = arith.constant 0 : i32
    %c0_i32_0 = arith.constant 0 : i32
    return %c0_i32, %arg1 : i32, i32
  }
  func.func @transform_3(%arg0: i32, %arg1: i32) -> (i32, i32) {
    %c0_i32 = arith.constant 0 : i32
    return %arg0, %arg1 : i32, i32
  }
}

module attributes {stable_mosaic.version = 11 : i64} {
  func.func @_gemm_bias_act_kernel(%arg0: i32, %arg1: i32, %arg2: memref<16x640xbf16, #tpu.memory_space<vmem>>, %arg3: memref<640x128xbf16, #tpu.memory_space<vmem>>, %arg4: memref<1x128xf32, #tpu.memory_space<vmem>>, %arg5: memref<16x128xbf16, #tpu.memory_space<vmem>>, %arg6: memref<16x128xbf16, #tpu.memory_space<vmem>>) attributes {dimension_semantics = [#tpu.dimension_semantics<parallel>, #tpu.dimension_semantics<parallel>], iteration_bounds = array<i64: 1, 1>, scalar_prefetch = 0 : i64, scratch_operands = 0 : i64, tpu.core_type = #tpu.core_type<tc>, window_params = [{transform_indices = @transform_0, window_bounds = array<i64: 16, 640>}, {transform_indices = @transform_1, window_bounds = array<i64: 640, 128>}, {transform_indices = @transform_2, window_bounds = array<i64: 1, 128>}, {transform_indices = @transform_3, window_bounds = array<i64: 16, 128>}, {transform_indices = @transform_4, window_bounds = array<i64: 16, 128>}]} {
    %c0 = arith.constant 0 : index
    %c0_0 = arith.constant 0 : index
    %0 = vector.load %arg2[%c0, %c0_0] : memref<16x640xbf16, #tpu.memory_space<vmem>>, vector<16x640xbf16>
    %c0_1 = arith.constant 0 : index
    %c0_2 = arith.constant 0 : index
    %1 = vector.load %arg3[%c0_1, %c0_2] : memref<640x128xbf16, #tpu.memory_space<vmem>>, vector<640x128xbf16>
    %cst = arith.constant dense<0.000000e+00> : vector<16x128xf32>
    %2 = tpu.matmul %0, %1, %cst {dimension_numbers = #tpu.dot_dimension_numbers<[1], [0], [0], [1], [0, 0, 1, 1], [], []>} : vector<16x640xbf16>, vector<640x128xbf16>, vector<16x128xf32> -> vector<16x128xf32>
    %c0_3 = arith.constant 0 : index
    %c0_4 = arith.constant 0 : index
    %3 = vector.load %arg4[%c0_3, %c0_4] : memref<1x128xf32, #tpu.memory_space<vmem>>, vector<1x128xf32>
    %4 = vector.broadcast %3 : vector<1x128xf32> to vector<16x128xf32>
    %5 = arith.addf %2, %4 : vector<16x128xf32>
    %c0_5 = arith.constant 0 : index
    %c0_6 = arith.constant 0 : index
    %6 = vector.load %arg5[%c0_5, %c0_6] : memref<16x128xbf16, #tpu.memory_space<vmem>>, vector<16x128xbf16>
    %7 = arith.extf %6 : vector<16x128xbf16> to vector<16x128xf32>
    %8 = arith.addf %5, %7 : vector<16x128xf32>
    %cst_7 = arith.constant 0.000000e+00 : f32
    %9 = vector.broadcast %cst_7 : f32 to vector<16x128xf32>
    %10 = arith.maximumf %8, %9 : vector<16x128xf32>
    %11 = arith.truncf %10 : vector<16x128xf32> to vector<16x128xbf16>
    %c0_8 = arith.constant 0 : index
    %c0_9 = arith.constant 0 : index
    %12 = vector.load %arg6[%c0_8, %c0_9] : memref<16x128xbf16, #tpu.memory_space<vmem>>, vector<16x128xbf16>
    tpu.vector_store %arg6[%c0_8, %c0_9], %11 {strides = array<i32>} : memref<16x128xbf16, #tpu.memory_space<vmem>>, vector<16x128xbf16>,
    return
  }
  func.func @transform_0(%arg0: i32, %arg1: i32) -> (i32, i32) {
    %c0_i32 = arith.constant 0 : i32
    %c0_i32_0 = arith.constant 0 : i32
    return %arg0, %c0_i32 : i32, i32
  }
  func.func @transform_1(%arg0: i32, %arg1: i32) -> (i32, i32) {
    %c0_i32 = arith.constant 0 : i32
    %c0_i32_0 = arith.constant 0 : i32
    return %c0_i32, %arg1 : i32, i32
  }
  func.func @transform_2(%arg0: i32, %arg1: i32) -> (i32, i32) {
    %c0_i32 = arith.constant 0 : i32
    %c0_i32_0 = arith.constant 0 : i32
    return %c0_i32, %arg1 : i32, i32
  }
  func.func @transform_3(%arg0: i32, %arg1: i32) -> (i32, i32) {
    %c0_i32 = arith.constant 0 : i32
    return %arg0, %arg1 : i32, i32
  }
  func.func @transform_4(%arg0: i32, %arg1: i32) -> (i32, i32) {
    %c0_i32 = arith.constant 0 : i32
    return %arg0, %arg1 : i32, i32
  }
}

</mosaic_0001>

<bundles_post_ra>
// kernel: _lambda_.20
= control target key start
LH: loop header
LB: loop body
LE: loop exit
PB: predicated region body
PF: predicated region fallthrough
CT: control target
= control target key end

     0   :  { %s1363_s12 = smov 0   ;;  %s1365_s13 = smov 0   ;;  %s1572_s0 = inlined_call_operand.vmem [shape: bf16[512,256], index: 0, kind: input, shape index: {}]   ;;  %s1573_s1 = inlined_call_operand.vmem [shape: bf16[256,128], index: 1, kind: input, shape index: {}]   ;;  %s1574_s2 = inlined_call_operand.vmem [shape: f32[1,128], index: 2, kind: input, shape index: {}]   ;;  %s1575_s3 = inlined_call_operand.vmem [shape: bf16[512,128], index: 3, kind: output, shape index: {}]  }
   0x1   :  { %s1367_s14 = smov 0  }
   0x2 LB: > { %s25_s15 = sadd.s32 1, %s1337_s13  ;;  %p934_p0 = scmp.ge.s32.totalorder %s1341_s14, 1  ;;  %s1341_s14 = sphi %s1367_s14, %s13_s14   ;;  %s1337_s13 = sphi %s1365_s13, %s1577_s13   ;;  %s1333_s12 = sphi %s1363_s12, %s1576_s12  }
   0x3   : > { %p27_p1 = scmp.ge.s32.totalorder %s25_s15, 2  ;;  %p170_p2 = scmp.lt.s32.totalorder %s1341_s14, 3 }
   0x5   : > { %s1579_s15 = smov (%p27_p1, %s25_s15), 0  ;;  %p171_p3 = pnand %p934_p0, %p170_p2 }
   0x6   : > { %s935_s28 = sshll.u32 (!%p171_p3), %s1333_s12, 5 }
   0x7   : > { %174 = sbr.rel (%p171_p3) target bundleno = 305 (0x131), region = 32  ;;  %p206_p4 = scmp.lt.s32.totalorder (!%p171_p3), %s935_s28, 63 }
   0xc   : > { %v1174_v0 = vld [vmem:[%s1573_s1 + $0x38] sm:$0xff]  ;;  %v1173_v2 = vld [vmem:[%s1573_s1 + $0x30] sm:$0xff]  ;;  %v1172_v4 = vld [vmem:[%s1573_s1 + $0x28] sm:$0xff]  ;;  %s1581_s28 = smov (!%p206_p4, %s935_s28), 63 }
   0xd   : > { %v1182_v1 = vld [vmem:[%s1573_s1 + $0x78] sm:$0xff]  ;;  %552 = vmatpush.bf16.msra.mxu0 %v1174_v0  ;;  %1278 = vmatpush.bf16.msra.mxu2 %v1174_v0  ;;  %v1181_v3 = vld [vmem:[%s1573_s1 + $0x70] sm:$0xff]  ;;  %v1180_v5 = vld [vmem:[%s1573_s1 + $0x68] sm:$0xff]  ;;  %s1134_s17 = sshll.u32 %s1581_s28, 3  ;;  %s939_s5 = sshll.u32 %s1581_s28, 2 }
   0xe   : > { %641 = vmatpush.bf16.msra.mxu1 %v1182_v1  ;;  %1286 = vmatpush.bf16.msra.mxu3 %v1182_v1  ;;  %v1171_v6 = vld [vmem:[%s1573_s1 + $0x20] sm:$0xff]  ;;  %v1170_v8 = vld [vmem:[%s1573_s1 + $0x18] sm:$0xff]  ;;  %v1169_v10 = vld [vmem:[%s1573_s1 + $0x10] sm:$0xff]  ;;  %s1429_s22 = scalar_lea.vmem %s1572_s0, %s1134_s17  ;;  %s1516_s8 = scalar_lea.vmem %s1575_s3, %s939_s5 }
   0xf   : > { %v1179_v7 = vld [vmem:[%s1573_s1 + $0x60] sm:$0xff]  ;;  %v1178_v9 = vld [vmem:[%s1573_s1 + $0x58] sm:$0xff]  ;;  %v1177_v11 = vld [vmem:[%s1573_s1 + $0x50] sm:$0xff] }
  0x10   : > { %v1168_v12 = vld [vmem:[%s1573_s1 + $0x8] sm:$0xff]  ;;  %v1167_v14 = vld [vmem:[%s1573_s1] sm:$0xff]  ;;  %v950_v28 = vld [vmem:[%s1429_s22 + $0x10] sm:$0xf] }
  0x11   : > { %553 = vmatpush.bf16.msra.mxu0 %v1173_v2  ;;  %1279 = vmatpush.bf16.msra.mxu2 %v1173_v2  ;;  %v1176_v13 = vld [vmem:[%s1573_s1 + $0x48] sm:$0xff]  ;;  %v1175_v15 = vld [vmem:[%s1573_s1 + $0x40] sm:$0xff]  ;;  %v1138_v29 = vld [vmem:[%s1429_s22 + $0x14] sm:$0xf0] }
  0x12   : > { %642 = vmatpush.bf16.msra.mxu1 %v1181_v3  ;;  %1287 = vmatpush.bf16.msra.mxu3 %v1181_v3  ;;  %v942_v16 = vld [vmem:[%s1429_s22] sm:$0xf]  ;;  %v1136_v17 = vld [vmem:[%s1429_s22 + $0x4] sm:$0xf0]  ;;  %v1135_v20 = vld [vmem:[%s1429_s22 + $0x4] sm:$0xf]  ;;  %v951_v36 = vor.u32 %v1138_v29, %v950_v28 }
  0x13   : > { %v1006_v18 = vld [vmem:[%s1429_s22 + $0x80] sm:$0xf]  ;;  %v1152_v19 = vld [vmem:[%s1429_s22 + $0x84] sm:$0xf0]  ;;  %v944_v21 = vld [vmem:[%s1429_s22 + $0x8] sm:$0xf0]  ;;  %v943_v24 = vor.u32 %v1136_v17, %v942_v16 }
  0x14   : > { %v1151_v22 = vld [vmem:[%s1429_s22 + $0x84] sm:$0xf]  ;;  %v1008_v23 = vld [vmem:[%s1429_s22 + $0x88] sm:$0xf0]  ;;  %v1007_v25 = vor.u32 %v1152_v19, %v1006_v18  ;;  %v947_v26 = vor.u32 %v1135_v20, %v944_v21  ;;  %v1014_v30 = vld [vmem:[%s1429_s22 + $0x90] sm:$0xf] }
  0x15   : > { %554 = vmatpush.bf16.msra.mxu0 %v1172_v4  ;;  %1280 = vmatpush.bf16.msra.mxu2 %v1172_v4  ;;  %v1011_v27 = vor.u32 %v1151_v22, %v1008_v23  ;;  %v1154_v31 = vld [vmem:[%s1429_s22 + $0x94] sm:$0xf0]  ;;  %v1137_v32 = vld [vmem:[%s1429_s22 + $0x14] sm:$0xf]  ;;  %v952_v33 = vld [vmem:[%s1429_s22 + $0x18] sm:$0xf0] }
  0x16   : > { %643 = vmatpush.bf16.msra.mxu1 %v1180_v5  ;;  %1288 = vmatpush.bf16.msra.mxu3 %v1180_v5  ;;  %v1153_v34 = vld [vmem:[%s1429_s22 + $0x94] sm:$0xf]  ;;  %v1016_v35 = vld [vmem:[%s1429_s22 + $0x98] sm:$0xf0]  ;;  %v1015_v37 = vor.u32 %v1154_v31, %v1014_v30  ;;  %v955_v38 = vor.u32 %v1137_v32, %v952_v33  ;;  %v958_v40 = vld [vmem:[%s1429_s22 + $0x20] sm:$0xf] }
  0x17   : > { %v1019_v39 = vor.u32 %v1153_v34, %v1016_v35  ;;  %v1140_v41 = vld [vmem:[%s1429_s22 + $0x24] sm:$0xf0]  ;;  %v1022_v42 = vld [vmem:[%s1429_s22 + $0xa0] sm:$0xf]  ;;  %v1139_v44 = vld [vmem:[%s1429_s22 + $0x24] sm:$0xf] }
  0x18   : > { %v1156_v43 = vld [vmem:[%s1429_s22 + $0xa4] sm:$0xf0]  ;;  %v960_v45 = vld [vmem:[%s1429_s22 + $0x28] sm:$0xf0]  ;;  %v1155_v46 = vld [vmem:[%s1429_s22 + $0xa4] sm:$0xf]  ;;  %v959_v48 = vor.u32 %v1140_v41, %v958_v40 }
  0x19   : > { %555 = vmatpush.bf16.msra.mxu0 %v1171_v6  ;;  %1281 = vmatpush.bf16.msra.mxu2 %v1171_v6  ;;  %v1024_v47 = vld [vmem:[%s1429_s22 + $0xa8] sm:$0xf0]  ;;  %v1023_v49 = vor.u32 %v1156_v43, %v1022_v42  ;;  %v963_v50 = vor.u32 %v1139_v44, %v960_v45  ;;  %v966_v52 = vld [vmem:[%s1429_s22 + $0x30] sm:$0xf]  ;;  %v1142_v53 = vld [vmem:[%s1429_s22 + $0x34] sm:$0xf0] }
  0x1a   : > { %644 = vmatpush.bf16.msra.mxu1 %v1179_v7  ;;  %1289 = vmatpush.bf16.msra.mxu3 %v1179_v7  ;;  %v1027_v51 = vor.u32 %v1155_v46, %v1024_v47  ;;  %v1030_v54 = vld [vmem:[%s1429_s22 + $0xb0] sm:$0xf]  ;;  %v1158_v55 = vld [vmem:[%s1429_s22 + $0xb4] sm:$0xf0]  ;;  %v1141_v56 = vld [vmem:[%s1429_s22 + $0x34] sm:$0xf]  ;;  %v967_v60 = vor.u32 %v1142_v53, %v966_v52 }
  0x1b   : > { %v968_v57 = vld [vmem:[%s1429_s22 + $0x38] sm:$0xf0]  ;;  %v1157_v58 = vld [vmem:[%s1429_s22 + $0xb4] sm:$0xf]  ;;  %v1031_v61 = vor.u32 %v1158_v55, %v1030_v54  ;;  %v974_v0 = vld [vmem:[%s1429_s22 + $0x40] sm:$0xf] }
  0x1c   : > { %v1032_v59 = vld [vmem:[%s1429_s22 + $0xb8] sm:$0xf0]  ;;  %v971_v62 = vor.u32 %v1141_v56, %v968_v57  ;;  %v1144_v1 = vld [vmem:[%s1429_s22 + $0x44] sm:$0xf0]  ;;  %v1038_v2 = vld [vmem:[%s1429_s22 + $0xc0] sm:$0xf] }
  0x1d   : > { %556 = vmatpush.bf16.msra.mxu0 %v1170_v8  ;;  %1282 = vmatpush.bf16.msra.mxu2 %v1170_v8  ;;  %v1035_v63 = vor.u32 %v1157_v58, %v1032_v59  ;;  %v1160_v3 = vld [vmem:[%s1429_s22 + $0xc4] sm:$0xf0]  ;;  %v1143_v4 = vld [vmem:[%s1429_s22 + $0x44] sm:$0xf]  ;;  %v976_v5 = vld [vmem:[%s1429_s22 + $0x48] sm:$0xf0]  ;;  %v975_v8 = vor.u32 %v1144_v1, %v974_v0 }
  0x1e   : > { %645 = vmatpush.bf16.msra.mxu1 %v1178_v9  ;;  %1290 = vmatpush.bf16.msra.mxu3 %v1178_v9  ;;  %v1159_v6 = vld [vmem:[%s1429_s22 + $0xc4] sm:$0xf]  ;;  %v1040_v7 = vld [vmem:[%s1429_s22 + $0xc8] sm:$0xf0]  ;;  %v1039_v9 = vor.u32 %v1160_v3, %v1038_v2  ;;  %v1145_v16 = vld [vmem:[%s1429_s22 + $0x54] sm:$0xf] }
  0x1f   : > { %v984_v17 = vld [vmem:[%s1429_s22 + $0x58] sm:$0xf0]  ;;  %v1161_v18 = vld [vmem:[%s1429_s22 + $0xd4] sm:$0xf]  ;;  %v1147_v28 = vld [vmem:[%s1429_s22 + $0x64] sm:$0xf] }
  0x20   : > { %v1048_v19 = vld [vmem:[%s1429_s22 + $0xd8] sm:$0xf0]  ;;  %v987_v22 = vor.u32 %v1145_v16, %v984_v17  ;;  %v992_v29 = vld [vmem:[%s1429_s22 + $0x68] sm:$0xf0]  ;;  %v1163_v30 = vld [vmem:[%s1429_s22 + $0xe4] sm:$0xf] }
  0x21   : > { %557 = vmatpush.bf16.msra.mxu0 %v1169_v10  ;;  %1283 = vmatpush.bf16.msra.mxu2 %v1169_v10  ;;  %v979_v10 = vor.u32 %v1143_v4, %v976_v5  ;;  %v1051_v23 = vor.u32 %v1161_v18, %v1048_v19  ;;  %v1056_v31 = vld [vmem:[%s1429_s22 + $0xe8] sm:$0xf0]  ;;  %v995_v34 = vor.u32 %v1147_v28, %v992_v29  ;;  %v1149_v40 = vld [vmem:[%s1429_s22 + $0x74] sm:$0xf]  ;;  %v1000_v41 = vld [vmem:[%s1429_s22 + $0x78] sm:$0xf0] }
  0x22   : > { %646 = vmatpush.bf16.msra.mxu1 %v1177_v11  ;;  %1291 = vmatpush.bf16.msra.mxu3 %v1177_v11  ;;  %v1043_v11 = vor.u32 %v1159_v6, %v1040_v7  ;;  %v1059_v35 = vor.u32 %v1163_v30, %v1056_v31  ;;  %v1165_v42 = vld [vmem:[%s1429_s22 + $0xf4] sm:$0xf]  ;;  %v1064_v43 = vld [vmem:[%s1429_s22 + $0xf8] sm:$0xf0]  ;;  %v1003_v46 = vor.u32 %v1149_v40, %v1000_v41 }
  0x23   : > { %v1067_v47 = vor.u32 %v1165_v42, %v1064_v43 }
  0x25   : > { %558 = vmatpush.bf16.msra.mxu0 %v1168_v12  ;;  %1284 = vmatpush.bf16.msra.mxu2 %v1168_v12  ;;  %v982_v12 = vld [vmem:[%s1429_s22 + $0x50] sm:$0xf] }
  0x26   : > { %647 = vmatpush.bf16.msra.mxu1 %v1176_v13  ;;  %1292 = vmatpush.bf16.msra.mxu3 %v1176_v13  ;;  %v1146_v13 = vld [vmem:[%s1429_s22 + $0x54] sm:$0xf0] }
  0x27   : > { %v983_v20 = vor.u32 %v1146_v13, %v982_v12 }
  0x29   : > { %559 = vmatpush.bf16.msra.mxu0 %v1167_v14  ;;  %1285 = vmatpush.bf16.msra.mxu2 %v1167_v14  ;;  %v1046_v14 = vld [vmem:[%s1429_s22 + $0xd0] sm:$0xf] }
  0x2a   : > { %648 = vmatpush.bf16.msra.mxu1 %v1175_v15  ;;  %1293 = vmatpush.bf16.msra.mxu3 %v1175_v15  ;;  %v1162_v15 = vld [vmem:[%s1429_s22 + $0xd4] sm:$0xf0] }
  0x2b   : > { %v1047_v21 = vor.u32 %v1162_v15, %v1046_v14 }
  0x2c   : > { %560 = vmatmul.bf16.vlgmr.msra.gmra.mxu0 %v943_v24  ;;  %600 = vmatmul.bf16.vlgmr.msra.gmra.mxu2 %v1007_v25  ;;  %v990_v24 = vld [vmem:[%s1429_s22 + $0x60] sm:$0xf]  ;;  %v1148_v25 = vld [vmem:[%s1429_s22 + $0x64] sm:$0xf0] }
  0x2d   : > { %649 = vmatmul.bf16.vlgmr.msra.gmra.mxu1 %v947_v26  ;;  %689 = vmatmul.bf16.vlgmr.msra.gmra.mxu3 %v1011_v27  ;;  %v1054_v26 = vld [vmem:[%s1429_s22 + $0xe0] sm:$0xf]  ;;  %v1164_v27 = vld [vmem:[%s1429_s22 + $0xe4] sm:$0xf0]  ;;  %v991_v32 = vor.u32 %v1148_v25, %v990_v24 }
  0x2e   : > { %v1055_v33 = vor.u32 %v1164_v27, %v1054_v26 }
  0x3c   : > { %565 = vmatmul.bf16.gmra.mxu0 %v951_v36  ;;  %605 = vmatmul.bf16.gmra.mxu2 %v1015_v37  ;;  %v998_v36 = vld [vmem:[%s1429_s22 + $0x70] sm:$0xf]  ;;  %v1150_v37 = vld [vmem:[%s1429_s22 + $0x74] sm:$0xf0] }
  0x3d   : > { %654 = vmatmul.bf16.gmra.mxu1 %v955_v38  ;;  %694 = vmatmul.bf16.gmra.mxu3 %v1019_v39  ;;  %v1062_v38 = vld [vmem:[%s1429_s22 + $0xf0] sm:$0xf]  ;;  %v1166_v39 = vld [vmem:[%s1429_s22 + $0xf4] sm:$0xf0]  ;;  %v999_v44 = vor.u32 %v1150_v37, %v998_v36 }
  0x3e   : > { %v1063_v45 = vor.u32 %v1166_v39, %v1062_v38 }
  0x4c   : > { %570 = vmatmul.bf16.gmra.mxu0 %v959_v48  ;;  %610 = vmatmul.bf16.gmra.mxu2 %v1023_v49  ;;  %v1507_v49 = vld [vmem:[%s1574_s2] ss:$0 sm:$0xff] }
  0x4d   : > { %659 = vmatmul.bf16.gmra.mxu1 %v963_v50  ;;  %699 = vmatmul.bf16.gmra.mxu3 %v1027_v51 }
  0x5c   : > { %575 = vmatmul.bf16.gmra.mxu0 %v967_v60  ;;  %615 = vmatmul.bf16.gmra.mxu2 %v1031_v61 }
  0x5d   : > { %664 = vmatmul.bf16.gmra.mxu1 %v971_v62  ;;  %704 = vmatmul.bf16.gmra.mxu3 %v1035_v63 }
  0x6c   : > { %580 = vmatmul.bf16.gmra.mxu0 %v975_v8  ;;  %620 = vmatmul.bf16.gmra.mxu2 %v1039_v9 }
  0x6d   : > { %669 = vmatmul.bf16.gmra.mxu1 %v979_v10  ;;  %709 = vmatmul.bf16.gmra.mxu3 %v1043_v11 }
  0x7c   : > { %585 = vmatmul.bf16.gmra.mxu0 %v983_v20  ;;  %625 = vmatmul.bf16.gmra.mxu2 %v1047_v21 }
  0x7d   : > { %674 = vmatmul.bf16.gmra.mxu1 %v987_v22  ;;  %714 = vmatmul.bf16.gmra.mxu3 %v1051_v23 }
  0x8c   : > { %590 = vmatmul.bf16.gmra.mxu0 %v991_v32  ;;  %630 = vmatmul.bf16.gmra.mxu2 %v1055_v33 }
  0x8d   : > { %679 = vmatmul.bf16.gmra.mxu1 %v995_v34  ;;  %719 = vmatmul.bf16.gmra.mxu3 %v1059_v35 }
  0x9c   : > { %595 = vmatmul.bf16.gmra.mxu0 %v999_v44  ;;  %635 = vmatmul.bf16.gmra.mxu2 %v1063_v45 }
  0x9d   : > { %684 = vmatmul.bf16.gmra.mxu1 %v1003_v46  ;;  %724 = vmatmul.bf16.gmra.mxu3 %v1067_v47 }
  0xa9   : > { %v561_v48 = vpop.f32.mrf.mxu0 }
  0xaa   : > { %v650_v50 = vpop.f32.mrf.mxu1  ;;  %v562_v51 = vadd.f32 %v1507_v49, %v561_v48 }
  0xac   : > { %v651_v55 = vadd.f32 %v650_v50, %v562_v51 }
  0xae   : > { %v730_v60 = vmax.f32 %v651_v55, 0.0 }
  0xaf   : > { %v601_v52 = vpop.f32.mrf.mxu2 }
  0xb0   : > { %v690_v53 = vpop.f32.mrf.mxu3  ;;  %v602_v58 = vadd.f32 %v1507_v49, %v601_v52 }
  0xb1   : > { %v563_v54 = vpop.f32.mrf.mxu0 }
  0xb2   : > { %v564_v56 = vadd.f32 %v1507_v49, %v563_v54  ;;  %v652_v57 = vpop.f32.mrf.mxu1  ;;  %v691_v63 = vadd.f32 %v690_v53, %v602_v58 }
  0xb4   : > { %v653_v59 = vadd.f32 %v652_v57, %v564_v56  ;;  %v746_v6 = vmax.f32 %v691_v63, 0.0 }
  0xb6   : > { %v731_v61 = vmax.f32 %v653_v59, 0.0 }
  0xb7   : > { %v603_v62 = vpop.f32.mrf.mxu2 }
  0xb8   : > { %v1186_v0 = vpack.c.bf16 %v731_v61, %v730_v60  ;;  %v604_v1 = vadd.f32 %v1507_v49, %v603_v62  ;;  %v692_v2 = vpop.f32.mrf.mxu3 }
  0xb9   : > { %v566_v3 = vpop.f32.mrf.mxu0 }
  0xba   : > { %1187 = vst [vmem:[%s1516_s8] sm:$0xff] %v1186_v0   ;;  %v693_v4 = vadd.f32 %v692_v2, %v604_v1  ;;  %v655_v5 = vpop.f32.mrf.mxu1  ;;  %v567_v9 = vadd.f32 %v1507_v49, %v566_v3 }
  0xbc   : > { %v747_v7 = vmax.f32 %v693_v4, 0.0  ;;  %v656_v13 = vadd.f32 %v655_v5, %v567_v9 }
  0xbe   : > { %v1226_v8 = vpack.c.bf16 %v747_v7, %v746_v6  ;;  %v732_v18 = vmax.f32 %v656_v13, 0.0 }
  0xbf   : > { %v606_v10 = vpop.f32.mrf.mxu2 }
  0xc0   : > { %1270 = vst [vmem:[%s1516_s8 + $0x40] sm:$0xff] %v1226_v8   ;;  %v695_v11 = vpop.f32.mrf.mxu3  ;;  %v607_v16 = vadd.f32 %v1507_v49, %v606_v10 }
  0xc1   : > { %v568_v12 = vpop.f32.mrf.mxu0 }
  0xc2   : > { %v569_v14 = vadd.f32 %v1507_v49, %v568_v12  ;;  %v657_v15 = vpop.f32.mrf.mxu1  ;;  %v696_v21 = vadd.f32 %v695_v11, %v607_v16 }
  0xc4   : > { %v658_v17 = vadd.f32 %v657_v15, %v569_v14  ;;  %v748_v28 = vmax.f32 %v696_v21, 0.0 }
  0xc6   : > { %v733_v19 = vmax.f32 %v658_v17, 0.0 }
  0xc7   : > { %v608_v20 = vpop.f32.mrf.mxu2 }
  0xc8   : > { %v1191_v22 = vpack.c.bf16 %v733_v19, %v732_v18  ;;  %v609_v23 = vadd.f32 %v1507_v49, %v608_v20  ;;  %v697_v24 = vpop.f32.mrf.mxu3 }
  0xc9   : > { %v571_v25 = vpop.f32.mrf.mxu0 }
  0xca   : > { %1263 = vst [vmem:[%s1516_s8 + $0x8] sm:$0xff] %v1191_v22   ;;  %v698_v26 = vadd.f32 %v697_v24, %v609_v23  ;;  %v660_v27 = vpop.f32.mrf.mxu1  ;;  %v572_v31 = vadd.f32 %v1507_v49, %v571_v25 }
  0xcc   : > { %v749_v29 = vmax.f32 %v698_v26, 0.0  ;;  %v661_v35 = vadd.f32 %v660_v27, %v572_v31 }
  0xce   : > { %v1231_v30 = vpack.c.bf16 %v749_v29, %v748_v28  ;;  %v734_v40 = vmax.f32 %v661_v35, 0.0 }
  0xcf   : > { %v611_v32 = vpop.f32.mrf.mxu2 }
  0xd0   : > { %1271 = vst [vmem:[%s1516_s8 + $0x48] sm:$0xff] %v1231_v30   ;;  %v700_v33 = vpop.f32.mrf.mxu3  ;;  %v612_v38 = vadd.f32 %v1507_v49, %v611_v32 }
  0xd1   : > { %v573_v34 = vpop.f32.mrf.mxu0 }
  0xd2   : > { %v574_v36 = vadd.f32 %v1507_v49, %v573_v34  ;;  %v662_v37 = vpop.f32.mrf.mxu1  ;;  %v701_v43 = vadd.f32 %v700_v33, %v612_v38 }
  0xd4   : > { %v663_v39 = vadd.f32 %v662_v37, %v574_v36  ;;  %v750_v51 = vmax.f32 %v701_v43, 0.0 }
  0xd6   : > { %v735_v41 = vmax.f32 %v663_v39, 0.0 }
  0xd7   : > { %v613_v42 = vpop.f32.mrf.mxu2 }
  0xd8   : > { %v1196_v44 = vpack.c.bf16 %v735_v41, %v734_v40  ;;  %v614_v45 = vadd.f32 %v1507_v49, %v613_v42  ;;  %v702_v46 = vpop.f32.mrf.mxu3 }
  0xd9   : > { %v576_v47 = vpop.f32.mrf.mxu0 }
  0xda   : > { %1264 = vst [vmem:[%s1516_s8 + $0x10] sm:$0xff] %v1196_v44   ;;  %v703_v48 = vadd.f32 %v702_v46, %v614_v45  ;;  %v665_v50 = vpop.f32.mrf.mxu1  ;;  %v577_v54 = vadd.f32 %v1507_v49, %v576_v47 }
  0xdc   : > { %v751_v52 = vmax.f32 %v703_v48, 0.0  ;;  %v666_v58 = vadd.f32 %v665_v50, %v577_v54 }
  0xde   : > { %v1236_v53 = vpack.c.bf16 %v751_v52, %v750_v51  ;;  %v736_v63 = vmax.f32 %v666_v58, 0.0 }
  0xdf   : > { %v616_v55 = vpop.f32.mrf.mxu2 }
  0xe0   : > { %1272 = vst [vmem:[%s1516_s8 + $0x50] sm:$0xff] %v1236_v53   ;;  %v705_v56 = vpop.f32.mrf.mxu3  ;;  %v617_v61 = vadd.f32 %v1507_v49, %v616_v55 }
  0xe1   : > { %v578_v57 = vpop.f32.mrf.mxu0 }
  0xe2   : > { %v579_v59 = vadd.f32 %v1507_v49, %v578_v57  ;;  %v667_v60 = vpop.f32.mrf.mxu1  ;;  %v706_v2 = vadd.f32 %v705_v56, %v617_v61 }
  0xe4   : > { %v668_v62 = vadd.f32 %v667_v60, %v579_v59  ;;  %v752_v9 = vmax.f32 %v706_v2, 0.0 }
  0xe6   : > { %v737_v0 = vmax.f32 %v668_v62, 0.0 }
  0xe7   : > { %v618_v1 = vpop.f32.mrf.mxu2 }
  0xe8   : > { %v1201_v3 = vpack.c.bf16 %v737_v0, %v736_v63  ;;  %v619_v4 = vadd.f32 %v1507_v49, %v618_v1  ;;  %v707_v5 = vpop.f32.mrf.mxu3 }
  0xe9   : > { %v581_v6 = vpop.f32.mrf.mxu0 }
  0xea   : > { %1265 = vst [vmem:[%s1516_s8 + $0x18] sm:$0xff] %v1201_v3   ;;  %v708_v7 = vadd.f32 %v707_v5, %v619_v4  ;;  %v670_v8 = vpop.f32.mrf.mxu1  ;;  %v582_v12 = vadd.f32 %v1507_v49, %v581_v6 }
  0xec   : > { %v753_v10 = vmax.f32 %v708_v7, 0.0  ;;  %v671_v16 = vadd.f32 %v670_v8, %v582_v12 }
  0xee   : > { %v1241_v11 = vpack.c.bf16 %v753_v10, %v752_v9  ;;  %v738_v21 = vmax.f32 %v671_v16, 0.0 }
  0xef   : > { %v621_v13 = vpop.f32.mrf.mxu2 }
  0xf0   : > { %1273 = vst [vmem:[%s1516_s8 + $0x58] sm:$0xff] %v1241_v11   ;;  %v710_v14 = vpop.f32.mrf.mxu3  ;;  %v622_v19 = vadd.f32 %v1507_v49, %v621_v13 }
  0xf1   : > { %v583_v15 = vpop.f32.mrf.mxu0 }
  0xf2   : > { %v584_v17 = vadd.f32 %v1507_v49, %v583_v15  ;;  %v672_v18 = vpop.f32.mrf.mxu1  ;;  %v711_v24 = vadd.f32 %v710_v14, %v622_v19 }
  0xf4   : > { %v673_v20 = vadd.f32 %v672_v18, %v584_v17  ;;  %v754_v31 = vmax.f32 %v711_v24, 0.0 }
  0xf6   : > { %v739_v22 = vmax.f32 %v673_v20, 0.0 }
  0xf7   : > { %v623_v23 = vpop.f32.mrf.mxu2 }
  0xf8   : > { %v1206_v25 = vpack.c.bf16 %v739_v22, %v738_v21  ;;  %v624_v26 = vadd.f32 %v1507_v49, %v623_v23  ;;  %v712_v27 = vpop.f32.mrf.mxu3 }
  0xf9   : > { %v586_v28 = vpop.f32.mrf.mxu0 }
  0xfa   : > { %1266 = vst [vmem:[%s1516_s8 + $0x20] sm:$0xff] %v1206_v25   ;;  %v713_v29 = vadd.f32 %v712_v27, %v624_v26  ;;  %v675_v30 = vpop.f32.mrf.mxu1  ;;  %v587_v34 = vadd.f32 %v1507_v49, %v586_v28 }
  0xfc   : > { %v755_v32 = vmax.f32 %v713_v29, 0.0  ;;  %v676_v38 = vadd.f32 %v675_v30, %v587_v34 }
  0xfe   : > { %v1246_v33 = vpack.c.bf16 %v755_v32, %v754_v31  ;;  %v740_v43 = vmax.f32 %v676_v38, 0.0 }
  0xff   : > { %v626_v35 = vpop.f32.mrf.mxu2 }
 0x100   : > { %1274 = vst [vmem:[%s1516_s8 + $0x60] sm:$0xff] %v1246_v33   ;;  %v715_v36 = vpop.f32.mrf.mxu3  ;;  %v627_v41 = vadd.f32 %v1507_v49, %v626_v35 }
 0x101   : > { %v588_v37 = vpop.f32.mrf.mxu0 }
 0x102   : > { %v589_v39 = vadd.f32 %v1507_v49, %v588_v37  ;;  %v677_v40 = vpop.f32.mrf.mxu1  ;;  %v716_v46 = vadd.f32 %v715_v36, %v627_v41 }
 0x104   : > { %v678_v42 = vadd.f32 %v677_v40, %v589_v39  ;;  %v756_v54 = vmax.f32 %v716_v46, 0.0 }
 0x106   : > { %v741_v44 = vmax.f32 %v678_v42, 0.0 }
 0x107   : > { %v628_v45 = vpop.f32.mrf.mxu2 }
 0x108   : > { %v1211_v47 = vpack.c.bf16 %v741_v44, %v740_v43  ;;  %v629_v48 = vadd.f32 %v1507_v49, %v628_v45  ;;  %v717_v50 = vpop.f32.mrf.mxu3 }
 0x109   : > { %v591_v51 = vpop.f32.mrf.mxu0 }
 0x10a   : > { %1267 = vst [vmem:[%s1516_s8 + $0x28] sm:$0xff] %v1211_v47   ;;  %v718_v52 = vadd.f32 %v717_v50, %v629_v48  ;;  %v680_v53 = vpop.f32.mrf.mxu1  ;;  %v592_v57 = vadd.f32 %v1507_v49, %v591_v51 }
 0x10c   : > { %v757_v55 = vmax.f32 %v718_v52, 0.0  ;;  %v681_v61 = vadd.f32 %v680_v53, %v592_v57 }
 0x10e   : > { %v1251_v56 = vpack.c.bf16 %v757_v55, %v756_v54  ;;  %v742_v2 = vmax.f32 %v681_v61, 0.0 }
 0x10f   : > { %v631_v58 = vpop.f32.mrf.mxu2 }
 0x110   : > { %1275 = vst [vmem:[%s1516_s8 + $0x68] sm:$0xff] %v1251_v56   ;;  %v720_v59 = vpop.f32.mrf.mxu3  ;;  %v632_v0 = vadd.f32 %v1507_v49, %v631_v58 }
 0x111   : > { %v593_v60 = vpop.f32.mrf.mxu0 }
 0x112   : > { %v594_v62 = vadd.f32 %v1507_v49, %v593_v60  ;;  %v682_v63 = vpop.f32.mrf.mxu1  ;;  %v721_v5 = vadd.f32 %v720_v59, %v632_v0 }
 0x114   : > { %v683_v1 = vadd.f32 %v682_v63, %v594_v62  ;;  %v758_v12 = vmax.f32 %v721_v5, 0.0 }
 0x116   : > { %v743_v3 = vmax.f32 %v683_v1, 0.0 }
 0x117   : > { %v633_v4 = vpop.f32.mrf.mxu2 }
 0x118   : > { %v1216_v6 = vpack.c.bf16 %v743_v3, %v742_v2  ;;  %v634_v7 = vadd.f32 %v1507_v49, %v633_v4  ;;  %v722_v8 = vpop.f32.mrf.mxu3 }
 0x119   : > { %v596_v9 = vpop.f32.mrf.mxu0 }
 0x11a   : > { %1268 = vst [vmem:[%s1516_s8 + $0x30] sm:$0xff] %v1216_v6   ;;  %v723_v10 = vadd.f32 %v722_v8, %v634_v7  ;;  %v685_v11 = vpop.f32.mrf.mxu1  ;;  %v597_v15 = vadd.f32 %v1507_v49, %v596_v9 }
 0x11c   : > { %v759_v13 = vmax.f32 %v723_v10, 0.0  ;;  %v686_v19 = vadd.f32 %v685_v11, %v597_v15 }
 0x11e   : > { %v1256_v14 = vpack.c.bf16 %v759_v13, %v758_v12  ;;  %v744_v24 = vmax.f32 %v686_v19, 0.0 }
 0x11f   : > { %v636_v16 = vpop.f32.mrf.mxu2 }
 0x120   : > { %1276 = vst [vmem:[%s1516_s8 + $0x70] sm:$0xff] %v1256_v14   ;;  %v725_v17 = vpop.f32.mrf.mxu3  ;;  %v637_v22 = vadd.f32 %v1507_v49, %v636_v16 }
 0x121   : > { %v598_v18 = vpop.f32.mrf.mxu0 }
 0x122   : > { %v599_v20 = vadd.f32 %v1507_v49, %v598_v18  ;;  %v687_v21 = vpop.f32.mrf.mxu1  ;;  %v726_v27 = vadd.f32 %v725_v17, %v637_v22 }
 0x124   : > { %v688_v23 = vadd.f32 %v687_v21, %v599_v20  ;;  %v760_v32 = vmax.f32 %v726_v27, 0.0 }
 0x126   : > { %v745_v25 = vmax.f32 %v688_v23, 0.0 }
 0x127   : > { %v638_v26 = vpop.f32.mrf.mxu2 }
 0x128   : > { %v1221_v28 = vpack.c.bf16 %v745_v25, %v744_v24  ;;  %v639_v29 = vadd.f32 %v1507_v49, %v638_v26  ;;  %v727_v30 = vpop.f32.mrf.mxu3 }
 0x12a   : > { %1269 = vst [vmem:[%s1516_s8 + $0x38] sm:$0xff] %v1221_v28   ;;  %v728_v31 = vadd.f32 %v727_v30, %v639_v29 }
 0x12c   : > { %v761_v33 = vmax.f32 %v728_v31, 0.0 }
 0x12e   : > { %v1261_v34 = vpack.c.bf16 %v761_v33, %v760_v32 }
 0x130   : > { %1277 = vst [vmem:[%s1516_s8 + $0x78] sm:$0xff] %v1261_v34  }
 0x131 PF: > { %s13_s14 = sadd.s32 1, %s1341_s14   ;;  %s1576_s12 = smov %s1337_s13 }
 0x132   : > { %p10_p5 = scmp.ge.s32.totalorder %s13_s14, 4   ;;  %s1577_s13 = smov %s1579_s15 }
 0x134   :  { %12 = sbr.rel (!%p10_p5) target bundleno = 2 (0x2), region = 68 }

// kernel: _lambda_.21
= control target key start
LH: loop header
LB: loop body
LE: loop exit
PB: predicated region body
PF: predicated region fallthrough
CT: control target
= control target key end

     0   :  { %s669_s12 = smov 0   ;;  %s671_s13 = smov 0   ;;  %s739_s0 = inlined_call_operand.vmem [shape: bf16[128,128], index: 0, kind: input, shape index: {}]   ;;  %s740_s1 = inlined_call_operand.vmem [shape: bf16[128,128], index: 1, kind: input, shape index: {}]   ;;  %s741_s2 = inlined_call_operand.vmem [shape: f32[1,128], index: 2, kind: input, shape index: {}]   ;;  %s742_s3 = inlined_call_operand.vmem [shape: bf16[128,128], index: 3, kind: output, shape index: {}]  }
   0x1   :  { %s673_s14 = smov 0  }
   0x2 LB: > { %s25_s15 = sadd.s32 1, %s643_s13  ;;  %p486_p0 = scmp.ge.s32.totalorder %s647_s14, 1  ;;  %s647_s14 = sphi %s673_s14, %s13_s14   ;;  %s643_s13 = sphi %s671_s13, %s744_s13   ;;  %s639_s12 = sphi %s669_s12, %s743_s12  }
   0x3   : > { %p27_p1 = scmp.ge.s32.totalorder %s25_s15, 2  ;;  %p169_p2 = scmp.lt.s32.totalorder %s647_s14, 3 }
   0x5   : > { %s746_s15 = smov (%p27_p1, %s25_s15), 0  ;;  %p170_p3 = pnand %p486_p0, %p169_p2 }
   0x6   : > { %s487_s24 = sshll.u32 (!%p170_p3), %s639_s12, 3 }
   0x7   : > { %173 = sbr.rel (%p170_p3) target bundleno = 193 (0xc1), region = 32  ;;  %p204_p4 = scmp.lt.s32.totalorder (!%p170_p3), %s487_s24, 15 }
   0xc   : > { %v552_v0 = vld [vmem:[%s740_s1 + $0x38] sm:$0xff]  ;;  %v551_v1 = vld [vmem:[%s740_s1 + $0x30] sm:$0xff]  ;;  %v550_v2 = vld [vmem:[%s740_s1 + $0x28] sm:$0xff]  ;;  %s748_s24 = smov (!%p204_p4, %s487_s24), 15 }
   0xd   : > { %325 = vmatpush.bf16.msra.mxu0 %v552_v0  ;;  %576 = vmatpush.bf16.msra.mxu1 %v552_v0  ;;  %v549_v3 = vld [vmem:[%s740_s1 + $0x20] sm:$0xff]  ;;  %v548_v4 = vld [vmem:[%s740_s1 + $0x18] sm:$0xff]  ;;  %v547_v5 = vld [vmem:[%s740_s1 + $0x10] sm:$0xff]  ;;  %s488_s4 = sshll.u32 %s748_s24, 2 }
   0xe   : > { %577 = vmatpush.bf16.msra.mxu2 %v552_v0  ;;  %578 = vmatpush.bf16.msra.mxu3 %v552_v0  ;;  %v546_v6 = vld [vmem:[%s740_s1 + $0x8] sm:$0xff]  ;;  %v545_v7 = vld [vmem:[%s740_s1] sm:$0xff]  ;;  %s207_s9 = scalar_lea.vmem %s739_s0, %s488_s4  ;;  %s223_s17 = scalar_lea.vmem %s742_s3, %s488_s4 }
   0xf   : > { %v541_v8 = vld [vmem:[%s207_s9] sm:$0xff]  ;;  %v542_v9 = vld [vmem:[%s207_s9 + $0x8] sm:$0xff]  ;;  %v543_v10 = vld [vmem:[%s207_s9 + $0x10] sm:$0xff] }
  0x10   : > { %v544_v11 = vld [vmem:[%s207_s9 + $0x18] sm:$0xff]  ;;  %v624_v14 = vld [vmem:[%s741_s2] ss:$0 sm:$0xff] }
  0x11   : > { %326 = vmatpush.bf16.msra.mxu0 %v551_v1  ;;  %579 = vmatpush.bf16.msra.mxu1 %v551_v1 }
  0x12   : > { %580 = vmatpush.bf16.msra.mxu2 %v551_v1  ;;  %581 = vmatpush.bf16.msra.mxu3 %v551_v1 }
  0x15   : > { %327 = vmatpush.bf16.msra.mxu0 %v550_v2  ;;  %582 = vmatpush.bf16.msra.mxu1 %v550_v2 }
  0x16   : > { %583 = vmatpush.bf16.msra.mxu2 %v550_v2  ;;  %584 = vmatpush.bf16.msra.mxu3 %v550_v2 }
  0x19   : > { %328 = vmatpush.bf16.msra.mxu0 %v549_v3  ;;  %585 = vmatpush.bf16.msra.mxu1 %v549_v3 }
  0x1a   : > { %586 = vmatpush.bf16.msra.mxu2 %v549_v3  ;;  %587 = vmatpush.bf16.msra.mxu3 %v549_v3 }
  0x1d   : > { %329 = vmatpush.bf16.msra.mxu0 %v548_v4  ;;  %588 = vmatpush.bf16.msra.mxu1 %v548_v4 }
  0x1e   : > { %589 = vmatpush.bf16.msra.mxu2 %v548_v4  ;;  %590 = vmatpush.bf16.msra.mxu3 %v548_v4 }
  0x21   : > { %330 = vmatpush.bf16.msra.mxu0 %v547_v5  ;;  %591 = vmatpush.bf16.msra.mxu1 %v547_v5 }
  0x22   : > { %592 = vmatpush.bf16.msra.mxu2 %v547_v5  ;;  %593 = vmatpush.bf16.msra.mxu3 %v547_v5 }
  0x25   : > { %331 = vmatpush.bf16.msra.mxu0 %v546_v6  ;;  %594 = vmatpush.bf16.msra.mxu1 %v546_v6 }
  0x26   : > { %595 = vmatpush.bf16.msra.mxu2 %v546_v6  ;;  %596 = vmatpush.bf16.msra.mxu3 %v546_v6 }
  0x29   : > { %332 = vmatpush.bf16.msra.mxu0 %v545_v7  ;;  %597 = vmatpush.bf16.msra.mxu1 %v545_v7 }
  0x2a   : > { %598 = vmatpush.bf16.msra.mxu2 %v545_v7  ;;  %599 = vmatpush.bf16.msra.mxu3 %v545_v7 }
  0x2c   : > { %333 = vmatmul.bf16.vlgmr.msra.gmra.mxu0 %v541_v8  ;;  %338 = vmatmul.bf16.vlgmr.msra.gmra.mxu1 %v542_v9 }
  0x2d   : > { %343 = vmatmul.bf16.vlgmr.msra.gmra.mxu2 %v543_v10  ;;  %348 = vmatmul.bf16.vlgmr.msra.gmra.mxu3 %v544_v11 }
  0xa9   : > { %v334_v12 = vpop.f32.mrf.mxu0  ;;  %v339_v13 = vpop.f32.mrf.mxu1 }
  0xaa   : > { %v335_v15 = vadd.f32 %v624_v14, %v334_v12  ;;  %v340_v16 = vadd.f32 %v624_v14, %v339_v13 }
  0xac   : > { %v354_v23 = vmax.f32 %v335_v15, 0.0  ;;  %v356_v24 = vmax.f32 %v340_v16, 0.0 }
  0xb0   : > { %v344_v17 = vpop.f32.mrf.mxu2  ;;  %v349_v18 = vpop.f32.mrf.mxu3 }
  0xb1   : > { %v336_v19 = vpop.f32.mrf.mxu0  ;;  %v341_v20 = vpop.f32.mrf.mxu1  ;;  %v345_v29 = vadd.f32 %v624_v14, %v344_v17  ;;  %v350_v30 = vadd.f32 %v624_v14, %v349_v18 }
  0xb2   : > { %v337_v21 = vadd.f32 %v624_v14, %v336_v19  ;;  %v342_v22 = vadd.f32 %v624_v14, %v341_v20 }
  0xb3   : > { %v358_v35 = vmax.f32 %v345_v29, 0.0  ;;  %v360_v36 = vmax.f32 %v350_v30, 0.0 }
  0xb4   : > { %v355_v25 = vmax.f32 %v337_v21, 0.0  ;;  %v357_v26 = vmax.f32 %v342_v22, 0.0 }
  0xb6   : > { %v556_v27 = vpack.c.bf16 %v355_v25, %v354_v23  ;;  %v561_v28 = vpack.c.bf16 %v357_v26, %v356_v24 }
  0xb8   : > { %557 = vst [vmem:[%s223_s17] sm:$0xff] %v556_v27   ;;  %v346_v31 = vpop.f32.mrf.mxu2  ;;  %v351_v32 = vpop.f32.mrf.mxu3 }
  0xb9   : > { %573 = vst [vmem:[%s223_s17 + $0x8] sm:$0xff] %v561_v28   ;;  %v347_v33 = vadd.f32 %v624_v14, %v346_v31  ;;  %v352_v34 = vadd.f32 %v624_v14, %v351_v32 }
  0xbb   : > { %v359_v37 = vmax.f32 %v347_v33, 0.0  ;;  %v361_v38 = vmax.f32 %v352_v34, 0.0 }
  0xbd   : > { %v566_v39 = vpack.c.bf16 %v359_v37, %v358_v35  ;;  %v571_v40 = vpack.c.bf16 %v361_v38, %v360_v36 }
  0xbf   : > { %574 = vst [vmem:[%s223_s17 + $0x10] sm:$0xff] %v566_v39  }
  0xc0   : > { %575 = vst [vmem:[%s223_s17 + $0x18] sm:$0xff] %v571_v40  }
  0xc1 PF: > { %s13_s14 = sadd.s32 1, %s647_s14   ;;  %s743_s12 = smov %s643_s13 }
  0xc2   : > { %p10_p5 = scmp.ge.s32.totalorder %s13_s14, 4   ;;  %s744_s13 = smov %s746_s15 }
  0xc4   :  { %12 = sbr.rel (!%p10_p5) target bundleno = 2 (0x2), region = 68 }

// kernel: _lambda_.22
= control target key start
LH: loop header
LB: loop body
LE: loop exit
PB: predicated region body
PF: predicated region fallthrough
CT: control target
= control target key end

     0   :  { %s794_s15 = smov 0   ;;  %s796_s16 = smov 0   ;;  %s865_s0 = inlined_call_operand.vmem [shape: bf16[128,128], index: 0, kind: input, shape index: {}]   ;;  %s866_s1 = inlined_call_operand.vmem [shape: bf16[128,128], index: 1, kind: input, shape index: {}]   ;;  %s867_s2 = inlined_call_operand.vmem [shape: f32[1,128], index: 2, kind: input, shape index: {}]   ;;  %s868_s3 = inlined_call_operand.vmem [shape: bf16[128,128], index: 3, kind: input, shape index: {}]   ;;  %s869_s4 = inlined_call_operand.vmem [shape: bf16[128,128], index: 4, kind: output, shape index: {}]  }
   0x1   :  { %s798_s17 = smov 0  }
   0x2 LB: > { %s26_s18 = sadd.s32 1, %s763_s16  ;;  %p585_p0 = scmp.ge.s32.totalorder %s767_s17, 1  ;;  %s767_s17 = sphi %s798_s17, %s14_s17   ;;  %s763_s16 = sphi %s796_s16, %s871_s16   ;;  %s759_s15 = sphi %s794_s15, %s870_s15  }
   0x3   : > { %p28_p1 = scmp.ge.s32.totalorder %s26_s18, 2  ;;  %p210_p2 = scmp.lt.s32.totalorder %s767_s17, 3 }
   0x5   : > { %s873_s18 = smov (%p28_p1, %s26_s18), 0  ;;  %p211_p3 = pnand %p585_p0, %p210_p2 }
   0x6   : > { %s586_s27 = sshll.u32 (!%p211_p3), %s759_s15, 3 }
   0x7   : > { %214 = sbr.rel (%p211_p3) target bundleno = 195 (0xc3), region = 36  ;;  %p255_p4 = scmp.lt.s32.totalorder (!%p211_p3), %s586_s27, 15 }
   0xc   : > { %v653_v0 = vld [vmem:[%s866_s1 + $0x38] sm:$0xff]  ;;  %v652_v1 = vld [vmem:[%s866_s1 + $0x30] sm:$0xff]  ;;  %v651_v2 = vld [vmem:[%s866_s1 + $0x28] sm:$0xff]  ;;  %s875_s27 = smov (!%p255_p4, %s586_s27), 15 }
   0xd   : > { %385 = vmatpush.bf16.msra.mxu0 %v653_v0  ;;  %696 = vmatpush.bf16.msra.mxu1 %v653_v0  ;;  %v650_v3 = vld [vmem:[%s866_s1 + $0x20] sm:$0xff]  ;;  %v649_v4 = vld [vmem:[%s866_s1 + $0x18] sm:$0xff]  ;;  %v648_v5 = vld [vmem:[%s866_s1 + $0x10] sm:$0xff]  ;;  %s836_s8 = sshll.u32 %s875_s27, 2 }
   0xe   : > { %697 = vmatpush.bf16.msra.mxu2 %v653_v0  ;;  %698 = vmatpush.bf16.msra.mxu3 %v653_v0  ;;  %v647_v6 = vld [vmem:[%s866_s1 + $0x8] sm:$0xff]  ;;  %v646_v7 = vld [vmem:[%s866_s1] sm:$0xff]  ;;  %s258_s13 = scalar_lea.vmem %s865_s0, %s836_s8  ;;  %s274_s19 = scalar_lea.vmem %s868_s3, %s836_s8 }
   0xf   : > { %v642_v8 = vld [vmem:[%s258_s13] sm:$0xff]  ;;  %v643_v9 = vld [vmem:[%s258_s13 + $0x8] sm:$0xff]  ;;  %v644_v10 = vld [vmem:[%s258_s13 + $0x10] sm:$0xff]  ;;  %s283_s24 = scalar_lea.vmem %s869_s4, %s836_s8 }
  0x10   : > { %v645_v11 = vld [vmem:[%s258_s13 + $0x18] sm:$0xff]  ;;  %v744_v14 = vld [vmem:[%s867_s2] ss:$0 sm:$0xff]  ;;  %v690_v16 = vld [vmem:[%s274_s19 + $0x8] sm:$0xff]  }
  0x11   : > { %386 = vmatpush.bf16.msra.mxu0 %v652_v1  ;;  %699 = vmatpush.bf16.msra.mxu1 %v652_v1  ;;  %v655_v15 = vld [vmem:[%s274_s19] sm:$0xff]   ;;  %v660_v20 = vunpack.c.l.bf16 %v690_v16  ;;  %v661_v24 = vunpack.c.h.bf16 %v690_v16  ;;  %v691_v29 = vld [vmem:[%s274_s19 + $0x10] sm:$0xff]   ;;  %v692_v30 = vld [vmem:[%s274_s19 + $0x18] sm:$0xff]  }
  0x12   : > { %700 = vmatpush.bf16.msra.mxu2 %v652_v1  ;;  %701 = vmatpush.bf16.msra.mxu3 %v652_v1  ;;  %v656_v18 = vunpack.c.l.bf16 %v655_v15  ;;  %v657_v23 = vunpack.c.h.bf16 %v655_v15  ;;  %v664_v36 = vunpack.c.l.bf16 %v691_v29  ;;  %v668_v38 = vunpack.c.l.bf16 %v692_v30 }
  0x13   : > { %v665_v43 = vunpack.c.h.bf16 %v691_v29  ;;  %v669_v44 = vunpack.c.h.bf16 %v692_v30 }
  0x15   : > { %387 = vmatpush.bf16.msra.mxu0 %v651_v2  ;;  %702 = vmatpush.bf16.msra.mxu1 %v651_v2 }
  0x16   : > { %703 = vmatpush.bf16.msra.mxu2 %v651_v2  ;;  %704 = vmatpush.bf16.msra.mxu3 %v651_v2 }
  0x19   : > { %388 = vmatpush.bf16.msra.mxu0 %v650_v3  ;;  %705 = vmatpush.bf16.msra.mxu1 %v650_v3 }
  0x1a   : > { %706 = vmatpush.bf16.msra.mxu2 %v650_v3  ;;  %707 = vmatpush.bf16.msra.mxu3 %v650_v3 }
  0x1d   : > { %389 = vmatpush.bf16.msra.mxu0 %v649_v4  ;;  %708 = vmatpush.bf16.msra.mxu1 %v649_v4 }
  0x1e   : > { %709 = vmatpush.bf16.msra.mxu2 %v649_v4  ;;  %710 = vmatpush.bf16.msra.mxu3 %v649_v4 }
  0x21   : > { %390 = vmatpush.bf16.msra.mxu0 %v648_v5  ;;  %711 = vmatpush.bf16.msra.mxu1 %v648_v5 }
  0x22   : > { %712 = vmatpush.bf16.msra.mxu2 %v648_v5  ;;  %713 = vmatpush.bf16.msra.mxu3 %v648_v5 }
  0x25   : > { %391 = vmatpush.bf16.msra.mxu0 %v647_v6  ;;  %714 = vmatpush.bf16.msra.mxu1 %v647_v6 }
  0x26   : > { %715 = vmatpush.bf16.msra.mxu2 %v647_v6  ;;  %716 = vmatpush.bf16.msra.mxu3 %v647_v6 }
  0x29   : > { %392 = vmatpush.bf16.msra.mxu0 %v646_v7  ;;  %717 = vmatpush.bf16.msra.mxu1 %v646_v7 }
  0x2a   : > { %718 = vmatpush.bf16.msra.mxu2 %v646_v7  ;;  %719 = vmatpush.bf16.msra.mxu3 %v646_v7 }
  0x2c   : > { %393 = vmatmul.bf16.vlgmr.msra.gmra.mxu0 %v642_v8  ;;  %398 = vmatmul.bf16.vlgmr.msra.gmra.mxu1 %v643_v9 }
  0x2d   : > { %403 = vmatmul.bf16.vlgmr.msra.gmra.mxu2 %v644_v10  ;;  %408 = vmatmul.bf16.vlgmr.msra.gmra.mxu3 %v645_v11 }
  0xa9   : > { %v394_v12 = vpop.f32.mrf.mxu0  ;;  %v399_v13 = vpop.f32.mrf.mxu1 }
  0xaa   : > { %v395_v17 = vadd.f32 %v744_v14, %v394_v12  ;;  %v400_v19 = vadd.f32 %v744_v14, %v399_v13 }
  0xac   : > { %v430_v27 = vadd.f32 %v656_v18, %v395_v17  ;;  %v432_v28 = vadd.f32 %v660_v20, %v400_v19 }
  0xae   : > { %v438_v39 = vmax.f32 %v430_v27, 0.0  ;;  %v440_v40 = vmax.f32 %v432_v28, 0.0 }
  0xb0   : > { %v404_v21 = vpop.f32.mrf.mxu2  ;;  %v409_v22 = vpop.f32.mrf.mxu3 }
  0xb1   : > { %v396_v25 = vpop.f32.mrf.mxu0  ;;  %v401_v26 = vpop.f32.mrf.mxu1  ;;  %v405_v35 = vadd.f32 %v744_v14, %v404_v21  ;;  %v410_v37 = vadd.f32 %v744_v14, %v409_v22 }
  0xb2   : > { %v397_v31 = vadd.f32 %v744_v14, %v396_v25  ;;  %v402_v32 = vadd.f32 %v744_v14, %v401_v26 }
  0xb3   : > { %v434_v49 = vadd.f32 %v664_v36, %v405_v35  ;;  %v436_v50 = vadd.f32 %v668_v38, %v410_v37 }
  0xb4   : > { %v431_v33 = vadd.f32 %v657_v23, %v397_v31  ;;  %v433_v34 = vadd.f32 %v661_v24, %v402_v32 }
  0xb5   : > { %v442_v55 = vmax.f32 %v434_v49, 0.0  ;;  %v444_v56 = vmax.f32 %v436_v50, 0.0 }
  0xb6   : > { %v439_v41 = vmax.f32 %v431_v33, 0.0  ;;  %v441_v42 = vmax.f32 %v433_v34, 0.0 }
  0xb8   : > { %v673_v45 = vpack.c.bf16 %v439_v41, %v438_v39  ;;  %v678_v46 = vpack.c.bf16 %v441_v42, %v440_v40  ;;  %v406_v47 = vpop.f32.mrf.mxu2  ;;  %v411_v48 = vpop.f32.mrf.mxu3 }
  0xb9   : > { %v407_v51 = vadd.f32 %v744_v14, %v406_v47  ;;  %v412_v52 = vadd.f32 %v744_v14, %v411_v48 }
  0xba   : > { %674 = vst [vmem:[%s283_s24] sm:$0xff] %v673_v45  }
  0xbb   : > { %693 = vst [vmem:[%s283_s24 + $0x8] sm:$0xff] %v678_v46   ;;  %v435_v53 = vadd.f32 %v665_v43, %v407_v51  ;;  %v437_v54 = vadd.f32 %v669_v44, %v412_v52 }
  0xbd   : > { %v443_v57 = vmax.f32 %v435_v53, 0.0  ;;  %v445_v58 = vmax.f32 %v437_v54, 0.0 }
  0xbf   : > { %v683_v59 = vpack.c.bf16 %v443_v57, %v442_v55  ;;  %v688_v60 = vpack.c.bf16 %v445_v58, %v444_v56 }
  0xc1   : > { %694 = vst [vmem:[%s283_s24 + $0x10] sm:$0xff] %v683_v59  }
  0xc2   : > { %695 = vst [vmem:[%s283_s24 + $0x18] sm:$0xff] %v688_v60  }
  0xc3 PF: > { %s14_s17 = sadd.s32 1, %s767_s17   ;;  %s870_s15 = smov %s763_s16 }
  0xc4   : > { %p11_p5 = scmp.ge.s32.totalorder %s14_s17, 4   ;;  %s871_s16 = smov %s873_s18 }
  0xc6   :  { %13 = sbr.rel (!%p11_p5) target bundleno = 2 (0x2), region = 75 }

// kernel: _lambda_.26
= control target key start
LH: loop header
LB: loop body
LE: loop exit
PB: predicated region body
PF: predicated region fallthrough
CT: control target
= control target key end

     0   :  { %s262_s1 = inlined_call_operand.vmem [shape: bf16[128,128], index: 1, kind: input, shape index: {}]   ;;  %s263_s2 = inlined_call_operand.vmem [shape: f32[1,128], index: 2, kind: input, shape index: {}]   ;;  %s264_s0 = inlined_call_operand.vmem [shape: bf16[32,128], index: 0, kind: input, shape index: {}]   ;;  %s265_s3 = inlined_call_operand.vmem [shape: bf16[32,128], index: 3, kind: output, shape index: {}]  }
   0x1   :  { %v182_v0 = vld [vmem:[%s262_s1 + $0x38] sm:$0xff]  ;;  %v181_v1 = vld [vmem:[%s262_s1 + $0x30] sm:$0xff]  ;;  %v180_v2 = vld [vmem:[%s262_s1 + $0x28] sm:$0xff] }
   0x2   :  { %98 = vmatpush.bf16.msra.mxu0 %v182_v0  ;;  %194 = vmatpush.bf16.msra.mxu1 %v182_v0  ;;  %v179_v3 = vld [vmem:[%s262_s1 + $0x20] sm:$0xff]  ;;  %v178_v4 = vld [vmem:[%s262_s1 + $0x18] sm:$0xff]  ;;  %v177_v5 = vld [vmem:[%s262_s1 + $0x10] sm:$0xff] }
   0x3   :  { %v176_v6 = vld [vmem:[%s262_s1 + $0x8] sm:$0xff]  ;;  %v175_v7 = vld [vmem:[%s262_s1] sm:$0xff] }
   0x4   :  { %v173_v8 = vld [vmem:[%s264_s0] sm:$0xff]  ;;  %v174_v9 = vld [vmem:[%s264_s0 + $0x8] sm:$0xff] }
   0x5   :  { %v202_v12 = vld [vmem:[%s263_s2] ss:$0 sm:$0xff] }
   0x6   :  { %99 = vmatpush.bf16.msra.mxu0 %v181_v1  ;;  %195 = vmatpush.bf16.msra.mxu1 %v181_v1 }
   0xa   :  { %100 = vmatpush.bf16.msra.mxu0 %v180_v2  ;;  %196 = vmatpush.bf16.msra.mxu1 %v180_v2 }
   0xe   :  { %101 = vmatpush.bf16.msra.mxu0 %v179_v3  ;;  %197 = vmatpush.bf16.msra.mxu1 %v179_v3 }
  0x12   :  { %102 = vmatpush.bf16.msra.mxu0 %v178_v4  ;;  %198 = vmatpush.bf16.msra.mxu1 %v178_v4 }
  0x16   :  { %103 = vmatpush.bf16.msra.mxu0 %v177_v5  ;;  %199 = vmatpush.bf16.msra.mxu1 %v177_v5 }
  0x1a   :  { %104 = vmatpush.bf16.msra.mxu0 %v176_v6  ;;  %200 = vmatpush.bf16.msra.mxu1 %v176_v6 }
  0x1e   :  { %105 = vmatpush.bf16.msra.mxu0 %v175_v7  ;;  %201 = vmatpush.bf16.msra.mxu1 %v175_v7 }
  0x21   :  { %106 = vmatmul.bf16.vlgmr.msra.gmra.mxu0 %v173_v8  ;;  %111 = vmatmul.bf16.vlgmr.msra.gmra.mxu1 %v174_v9 }
  0x9e   :  { %v107_v10 = vpop.f32.mrf.mxu0  ;;  %v112_v11 = vpop.f32.mrf.mxu1 }
  0x9f   :  { %v108_v13 = vadd.f32 %v202_v12, %v107_v10  ;;  %v113_v14 = vadd.f32 %v202_v12, %v112_v11 }
  0xa1   :  { %v117_v19 = vmax.f32 %v108_v13, 0.0  ;;  %v119_v20 = vmax.f32 %v113_v14, 0.0 }
  0xa6   :  { %v109_v15 = vpop.f32.mrf.mxu0  ;;  %v114_v16 = vpop.f32.mrf.mxu1 }
  0xa7   :  { %v110_v17 = vadd.f32 %v202_v12, %v109_v15  ;;  %v115_v18 = vadd.f32 %v202_v12, %v114_v16 }
  0xa9   :  { %v118_v21 = vmax.f32 %v110_v17, 0.0  ;;  %v120_v22 = vmax.f32 %v115_v18, 0.0 }
  0xab   :  { %v186_v23 = vpack.c.bf16 %v118_v21, %v117_v19  ;;  %v191_v24 = vpack.c.bf16 %v120_v22, %v119_v20 }
  0xad   :  { %187 = vst [vmem:[%s265_s3] sm:$0xff] %v186_v23  }
  0xae   :  { %193 = vst [vmem:[%s265_s3 + $0x8] sm:$0xff] %v191_v24  }

// kernel: _lambda_.25
= control target key start
LH: loop header
LB: loop body
LE: loop exit
PB: predicated region body
PF: predicated region fallthrough
CT: control target
= control target key end

     0   :  { %s258_s1 = inlined_call_operand.vmem [shape: bf16[128,128], index: 1, kind: input, shape index: {}]   ;;  %s259_s2 = inlined_call_operand.vmem [shape: f32[1,128], index: 2, kind: input, shape index: {}]   ;;  %s260_s0 = inlined_call_operand.vmem [shape: bf16[32,128], index: 0, kind: input, shape index: {}]   ;;  %s261_s3 = inlined_call_operand.vmem [shape: bf16[32,128], index: 3, kind: output, shape index: {}]  }
   0x1   :  { %v178_v0 = vld [vmem:[%s258_s1 + $0x38] sm:$0xff]  ;;  %v177_v1 = vld [vmem:[%s258_s1 + $0x30] sm:$0xff]  ;;  %v176_v2 = vld [vmem:[%s258_s1 + $0x28] sm:$0xff] }
   0x2   :  { %98 = vmatpush.bf16.msra.mxu0 %v178_v0  ;;  %190 = vmatpush.bf16.msra.mxu1 %v178_v0  ;;  %v175_v3 = vld [vmem:[%s258_s1 + $0x20] sm:$0xff]  ;;  %v174_v4 = vld [vmem:[%s258_s1 + $0x18] sm:$0xff]  ;;  %v173_v5 = vld [vmem:[%s258_s1 + $0x10] sm:$0xff] }
   0x3   :  { %v172_v6 = vld [vmem:[%s258_s1 + $0x8] sm:$0xff]  ;;  %v171_v7 = vld [vmem:[%s258_s1] sm:$0xff] }
   0x4   :  { %v169_v8 = vld [vmem:[%s260_s0] sm:$0xff]  ;;  %v170_v9 = vld [vmem:[%s260_s0 + $0x8] sm:$0xff] }
   0x5   :  { %v198_v12 = vld [vmem:[%s259_s2] ss:$0 sm:$0xff] }
   0x6   :  { %99 = vmatpush.bf16.msra.mxu0 %v177_v1  ;;  %191 = vmatpush.bf16.msra.mxu1 %v177_v1 }
   0xa   :  { %100 = vmatpush.bf16.msra.mxu0 %v176_v2  ;;  %192 = vmatpush.bf16.msra.mxu1 %v176_v2 }
   0xe   :  { %101 = vmatpush.bf16.msra.mxu0 %v175_v3  ;;  %193 = vmatpush.bf16.msra.mxu1 %v175_v3 }
  0x12   :  { %102 = vmatpush.bf16.msra.mxu0 %v174_v4  ;;  %194 = vmatpush.bf16.msra.mxu1 %v174_v4 }
  0x16   :  { %103 = vmatpush.bf16.msra.mxu0 %v173_v5  ;;  %195 = vmatpush.bf16.msra.mxu1 %v173_v5 }
  0x1a   :  { %104 = vmatpush.bf16.msra.mxu0 %v172_v6  ;;  %196 = vmatpush.bf16.msra.mxu1 %v172_v6 }
  0x1e   :  { %105 = vmatpush.bf16.msra.mxu0 %v171_v7  ;;  %197 = vmatpush.bf16.msra.mxu1 %v171_v7 }
  0x21   :  { %106 = vmatmul.bf16.vlgmr.msra.gmra.mxu0 %v169_v8  ;;  %111 = vmatmul.bf16.vlgmr.msra.gmra.mxu1 %v170_v9 }
  0x9e   :  { %v107_v10 = vpop.f32.mrf.mxu0  ;;  %v112_v11 = vpop.f32.mrf.mxu1 }
  0x9f   :  { %v108_v15 = vadd.f32 %v198_v12, %v107_v10  ;;  %v113_v16 = vadd.f32 %v198_v12, %v112_v11 }
  0xa6   :  { %v109_v13 = vpop.f32.mrf.mxu0  ;;  %v114_v14 = vpop.f32.mrf.mxu1 }
  0xa7   :  { %v110_v17 = vadd.f32 %v198_v12, %v109_v13  ;;  %v115_v18 = vadd.f32 %v198_v12, %v114_v14 }
  0xa9   :  { %v182_v19 = vpack.c.bf16 %v110_v17, %v108_v15  ;;  %v187_v20 = vpack.c.bf16 %v115_v18, %v113_v16 }
  0xab   :  { %183 = vst [vmem:[%s261_s3] sm:$0xff] %v182_v19  }
  0xac   :  { %189 = vst [vmem:[%s261_s3 + $0x8] sm:$0xff] %v187_v20  }

// kernel: _lambda_.27
= control target key start
LH: loop header
LB: loop body
LE: loop exit
PB: predicated region body
PF: predicated region fallthrough
CT: control target
= control target key end

     0   :  { %s488_s1 = inlined_call_operand.vmem [shape: bf16[256,128], index: 1, kind: input, shape index: {}]   ;;  %s489_s2 = inlined_call_operand.vmem [shape: f32[1,128], index: 2, kind: input, shape index: {}]   ;;  %s490_s0 = inlined_call_operand.vmem [shape: bf16[32,256], index: 0, kind: input, shape index: {}]   ;;  %s491_s3 = inlined_call_operand.vmem [shape: bf16[32,128], index: 3, kind: input, shape index: {}]   ;;  %s492_s4 = inlined_call_operand.vmem [shape: bf16[32,128], index: 4, kind: output, shape index: {}]  }
   0x1   :  { %v330_v0 = vld [vmem:[%s488_s1 + $0x38] sm:$0xff]  ;;  %v329_v2 = vld [vmem:[%s488_s1 + $0x30] sm:$0xff]  ;;  %v328_v4 = vld [vmem:[%s488_s1 + $0x28] sm:$0xff] }
   0x2   :  { %v338_v1 = vld [vmem:[%s488_s1 + $0x78] sm:$0xff]  ;;  %173 = vmatpush.bf16.msra.mxu0 %v330_v0  ;;  %359 = vmatpush.bf16.msra.mxu2 %v330_v0  ;;  %v337_v3 = vld [vmem:[%s488_s1 + $0x70] sm:$0xff]  ;;  %v336_v5 = vld [vmem:[%s488_s1 + $0x68] sm:$0xff] }
   0x3   :  { %192 = vmatpush.bf16.msra.mxu1 %v338_v1  ;;  %367 = vmatpush.bf16.msra.mxu3 %v338_v1  ;;  %v327_v6 = vld [vmem:[%s488_s1 + $0x20] sm:$0xff]  ;;  %v326_v8 = vld [vmem:[%s488_s1 + $0x18] sm:$0xff]  ;;  %v325_v10 = vld [vmem:[%s488_s1 + $0x10] sm:$0xff] }
   0x4   :  { %v335_v7 = vld [vmem:[%s488_s1 + $0x60] sm:$0xff]  ;;  %v334_v9 = vld [vmem:[%s488_s1 + $0x58] sm:$0xff]  ;;  %v333_v11 = vld [vmem:[%s488_s1 + $0x50] sm:$0xff] }
   0x5   :  { %v324_v12 = vld [vmem:[%s488_s1 + $0x8] sm:$0xff]  ;;  %v323_v14 = vld [vmem:[%s488_s1] sm:$0xff]  ;;  %v249_v18 = vld [vmem:[%s490_s0 + $0x10] sm:$0xf] }
   0x6   :  { %174 = vmatpush.bf16.msra.mxu0 %v329_v2  ;;  %360 = vmatpush.bf16.msra.mxu2 %v329_v2  ;;  %v332_v13 = vld [vmem:[%s488_s1 + $0x48] sm:$0xff]  ;;  %v331_v15 = vld [vmem:[%s488_s1 + $0x40] sm:$0xff]  ;;  %v322_v19 = vld [vmem:[%s490_s0 + $0x14] sm:$0xf0] }
   0x7   :  { %193 = vmatpush.bf16.msra.mxu1 %v337_v3  ;;  %368 = vmatpush.bf16.msra.mxu3 %v337_v3  ;;  %v241_v16 = vld [vmem:[%s490_s0] sm:$0xf]  ;;  %v320_v17 = vld [vmem:[%s490_s0 + $0x4] sm:$0xf0]  ;;  %v319_v20 = vld [vmem:[%s490_s0 + $0x4] sm:$0xf]  ;;  %v250_v25 = vor.u32 %v322_v19, %v249_v18 }
   0x8   :  { %v243_v21 = vld [vmem:[%s490_s0 + $0x8] sm:$0xf0]  ;;  %v321_v22 = vld [vmem:[%s490_s0 + $0x14] sm:$0xf]  ;;  %v251_v23 = vld [vmem:[%s490_s0 + $0x18] sm:$0xf0]  ;;  %v242_v24 = vor.u32 %v320_v17, %v241_v16 }
   0x9   :  { %v246_v26 = vor.u32 %v319_v20, %v243_v21  ;;  %v254_v27 = vor.u32 %v321_v22, %v251_v23  ;;  %v375_v28 = vld [vmem:[%s489_s2] ss:$0 sm:$0xff]  ;;  %v357_v41 = vld [vmem:[%s491_s3 + $0x8] sm:$0xff]  }
   0xa   :  { %175 = vmatpush.bf16.msra.mxu0 %v328_v4  ;;  %361 = vmatpush.bf16.msra.mxu2 %v328_v4  ;;  %v340_v32 = vld [vmem:[%s491_s3] sm:$0xff]   ;;  %v345_v46 = vunpack.c.l.bf16 %v357_v41  ;;  %v346_v52 = vunpack.c.h.bf16 %v357_v41 }
   0xb   :  { %194 = vmatpush.bf16.msra.mxu1 %v336_v5  ;;  %369 = vmatpush.bf16.msra.mxu3 %v336_v5  ;;  %v341_v35 = vunpack.c.l.bf16 %v340_v32  ;;  %v342_v40 = vunpack.c.h.bf16 %v340_v32 }
   0xe   :  { %176 = vmatpush.bf16.msra.mxu0 %v327_v6  ;;  %362 = vmatpush.bf16.msra.mxu2 %v327_v6 }
   0xf   :  { %195 = vmatpush.bf16.msra.mxu1 %v335_v7  ;;  %370 = vmatpush.bf16.msra.mxu3 %v335_v7 }
  0x12   :  { %177 = vmatpush.bf16.msra.mxu0 %v326_v8  ;;  %363 = vmatpush.bf16.msra.mxu2 %v326_v8 }
  0x13   :  { %196 = vmatpush.bf16.msra.mxu1 %v334_v9  ;;  %371 = vmatpush.bf16.msra.mxu3 %v334_v9 }
  0x16   :  { %178 = vmatpush.bf16.msra.mxu0 %v325_v10  ;;  %364 = vmatpush.bf16.msra.mxu2 %v325_v10 }
  0x17   :  { %197 = vmatpush.bf16.msra.mxu1 %v333_v11  ;;  %372 = vmatpush.bf16.msra.mxu3 %v333_v11 }
  0x1a   :  { %179 = vmatpush.bf16.msra.mxu0 %v324_v12  ;;  %365 = vmatpush.bf16.msra.mxu2 %v324_v12 }
  0x1b   :  { %198 = vmatpush.bf16.msra.mxu1 %v332_v13  ;;  %373 = vmatpush.bf16.msra.mxu3 %v332_v13 }
  0x1e   :  { %180 = vmatpush.bf16.msra.mxu0 %v323_v14  ;;  %366 = vmatpush.bf16.msra.mxu2 %v323_v14 }
  0x1f   :  { %199 = vmatpush.bf16.msra.mxu1 %v331_v15  ;;  %374 = vmatpush.bf16.msra.mxu3 %v331_v15 }
  0x21   :  { %181 = vmatmul.bf16.vlgmr.msra.gmra.mxu0 %v242_v24  ;;  %186 = vmatmul.bf16.vlgmr.msra.gmra.mxu2 %v250_v25 }
  0x22   :  { %200 = vmatmul.bf16.vlgmr.msra.gmra.mxu1 %v246_v26  ;;  %205 = vmatmul.bf16.vlgmr.msra.gmra.mxu3 %v254_v27 }
  0x9e   :  { %v182_v29 = vpop.f32.mrf.mxu0 }
  0x9f   :  { %v201_v30 = vpop.f32.mrf.mxu1  ;;  %v183_v31 = vadd.f32 %v375_v28, %v182_v29 }
  0xa1   :  { %v202_v34 = vadd.f32 %v201_v30, %v183_v31 }
  0xa3   :  { %v219_v43 = vadd.f32 %v341_v35, %v202_v34 }
  0xa4   :  { %v187_v33 = vpop.f32.mrf.mxu2 }
  0xa5   :  { %v206_v36 = vpop.f32.mrf.mxu3  ;;  %v188_v38 = vadd.f32 %v375_v28, %v187_v33  ;;  %v223_v49 = vmax.f32 %v219_v43, 0.0 }
  0xa6   :  { %v184_v37 = vpop.f32.mrf.mxu0 }
  0xa7   :  { %v185_v39 = vadd.f32 %v375_v28, %v184_v37  ;;  %v203_v42 = vpop.f32.mrf.mxu1  ;;  %v207_v45 = vadd.f32 %v206_v36, %v188_v38 }
  0xa9   :  { %v204_v44 = vadd.f32 %v203_v42, %v185_v39  ;;  %v221_v54 = vadd.f32 %v345_v46, %v207_v45 }
  0xab   :  { %v220_v47 = vadd.f32 %v342_v40, %v204_v44  ;;  %v225_v58 = vmax.f32 %v221_v54, 0.0 }
  0xac   :  { %v189_v48 = vpop.f32.mrf.mxu2 }
  0xad   :  { %v224_v50 = vmax.f32 %v220_v47, 0.0  ;;  %v190_v51 = vadd.f32 %v375_v28, %v189_v48  ;;  %v208_v53 = vpop.f32.mrf.mxu3 }
  0xaf   :  { %v350_v55 = vpack.c.bf16 %v224_v50, %v223_v49  ;;  %v209_v56 = vadd.f32 %v208_v53, %v190_v51 }
  0xb1   :  { %351 = vst [vmem:[%s492_s4] sm:$0xff] %v350_v55   ;;  %v222_v57 = vadd.f32 %v346_v52, %v209_v56 }
  0xb3   :  { %v226_v59 = vmax.f32 %v222_v57, 0.0 }
  0xb5   :  { %v355_v60 = vpack.c.bf16 %v226_v59, %v225_v58 }
  0xb7   :  { %358 = vst [vmem:[%s492_s4 + $0x8] sm:$0xff] %v355_v60  }

// kernel: _lambda_.28
= control target key start
LH: loop header
LB: loop body
LE: loop exit
PB: predicated region body
PF: predicated region fallthrough
CT: control target
= control target key end

     0   :  { %s453_s1 = inlined_call_operand.vmem [shape: bf16[256,128], index: 1, kind: input, shape index: {}]   ;;  %s454_s2 = inlined_call_operand.vmem [shape: f32[1,128], index: 2, kind: input, shape index: {}]   ;;  %s455_s0 = inlined_call_operand.vmem [shape: bf16[32,256], index: 0, kind: input, shape index: {}]   ;;  %s456_s3 = inlined_call_operand.vmem [shape: bf16[32,128], index: 3, kind: output, shape index: {}]  }
   0x1   :  { %v315_v0 = vld [vmem:[%s453_s1 + $0x38] sm:$0xff]  ;;  %v314_v2 = vld [vmem:[%s453_s1 + $0x30] sm:$0xff]  ;;  %v313_v4 = vld [vmem:[%s453_s1 + $0x28] sm:$0xff] }
   0x2   :  { %v323_v1 = vld [vmem:[%s453_s1 + $0x78] sm:$0xff]  ;;  %170 = vmatpush.bf16.msra.mxu0 %v315_v0  ;;  %335 = vmatpush.bf16.msra.mxu2 %v315_v0  ;;  %v322_v3 = vld [vmem:[%s453_s1 + $0x70] sm:$0xff]  ;;  %v321_v5 = vld [vmem:[%s453_s1 + $0x68] sm:$0xff] }
   0x3   :  { %189 = vmatpush.bf16.msra.mxu1 %v323_v1  ;;  %343 = vmatpush.bf16.msra.mxu3 %v323_v1  ;;  %v312_v6 = vld [vmem:[%s453_s1 + $0x20] sm:$0xff]  ;;  %v311_v8 = vld [vmem:[%s453_s1 + $0x18] sm:$0xff]  ;;  %v310_v10 = vld [vmem:[%s453_s1 + $0x10] sm:$0xff] }
   0x4   :  { %v320_v7 = vld [vmem:[%s453_s1 + $0x60] sm:$0xff]  ;;  %v319_v9 = vld [vmem:[%s453_s1 + $0x58] sm:$0xff]  ;;  %v318_v11 = vld [vmem:[%s453_s1 + $0x50] sm:$0xff] }
   0x5   :  { %v309_v12 = vld [vmem:[%s453_s1 + $0x8] sm:$0xff]  ;;  %v308_v14 = vld [vmem:[%s453_s1] sm:$0xff]  ;;  %v234_v18 = vld [vmem:[%s455_s0 + $0x10] sm:$0xf] }
   0x6   :  { %171 = vmatpush.bf16.msra.mxu0 %v314_v2  ;;  %336 = vmatpush.bf16.msra.mxu2 %v314_v2  ;;  %v317_v13 = vld [vmem:[%s453_s1 + $0x48] sm:$0xff]  ;;  %v316_v15 = vld [vmem:[%s453_s1 + $0x40] sm:$0xff]  ;;  %v307_v19 = vld [vmem:[%s455_s0 + $0x14] sm:$0xf0] }
   0x7   :  { %190 = vmatpush.bf16.msra.mxu1 %v322_v3  ;;  %344 = vmatpush.bf16.msra.mxu3 %v322_v3  ;;  %v226_v16 = vld [vmem:[%s455_s0] sm:$0xf]  ;;  %v305_v17 = vld [vmem:[%s455_s0 + $0x4] sm:$0xf0]  ;;  %v304_v20 = vld [vmem:[%s455_s0 + $0x4] sm:$0xf]  ;;  %v235_v25 = vor.u32 %v307_v19, %v234_v18 }
   0x8   :  { %v228_v21 = vld [vmem:[%s455_s0 + $0x8] sm:$0xf0]  ;;  %v306_v22 = vld [vmem:[%s455_s0 + $0x14] sm:$0xf]  ;;  %v236_v23 = vld [vmem:[%s455_s0 + $0x18] sm:$0xf0]  ;;  %v227_v24 = vor.u32 %v305_v17, %v226_v16 }
   0x9   :  { %v231_v26 = vor.u32 %v304_v20, %v228_v21  ;;  %v239_v27 = vor.u32 %v306_v22, %v236_v23  ;;  %v351_v29 = vld [vmem:[%s454_s2] ss:$0 sm:$0xff] }
   0xa   :  { %172 = vmatpush.bf16.msra.mxu0 %v313_v4  ;;  %337 = vmatpush.bf16.msra.mxu2 %v313_v4 }
   0xb   :  { %191 = vmatpush.bf16.msra.mxu1 %v321_v5  ;;  %345 = vmatpush.bf16.msra.mxu3 %v321_v5 }
   0xe   :  { %173 = vmatpush.bf16.msra.mxu0 %v312_v6  ;;  %338 = vmatpush.bf16.msra.mxu2 %v312_v6 }
   0xf   :  { %192 = vmatpush.bf16.msra.mxu1 %v320_v7  ;;  %346 = vmatpush.bf16.msra.mxu3 %v320_v7 }
  0x12   :  { %174 = vmatpush.bf16.msra.mxu0 %v311_v8  ;;  %339 = vmatpush.bf16.msra.mxu2 %v311_v8 }
  0x13   :  { %193 = vmatpush.bf16.msra.mxu1 %v319_v9  ;;  %347 = vmatpush.bf16.msra.mxu3 %v319_v9 }
  0x16   :  { %175 = vmatpush.bf16.msra.mxu0 %v310_v10  ;;  %340 = vmatpush.bf16.msra.mxu2 %v310_v10 }
  0x17   :  { %194 = vmatpush.bf16.msra.mxu1 %v318_v11  ;;  %348 = vmatpush.bf16.msra.mxu3 %v318_v11 }
  0x1a   :  { %176 = vmatpush.bf16.msra.mxu0 %v309_v12  ;;  %341 = vmatpush.bf16.msra.mxu2 %v309_v12 }
  0x1b   :  { %195 = vmatpush.bf16.msra.mxu1 %v317_v13  ;;  %349 = vmatpush.bf16.msra.mxu3 %v317_v13 }
  0x1e   :  { %177 = vmatpush.bf16.msra.mxu0 %v308_v14  ;;  %342 = vmatpush.bf16.msra.mxu2 %v308_v14 }
  0x1f   :  { %196 = vmatpush.bf16.msra.mxu1 %v316_v15  ;;  %350 = vmatpush.bf16.msra.mxu3 %v316_v15 }
  0x21   :  { %178 = vmatmul.bf16.vlgmr.msra.gmra.mxu0 %v227_v24  ;;  %183 = vmatmul.bf16.vlgmr.msra.gmra.mxu2 %v235_v25 }
  0x22   :  { %197 = vmatmul.bf16.vlgmr.msra.gmra.mxu1 %v231_v26  ;;  %202 = vmatmul.bf16.vlgmr.msra.gmra.mxu3 %v239_v27 }
  0x9e   :  { %v179_v28 = vpop.f32.mrf.mxu0 }
  0x9f   :  { %v198_v30 = vpop.f32.mrf.mxu1  ;;  %v180_v31 = vadd.f32 %v351_v29, %v179_v28 }
  0xa1   :  { %v199_v35 = vadd.f32 %v198_v30, %v180_v31 }
  0xa3   :  { %v208_v40 = vmax.f32 %v199_v35, 0.0 }
  0xa4   :  { %v184_v32 = vpop.f32.mrf.mxu2 }
  0xa5   :  { %v203_v33 = vpop.f32.mrf.mxu3  ;;  %v185_v38 = vadd.f32 %v351_v29, %v184_v32 }
  0xa6   :  { %v181_v34 = vpop.f32.mrf.mxu0 }
  0xa7   :  { %v182_v36 = vadd.f32 %v351_v29, %v181_v34  ;;  %v200_v37 = vpop.f32.mrf.mxu1  ;;  %v204_v43 = vadd.f32 %v203_v33, %v185_v38 }
  0xa9   :  { %v201_v39 = vadd.f32 %v200_v37, %v182_v36  ;;  %v210_v48 = vmax.f32 %v204_v43, 0.0 }
  0xab   :  { %v209_v41 = vmax.f32 %v201_v39, 0.0 }
  0xac   :  { %v186_v42 = vpop.f32.mrf.mxu2 }
  0xad   :  { %v327_v44 = vpack.c.bf16 %v209_v41, %v208_v40  ;;  %v187_v45 = vadd.f32 %v351_v29, %v186_v42  ;;  %v205_v46 = vpop.f32.mrf.mxu3 }
  0xaf   :  { %328 = vst [vmem:[%s456_s3] sm:$0xff] %v327_v44   ;;  %v206_v47 = vadd.f32 %v205_v46, %v187_v45 }
  0xb1   :  { %v211_v49 = vmax.f32 %v206_v47, 0.0 }
  0xb3   :  { %v332_v50 = vpack.c.bf16 %v211_v49, %v210_v48 }
  0xb5   :  { %334 = vst [vmem:[%s456_s3 + $0x8] sm:$0xff] %v332_v50  }

// kernel: _lambda_.31
= control target key start
LH: loop header
LB: loop body
LE: loop exit
PB: predicated region body
PF: predicated region fallthrough
CT: control target
= control target key end

     0   :  { %s378_s1 = inlined_call_operand.vmem [shape: bf16[256,128], index: 1, kind: input, shape index: {}]   ;;  %s379_s2 = inlined_call_operand.vmem [shape: f32[1,128], index: 2, kind: input, shape index: {}]   ;;  %s380_s0 = inlined_call_operand.vmem [shape: bf16[16,256], index: 0, kind: input, shape index: {}]   ;;  %s381_s3 = inlined_call_operand.vmem [shape: bf16[16,128], index: 3, kind: output, shape index: {}]  }
   0x1   :  { %v277_v0 = vld [vmem:[%s378_s1 + $0x38] sm:$0xff]  ;;  %v276_v2 = vld [vmem:[%s378_s1 + $0x30] sm:$0xff]  ;;  %v275_v4 = vld [vmem:[%s378_s1 + $0x28] sm:$0xff] }
   0x2   :  { %v285_v1 = vld [vmem:[%s378_s1 + $0x78] sm:$0xff]  ;;  %158 = vmatpush.bf16.msra.mxu0 %v277_v0  ;;  %v284_v3 = vld [vmem:[%s378_s1 + $0x70] sm:$0xff]  ;;  %v283_v5 = vld [vmem:[%s378_s1 + $0x68] sm:$0xff] }
   0x3   :  { %172 = vmatpush.bf16.msra.mxu1 %v285_v1  ;;  %v274_v6 = vld [vmem:[%s378_s1 + $0x20] sm:$0xff]  ;;  %v273_v8 = vld [vmem:[%s378_s1 + $0x18] sm:$0xff]  ;;  %v272_v10 = vld [vmem:[%s378_s1 + $0x10] sm:$0xff] }
   0x4   :  { %v282_v7 = vld [vmem:[%s378_s1 + $0x60] sm:$0xff]  ;;  %v281_v9 = vld [vmem:[%s378_s1 + $0x58] sm:$0xff]  ;;  %v280_v11 = vld [vmem:[%s378_s1 + $0x50] sm:$0xff] }
   0x5   :  { %v271_v12 = vld [vmem:[%s378_s1 + $0x8] sm:$0xff]  ;;  %v270_v14 = vld [vmem:[%s378_s1] sm:$0xff] }
   0x6   :  { %159 = vmatpush.bf16.msra.mxu0 %v276_v2  ;;  %v279_v13 = vld [vmem:[%s378_s1 + $0x48] sm:$0xff]  ;;  %v278_v15 = vld [vmem:[%s378_s1 + $0x40] sm:$0xff] }
   0x7   :  { %173 = vmatpush.bf16.msra.mxu1 %v284_v3  ;;  %v198_v16 = vld [vmem:[%s380_s0] sm:$0xf]  ;;  %v269_v17 = vld [vmem:[%s380_s0 + $0x4] sm:$0xf0]  ;;  %v268_v18 = vld [vmem:[%s380_s0 + $0x4] sm:$0xf] }
   0x8   :  { %v200_v19 = vld [vmem:[%s380_s0 + $0x8] sm:$0xf0]  ;;  %v199_v20 = vor.u32 %v269_v17, %v198_v16  ;;  %v291_v24 = vld [vmem:[%s379_s2] ss:$0 sm:$0xff] }
   0x9   :  { %v203_v21 = vor.u32 %v268_v18, %v200_v19 }
   0xa   :  { %160 = vmatpush.bf16.msra.mxu0 %v275_v4 }
   0xb   :  { %174 = vmatpush.bf16.msra.mxu1 %v283_v5 }
   0xe   :  { %161 = vmatpush.bf16.msra.mxu0 %v274_v6 }
   0xf   :  { %175 = vmatpush.bf16.msra.mxu1 %v282_v7 }
  0x12   :  { %162 = vmatpush.bf16.msra.mxu0 %v273_v8 }
  0x13   :  { %176 = vmatpush.bf16.msra.mxu1 %v281_v9 }
  0x16   :  { %163 = vmatpush.bf16.msra.mxu0 %v272_v10 }
  0x17   :  { %177 = vmatpush.bf16.msra.mxu1 %v280_v11 }
  0x1a   :  { %164 = vmatpush.bf16.msra.mxu0 %v271_v12 }
  0x1b   :  { %178 = vmatpush.bf16.msra.mxu1 %v279_v13 }
  0x1e   :  { %165 = vmatpush.bf16.msra.mxu0 %v270_v14 }
  0x1f   :  { %179 = vmatpush.bf16.msra.mxu1 %v278_v15 }
  0x21   :  { %166 = vmatmul.bf16.vlgmr.msra.gmra.mxu0 %v199_v20 }
  0x22   :  { %180 = vmatmul.bf16.vlgmr.msra.gmra.mxu1 %v203_v21 }
  0x9e   :  { %v167_v22 = vpop.f32.mrf.mxu0 }
  0x9f   :  { %v181_v23 = vpop.f32.mrf.mxu1  ;;  %v168_v25 = vadd.f32 %v291_v24, %v167_v22 }
  0xa1   :  { %v182_v27 = vadd.f32 %v181_v23, %v168_v25 }
  0xa3   :  { %v186_v31 = vmax.f32 %v182_v27, 0.0 }
  0xa6   :  { %v169_v26 = vpop.f32.mrf.mxu0 }
  0xa7   :  { %v170_v28 = vadd.f32 %v291_v24, %v169_v26  ;;  %v183_v29 = vpop.f32.mrf.mxu1 }
  0xa9   :  { %v184_v30 = vadd.f32 %v183_v29, %v170_v28 }
  0xab   :  { %v187_v32 = vmax.f32 %v184_v30, 0.0 }
  0xad   :  { %v289_v33 = vpack.c.bf16 %v187_v32, %v186_v31 }
  0xaf   :  { %290 = vst [vmem:[%s381_s3] sm:$0xff] %v289_v33  }

// kernel: _lambda_.30
= control target key start
LH: loop header
LB: loop body
LE: loop exit
PB: predicated region body
PF: predicated region fallthrough
CT: control target
= control target key end

     0   :  { %s216_s1 = inlined_call_operand.vmem [shape: bf16[128,128], index: 1, kind: input, shape index: {}]   ;;  %s217_s2 = inlined_call_operand.vmem [shape: f32[1,128], index: 2, kind: input, shape index: {}]   ;;  %s218_s0 = inlined_call_operand.vmem [shape: bf16[16,128], index: 0, kind: input, shape index: {}]   ;;  %s219_s3 = inlined_call_operand.vmem [shape: bf16[16,128], index: 3, kind: output, shape index: {}]  }
   0x1   :  { %v156_v0 = vld [vmem:[%s216_s1 + $0x38] sm:$0xff]  ;;  %v155_v1 = vld [vmem:[%s216_s1 + $0x30] sm:$0xff]  ;;  %v154_v2 = vld [vmem:[%s216_s1 + $0x28] sm:$0xff] }
   0x2   :  { %90 = vmatpush.bf16.msra.mxu0 %v156_v0  ;;  %v153_v3 = vld [vmem:[%s216_s1 + $0x20] sm:$0xff]  ;;  %v152_v4 = vld [vmem:[%s216_s1 + $0x18] sm:$0xff]  ;;  %v151_v5 = vld [vmem:[%s216_s1 + $0x10] sm:$0xff] }
   0x3   :  { %v150_v6 = vld [vmem:[%s216_s1 + $0x8] sm:$0xff]  ;;  %v149_v7 = vld [vmem:[%s216_s1] sm:$0xff] }
   0x4   :  { %v148_v8 = vld [vmem:[%s218_s0] sm:$0xff] }
   0x5   :  { %v162_v10 = vld [vmem:[%s217_s2] ss:$0 sm:$0xff] }
   0x6   :  { %91 = vmatpush.bf16.msra.mxu0 %v155_v1 }
   0xa   :  { %92 = vmatpush.bf16.msra.mxu0 %v154_v2 }
   0xe   :  { %93 = vmatpush.bf16.msra.mxu0 %v153_v3 }
  0x12   :  { %94 = vmatpush.bf16.msra.mxu0 %v152_v4 }
  0x16   :  { %95 = vmatpush.bf16.msra.mxu0 %v151_v5 }
  0x1a   :  { %96 = vmatpush.bf16.msra.mxu0 %v150_v6 }
  0x1e   :  { %97 = vmatpush.bf16.msra.mxu0 %v149_v7 }
  0x21   :  { %98 = vmatmul.bf16.vlgmr.msra.gmra.mxu0 %v148_v8 }
  0x9e   :  { %v99_v9 = vpop.f32.mrf.mxu0 }
  0x9f   :  { %v100_v12 = vadd.f32 %v162_v10, %v99_v9 }
  0xa6   :  { %v101_v11 = vpop.f32.mrf.mxu0 }
  0xa7   :  { %v102_v13 = vadd.f32 %v162_v10, %v101_v11 }
  0xa9   :  { %v160_v14 = vpack.c.bf16 %v102_v13, %v100_v12 }
  0xab   :  { %161 = vst [vmem:[%s219_s3] sm:$0xff] %v160_v14  }

// kernel: _lambda_.33
= control target key start
LH: loop header
LB: loop body
LE: loop exit
PB: predicated region body
PF: predicated region fallthrough
CT: control target
= control target key end

     0   :  { %s539_s1 = inlined_call_operand.vmem [shape: bf16[384,128], index: 1, kind: input, shape index: {}]   ;;  %s540_s2 = inlined_call_operand.vmem [shape: f32[1,128], index: 2, kind: input, shape index: {}]   ;;  %s541_s0 = inlined_call_operand.vmem [shape: bf16[16,384], index: 0, kind: input, shape index: {}]   ;;  %s542_s3 = inlined_call_operand.vmem [shape: bf16[16,128], index: 3, kind: output, shape index: {}]  }
   0x1   :  { %v400_v0 = vld [vmem:[%s539_s1 + $0x38] sm:$0xff]  ;;  %v399_v3 = vld [vmem:[%s539_s1 + $0x30] sm:$0xff]  ;;  %v398_v6 = vld [vmem:[%s539_s1 + $0x28] sm:$0xff] }
   0x2   :  { %v408_v1 = vld [vmem:[%s539_s1 + $0x78] sm:$0xff]  ;;  %230 = vmatpush.bf16.msra.mxu0 %v400_v0  ;;  %v407_v4 = vld [vmem:[%s539_s1 + $0x70] sm:$0xff]  ;;  %v406_v7 = vld [vmem:[%s539_s1 + $0x68] sm:$0xff] }
   0x3   :  { %v416_v2 = vld [vmem:[%s539_s1 + $0xb8] sm:$0xff]  ;;  %244 = vmatpush.bf16.msra.mxu1 %v408_v1  ;;  %v415_v5 = vld [vmem:[%s539_s1 + $0xb0] sm:$0xff]  ;;  %v414_v8 = vld [vmem:[%s539_s1 + $0xa8] sm:$0xff] }
   0x4   :  { %258 = vmatpush.bf16.msra.mxu2 %v416_v2  ;;  %v397_v9 = vld [vmem:[%s539_s1 + $0x20] sm:$0xff]  ;;  %v396_v12 = vld [vmem:[%s539_s1 + $0x18] sm:$0xff]  ;;  %v395_v15 = vld [vmem:[%s539_s1 + $0x10] sm:$0xff] }
   0x5   :  { %v405_v10 = vld [vmem:[%s539_s1 + $0x60] sm:$0xff]  ;;  %v404_v13 = vld [vmem:[%s539_s1 + $0x58] sm:$0xff]  ;;  %v403_v16 = vld [vmem:[%s539_s1 + $0x50] sm:$0xff] }
   0x6   :  { %231 = vmatpush.bf16.msra.mxu0 %v399_v3  ;;  %v413_v11 = vld [vmem:[%s539_s1 + $0xa0] sm:$0xff]  ;;  %v412_v14 = vld [vmem:[%s539_s1 + $0x98] sm:$0xff]  ;;  %v411_v17 = vld [vmem:[%s539_s1 + $0x90] sm:$0xff] }
   0x7   :  { %245 = vmatpush.bf16.msra.mxu1 %v407_v4  ;;  %v394_v18 = vld [vmem:[%s539_s1 + $0x8] sm:$0xff]  ;;  %v393_v21 = vld [vmem:[%s539_s1] sm:$0xff]  ;;  %v286_v26 = vld [vmem:[%s541_s0 + $0xc] sm:$0xf0] }
   0x8   :  { %259 = vmatpush.bf16.msra.mxu2 %v415_v5  ;;  %v402_v19 = vld [vmem:[%s539_s1 + $0x48] sm:$0xff]  ;;  %v401_v22 = vld [vmem:[%s539_s1 + $0x40] sm:$0xff]  ;;  %v392_v29 = vld [vmem:[%s541_s0 + $0x10] sm:$0xf0] }
   0x9   :  { %v410_v20 = vld [vmem:[%s539_s1 + $0x88] sm:$0xff]  ;;  %v284_v23 = vld [vmem:[%s541_s0] sm:$0xf]  ;;  %v390_v25 = vld [vmem:[%s541_s0 + $0x4] sm:$0xf] }
   0xa   :  { %232 = vmatpush.bf16.msra.mxu0 %v398_v6  ;;  %v391_v24 = vld [vmem:[%s541_s0 + $0x8] sm:$0xf0]  ;;  %v409_v27 = vld [vmem:[%s539_s1 + $0x80] sm:$0xff]  ;;  %v292_v28 = vld [vmem:[%s541_s0 + $0x8] sm:$0xf]  ;;  %v289_v31 = vor.u32 %v390_v25, %v286_v26 }
   0xb   :  { %246 = vmatpush.bf16.msra.mxu1 %v406_v7  ;;  %v285_v30 = vor.u32 %v391_v24, %v284_v23  ;;  %v293_v32 = vor.u32 %v392_v29, %v292_v28  ;;  %v422_v34 = vld [vmem:[%s540_s2] ss:$0 sm:$0xff] }
   0xc   :  { %260 = vmatpush.bf16.msra.mxu2 %v414_v8 }
   0xe   :  { %233 = vmatpush.bf16.msra.mxu0 %v397_v9 }
   0xf   :  { %247 = vmatpush.bf16.msra.mxu1 %v405_v10 }
  0x10   :  { %261 = vmatpush.bf16.msra.mxu2 %v413_v11 }
  0x12   :  { %234 = vmatpush.bf16.msra.mxu0 %v396_v12 }
  0x13   :  { %248 = vmatpush.bf16.msra.mxu1 %v404_v13 }
  0x14   :  { %262 = vmatpush.bf16.msra.mxu2 %v412_v14 }
  0x16   :  { %235 = vmatpush.bf16.msra.mxu0 %v395_v15 }
  0x17   :  { %249 = vmatpush.bf16.msra.mxu1 %v403_v16 }
  0x18   :  { %263 = vmatpush.bf16.msra.mxu2 %v411_v17 }
  0x1a   :  { %236 = vmatpush.bf16.msra.mxu0 %v394_v18 }
  0x1b   :  { %250 = vmatpush.bf16.msra.mxu1 %v402_v19 }
  0x1c   :  { %264 = vmatpush.bf16.msra.mxu2 %v410_v20 }
  0x1e   :  { %237 = vmatpush.bf16.msra.mxu0 %v393_v21 }
  0x1f   :  { %251 = vmatpush.bf16.msra.mxu1 %v401_v22 }
  0x20   :  { %265 = vmatpush.bf16.msra.mxu2 %v409_v27 }
  0x21   :  { %238 = vmatmul.bf16.vlgmr.msra.gmra.mxu0 %v285_v30 }
  0x22   :  { %252 = vmatmul.bf16.vlgmr.msra.gmra.mxu1 %v289_v31 }
  0x23   :  { %266 = vmatmul.bf16.vlgmr.msra.gmra.mxu2 %v293_v32 }
  0x9e   :  { %v239_v33 = vpop.f32.mrf.mxu0 }
  0x9f   :  { %v253_v35 = vpop.f32.mrf.mxu1  ;;  %v240_v36 = vadd.f32 %v422_v34, %v239_v33 }
  0xa1   :  { %v254_v39 = vadd.f32 %v253_v35, %v240_v36 }
  0xa6   :  { %v267_v37 = vpop.f32.mrf.mxu2  ;;  %v241_v38 = vpop.f32.mrf.mxu0 }
  0xa7   :  { %v242_v40 = vadd.f32 %v422_v34, %v241_v38  ;;  %v255_v41 = vpop.f32.mrf.mxu1  ;;  %v268_v42 = vadd.f32 %v267_v37, %v254_v39 }
  0xa9   :  { %v256_v43 = vadd.f32 %v255_v41, %v242_v40  ;;  %v272_v46 = vmax.f32 %v268_v42, 0.0 }
  0xae   :  { %v269_v44 = vpop.f32.mrf.mxu2 }
  0xaf   :  { %v270_v45 = vadd.f32 %v269_v44, %v256_v43 }
  0xb1   :  { %v273_v47 = vmax.f32 %v270_v45, 0.0 }
  0xb3   :  { %v420_v48 = vpack.c.bf16 %v273_v47, %v272_v46 }
  0xb5   :  { %421 = vst [vmem:[%s542_s3] sm:$0xff] %v420_v48  }

// kernel: _lambda_.32
= control target key start
LH: loop header
LB: loop body
LE: loop exit
PB: predicated region body
PF: predicated region fallthrough
CT: control target
= control target key end

     0   :  { %s560_s1 = inlined_call_operand.vmem [shape: bf16[384,128], index: 1, kind: input, shape index: {}]   ;;  %s561_s2 = inlined_call_operand.vmem [shape: f32[1,128], index: 2, kind: input, shape index: {}]   ;;  %s562_s0 = inlined_call_operand.vmem [shape: bf16[16,384], index: 0, kind: input, shape index: {}]   ;;  %s563_s3 = inlined_call_operand.vmem [shape: bf16[16,128], index: 3, kind: input, shape index: {}]   ;;  %s564_s4 = inlined_call_operand.vmem [shape: bf16[16,128], index: 4, kind: output, shape index: {}]  }
   0x1   :  { %v409_v0 = vld [vmem:[%s560_s1 + $0x38] sm:$0xff]  ;;  %v408_v3 = vld [vmem:[%s560_s1 + $0x30] sm:$0xff]  ;;  %v407_v6 = vld [vmem:[%s560_s1 + $0x28] sm:$0xff] }
   0x2   :  { %v417_v1 = vld [vmem:[%s560_s1 + $0x78] sm:$0xff]  ;;  %233 = vmatpush.bf16.msra.mxu0 %v409_v0  ;;  %v416_v4 = vld [vmem:[%s560_s1 + $0x70] sm:$0xff]  ;;  %v415_v7 = vld [vmem:[%s560_s1 + $0x68] sm:$0xff] }
   0x3   :  { %v425_v2 = vld [vmem:[%s560_s1 + $0xb8] sm:$0xff]  ;;  %247 = vmatpush.bf16.msra.mxu1 %v417_v1  ;;  %v424_v5 = vld [vmem:[%s560_s1 + $0xb0] sm:$0xff]  ;;  %v423_v8 = vld [vmem:[%s560_s1 + $0xa8] sm:$0xff] }
   0x4   :  { %261 = vmatpush.bf16.msra.mxu2 %v425_v2  ;;  %v406_v9 = vld [vmem:[%s560_s1 + $0x20] sm:$0xff]  ;;  %v405_v12 = vld [vmem:[%s560_s1 + $0x18] sm:$0xff]  ;;  %v404_v15 = vld [vmem:[%s560_s1 + $0x10] sm:$0xff] }
   0x5   :  { %v414_v10 = vld [vmem:[%s560_s1 + $0x60] sm:$0xff]  ;;  %v413_v13 = vld [vmem:[%s560_s1 + $0x58] sm:$0xff]  ;;  %v412_v16 = vld [vmem:[%s560_s1 + $0x50] sm:$0xff] }
   0x6   :  { %234 = vmatpush.bf16.msra.mxu0 %v408_v3  ;;  %v422_v11 = vld [vmem:[%s560_s1 + $0xa0] sm:$0xff]  ;;  %v421_v14 = vld [vmem:[%s560_s1 + $0x98] sm:$0xff]  ;;  %v420_v17 = vld [vmem:[%s560_s1 + $0x90] sm:$0xff] }
   0x7   :  { %248 = vmatpush.bf16.msra.mxu1 %v416_v4  ;;  %v403_v18 = vld [vmem:[%s560_s1 + $0x8] sm:$0xff]  ;;  %v402_v21 = vld [vmem:[%s560_s1] sm:$0xff]  ;;  %v295_v26 = vld [vmem:[%s562_s0 + $0xc] sm:$0xf0] }
   0x8   :  { %262 = vmatpush.bf16.msra.mxu2 %v424_v5  ;;  %v411_v19 = vld [vmem:[%s560_s1 + $0x48] sm:$0xff]  ;;  %v410_v22 = vld [vmem:[%s560_s1 + $0x40] sm:$0xff]  ;;  %v401_v29 = vld [vmem:[%s562_s0 + $0x10] sm:$0xf0] }
   0x9   :  { %v419_v20 = vld [vmem:[%s560_s1 + $0x88] sm:$0xff]  ;;  %v293_v23 = vld [vmem:[%s562_s0] sm:$0xf]  ;;  %v399_v25 = vld [vmem:[%s562_s0 + $0x4] sm:$0xf] }
   0xa   :  { %235 = vmatpush.bf16.msra.mxu0 %v407_v6  ;;  %v400_v24 = vld [vmem:[%s562_s0 + $0x8] sm:$0xf0]  ;;  %v418_v27 = vld [vmem:[%s560_s1 + $0x80] sm:$0xff]  ;;  %v301_v28 = vld [vmem:[%s562_s0 + $0x8] sm:$0xf]  ;;  %v298_v31 = vor.u32 %v399_v25, %v295_v26 }
   0xb   :  { %249 = vmatpush.bf16.msra.mxu1 %v415_v7  ;;  %v294_v30 = vor.u32 %v400_v24, %v293_v23  ;;  %v302_v32 = vor.u32 %v401_v29, %v301_v28  ;;  %v435_v33 = vld [vmem:[%s561_s2] ss:$0 sm:$0xff] }
   0xc   :  { %263 = vmatpush.bf16.msra.mxu2 %v423_v8  ;;  %v427_v40 = vld [vmem:[%s563_s3] sm:$0xff]  }
   0xd   :  { %v428_v43 = vunpack.c.l.bf16 %v427_v40  ;;  %v429_v46 = vunpack.c.h.bf16 %v427_v40 }
   0xe   :  { %236 = vmatpush.bf16.msra.mxu0 %v406_v9 }
   0xf   :  { %250 = vmatpush.bf16.msra.mxu1 %v414_v10 }
  0x10   :  { %264 = vmatpush.bf16.msra.mxu2 %v422_v11 }
  0x12   :  { %237 = vmatpush.bf16.msra.mxu0 %v405_v12 }
  0x13   :  { %251 = vmatpush.bf16.msra.mxu1 %v413_v13 }
  0x14   :  { %265 = vmatpush.bf16.msra.mxu2 %v421_v14 }
  0x16   :  { %238 = vmatpush.bf16.msra.mxu0 %v404_v15 }
  0x17   :  { %252 = vmatpush.bf16.msra.mxu1 %v412_v16 }
  0x18   :  { %266 = vmatpush.bf16.msra.mxu2 %v420_v17 }
  0x1a   :  { %239 = vmatpush.bf16.msra.mxu0 %v403_v18 }
  0x1b   :  { %253 = vmatpush.bf16.msra.mxu1 %v411_v19 }
  0x1c   :  { %267 = vmatpush.bf16.msra.mxu2 %v419_v20 }
  0x1e   :  { %240 = vmatpush.bf16.msra.mxu0 %v402_v21 }
  0x1f   :  { %254 = vmatpush.bf16.msra.mxu1 %v410_v22 }
  0x20   :  { %268 = vmatpush.bf16.msra.mxu2 %v418_v27 }
  0x21   :  { %241 = vmatmul.bf16.vlgmr.msra.gmra.mxu0 %v294_v30 }
  0x22   :  { %255 = vmatmul.bf16.vlgmr.msra.gmra.mxu1 %v298_v31 }
  0x23   :  { %269 = vmatmul.bf16.vlgmr.msra.gmra.mxu2 %v302_v32 }
  0x9e   :  { %v242_v34 = vpop.f32.mrf.mxu0 }
  0x9f   :  { %v256_v35 = vpop.f32.mrf.mxu1  ;;  %v243_v36 = vadd.f32 %v435_v33, %v242_v34 }
  0xa1   :  { %v257_v38 = vadd.f32 %v256_v35, %v243_v36 }
  0xa6   :  { %v270_v37 = vpop.f32.mrf.mxu2  ;;  %v244_v39 = vpop.f32.mrf.mxu0 }
  0xa7   :  { %v245_v41 = vadd.f32 %v435_v33, %v244_v39  ;;  %v271_v42 = vadd.f32 %v270_v37, %v257_v38  ;;  %v258_v44 = vpop.f32.mrf.mxu1 }
  0xa9   :  { %v259_v45 = vadd.f32 %v258_v44, %v245_v41  ;;  %v279_v48 = vadd.f32 %v428_v43, %v271_v42 }
  0xab   :  { %v281_v51 = vmax.f32 %v279_v48, 0.0 }
  0xae   :  { %v272_v47 = vpop.f32.mrf.mxu2 }
  0xaf   :  { %v273_v49 = vadd.f32 %v272_v47, %v259_v45 }
  0xb1   :  { %v280_v50 = vadd.f32 %v429_v46, %v273_v49 }
  0xb3   :  { %v282_v52 = vmax.f32 %v280_v50, 0.0 }
  0xb5   :  { %v433_v53 = vpack.c.bf16 %v282_v52, %v281_v51 }
  0xb7   :  { %434 = vst [vmem:[%s564_s4] sm:$0xff] %v433_v53  }

// kernel: _lambda_.38
= control target key start
LH: loop header
LB: loop body
LE: loop exit
PB: predicated region body
PF: predicated region fallthrough
CT: control target
= control target key end

     0   :  { %s857_s1 = inlined_call_operand.vmem [shape: bf16[640,128], index: 1, kind: input, shape index: {}]   ;;  %s858_s2 = inlined_call_operand.vmem [shape: f32[1,128], index: 2, kind: input, shape index: {}]   ;;  %s859_s0 = inlined_call_operand.vmem [shape: bf16[16,640], index: 0, kind: input, shape index: {}]   ;;  %s860_s3 = inlined_call_operand.vmem [shape: bf16[16,128], index: 3, kind: output, shape index: {}]  }
   0x1   :  { %v642_v0 = vld [vmem:[%s857_s1 + $0x38] sm:$0xff]  ;;  %v641_v4 = vld [vmem:[%s857_s1 + $0x30] sm:$0xff]  ;;  %v640_v8 = vld [vmem:[%s857_s1 + $0x28] sm:$0xff] }
   0x2   :  { %v658_v1 = vld [vmem:[%s857_s1 + $0xb8] sm:$0xff]  ;;  %370 = vmatpush.bf16.msra.mxu0 %v642_v0  ;;  %v657_v5 = vld [vmem:[%s857_s1 + $0xb0] sm:$0xff]  ;;  %v656_v9 = vld [vmem:[%s857_s1 + $0xa8] sm:$0xff] }
   0x3   :  { %v666_v2 = vld [vmem:[%s857_s1 + $0xf8] sm:$0xff]  ;;  %398 = vmatpush.bf16.msra.mxu2 %v658_v1  ;;  %v665_v6 = vld [vmem:[%s857_s1 + $0xf0] sm:$0xff]  ;;  %v664_v10 = vld [vmem:[%s857_s1 + $0xe8] sm:$0xff] }
   0x4   :  { %v650_v3 = vld [vmem:[%s857_s1 + $0x78] sm:$0xff]  ;;  %412 = vmatpush.bf16.msra.mxu3 %v666_v2  ;;  %v649_v7 = vld [vmem:[%s857_s1 + $0x70] sm:$0xff]  ;;  %v648_v11 = vld [vmem:[%s857_s1 + $0x68] sm:$0xff] }
   0x5   :  { %384 = vmatpush.bf16.msra.mxu1 %v650_v3  ;;  %v639_v12 = vld [vmem:[%s857_s1 + $0x20] sm:$0xff]  ;;  %v638_v16 = vld [vmem:[%s857_s1 + $0x18] sm:$0xff]  ;;  %v637_v20 = vld [vmem:[%s857_s1 + $0x10] sm:$0xff] }
   0x6   :  { %371 = vmatpush.bf16.msra.mxu0 %v641_v4  ;;  %v655_v13 = vld [vmem:[%s857_s1 + $0xa0] sm:$0xff]  ;;  %v654_v17 = vld [vmem:[%s857_s1 + $0x98] sm:$0xff]  ;;  %v653_v21 = vld [vmem:[%s857_s1 + $0x90] sm:$0xff] }
   0x7   :  { %399 = vmatpush.bf16.msra.mxu2 %v657_v5  ;;  %v663_v14 = vld [vmem:[%s857_s1 + $0xe0] sm:$0xff]  ;;  %v662_v18 = vld [vmem:[%s857_s1 + $0xd8] sm:$0xff]  ;;  %v661_v22 = vld [vmem:[%s857_s1 + $0xd0] sm:$0xff] }
   0x8   :  { %413 = vmatpush.bf16.msra.mxu3 %v665_v6  ;;  %v647_v15 = vld [vmem:[%s857_s1 + $0x60] sm:$0xff]  ;;  %v646_v19 = vld [vmem:[%s857_s1 + $0x58] sm:$0xff]  ;;  %v645_v23 = vld [vmem:[%s857_s1 + $0x50] sm:$0xff] }
   0x9   :  { %385 = vmatpush.bf16.msra.mxu1 %v649_v7  ;;  %v636_v24 = vld [vmem:[%s857_s1 + $0x8] sm:$0xff]  ;;  %v635_v28 = vld [vmem:[%s857_s1] sm:$0xff]  ;;  %v674_v29 = vld [vmem:[%s857_s1 + $0x138] sm:$0xff] }
   0xa   :  { %372 = vmatpush.bf16.msra.mxu0 %v640_v8  ;;  %v652_v25 = vld [vmem:[%s857_s1 + $0x88] sm:$0xff]  ;;  %v651_v30 = vld [vmem:[%s857_s1 + $0x80] sm:$0xff]  ;;  %v633_v32 = vld [vmem:[%s859_s0 + $0x18] sm:$0xf0] }
   0xb   :  { %400 = vmatpush.bf16.msra.mxu2 %v656_v9  ;;  %v660_v26 = vld [vmem:[%s857_s1 + $0xc8] sm:$0xff]  ;;  %v452_v33 = vld [vmem:[%s859_s0] sm:$0xf]  ;;  %v632_v34 = vld [vmem:[%s859_s0 + $0x10] sm:$0xf0] }
   0xc   :  { %414 = vmatpush.bf16.msra.mxu3 %v664_v10  ;;  %v644_v27 = vld [vmem:[%s857_s1 + $0x48] sm:$0xff]  ;;  %v659_v35 = vld [vmem:[%s857_s1 + $0xc0] sm:$0xff]  ;;  %v454_v40 = vld [vmem:[%s859_s0 + $0x14] sm:$0xf0]  ;;  %v453_v42 = vor.u32 %v632_v34, %v452_v33 }
   0xd   :  { %386 = vmatpush.bf16.msra.mxu1 %v648_v11  ;;  %v460_v31 = vld [vmem:[%s859_s0 + $0x8] sm:$0xf]  ;;  %v631_v36 = vld [vmem:[%s859_s0 + $0xc] sm:$0xf]  ;;  %v462_v37 = vld [vmem:[%s859_s0 + $0x1c] sm:$0xf0] }
   0xe   :  { %373 = vmatpush.bf16.msra.mxu0 %v639_v12  ;;  %v643_v38 = vld [vmem:[%s857_s1 + $0x40] sm:$0xff]  ;;  %v461_v41 = vor.u32 %v633_v32, %v460_v31  ;;  %v465_v43 = vor.u32 %v631_v36, %v462_v37  ;;  %v673_v44 = vld [vmem:[%s857_s1 + $0x130] sm:$0xff]  ;;  %v672_v46 = vld [vmem:[%s857_s1 + $0x128] sm:$0xff] }
   0xf   :  { %401 = vmatpush.bf16.msra.mxu2 %v655_v13  ;;  %v630_v39 = vld [vmem:[%s859_s0 + $0x4] sm:$0xf]  ;;  %v670_v48 = vld [vmem:[%s857_s1 + $0x118] sm:$0xff]  ;;  %v669_v49 = vld [vmem:[%s857_s1 + $0x110] sm:$0xff] }
  0x10   :  { %415 = vmatpush.bf16.msra.mxu3 %v663_v14  ;;  %v457_v45 = vor.u32 %v630_v39, %v454_v40  ;;  %v671_v47 = vld [vmem:[%s857_s1 + $0x120] sm:$0xff]  ;;  %v668_v50 = vld [vmem:[%s857_s1 + $0x108] sm:$0xff]  ;;  %v468_v52 = vld [vmem:[%s859_s0 + $0x10] sm:$0xf] }
  0x11   :  { %387 = vmatpush.bf16.msra.mxu1 %v647_v15  ;;  %v667_v51 = vld [vmem:[%s857_s1 + $0x100] sm:$0xff] }
  0x12   :  { %374 = vmatpush.bf16.msra.mxu0 %v638_v16  ;;  %v634_v53 = vld [vmem:[%s859_s0 + $0x20] sm:$0xf0]  ;;  %v680_v57 = vld [vmem:[%s858_s2] ss:$0 sm:$0xff] }
  0x13   :  { %402 = vmatpush.bf16.msra.mxu2 %v654_v17  ;;  %v469_v54 = vor.u32 %v634_v53, %v468_v52 }
  0x14   :  { %416 = vmatpush.bf16.msra.mxu3 %v662_v18 }
  0x15   :  { %388 = vmatpush.bf16.msra.mxu1 %v646_v19 }
  0x16   :  { %375 = vmatpush.bf16.msra.mxu0 %v637_v20 }
  0x17   :  { %403 = vmatpush.bf16.msra.mxu2 %v653_v21 }
  0x18   :  { %417 = vmatpush.bf16.msra.mxu3 %v661_v22 }
  0x19   :  { %389 = vmatpush.bf16.msra.mxu1 %v645_v23 }
  0x1a   :  { %376 = vmatpush.bf16.msra.mxu0 %v636_v24 }
  0x1b   :  { %404 = vmatpush.bf16.msra.mxu2 %v652_v25 }
  0x1c   :  { %418 = vmatpush.bf16.msra.mxu3 %v660_v26 }
  0x1d   :  { %390 = vmatpush.bf16.msra.mxu1 %v644_v27 }
  0x1e   :  { %377 = vmatpush.bf16.msra.mxu0 %v635_v28 }
  0x1f   :  { %405 = vmatpush.bf16.msra.mxu2 %v651_v30 }
  0x20   :  { %419 = vmatpush.bf16.msra.mxu3 %v659_v35 }
  0x21   :  { %391 = vmatpush.bf16.msra.mxu1 %v643_v38  ;;  %378 = vmatmul.bf16.vlgmr.msra.gmra.mxu0 %v453_v42 }
  0x22   :  { %426 = vmatpush.bf16.msrb.mxu0 %v674_v29  ;;  %406 = vmatmul.bf16.vlgmr.msra.gmra.mxu2 %v461_v41 }
  0x23   :  { %420 = vmatmul.bf16.vlgmr.msra.gmra.mxu3 %v465_v43 }
  0x24   :  { %392 = vmatmul.bf16.vlgmr.msra.gmra.mxu1 %v457_v45 }
  0x26   :  { %427 = vmatpush.bf16.msrb.mxu0 %v673_v44 }
  0x2a   :  { %428 = vmatpush.bf16.msrb.mxu0 %v672_v46 }
  0x2e   :  { %429 = vmatpush.bf16.msrb.mxu0 %v671_v47 }
  0x32   :  { %430 = vmatpush.bf16.msrb.mxu0 %v670_v48 }
  0x36   :  { %431 = vmatpush.bf16.msrb.mxu0 %v669_v49 }
  0x3a   :  { %432 = vmatpush.bf16.msrb.mxu0 %v668_v50 }
  0x3e   :  { %433 = vmatpush.bf16.msrb.mxu0 %v667_v51 }
  0x41   :  { %434 = vmatmul.bf16.vlgmr.msrb.gmra.mxu0 %v469_v54 }
  0x9e   :  { %v379_v55 = vpop.f32.mrf.mxu0 }
  0x9f   :  { %v380_v60 = vadd.f32 %v680_v57, %v379_v55 }
  0xa1   :  { %v393_v56 = vpop.f32.mrf.mxu1 }
  0xa2   :  { %v394_v0 = vadd.f32 %v393_v56, %v380_v60 }
  0xa5   :  { %v407_v58 = vpop.f32.mrf.mxu2 }
  0xa6   :  { %v381_v59 = vpop.f32.mrf.mxu0  ;;  %v421_v61 = vpop.f32.mrf.mxu3  ;;  %v408_v4 = vadd.f32 %v407_v58, %v394_v0 }
  0xa7   :  { %v382_v62 = vadd.f32 %v680_v57, %v381_v59 }
  0xa8   :  { %v422_v7 = vadd.f32 %v421_v61, %v408_v4 }
  0xa9   :  { %v395_v63 = vpop.f32.mrf.mxu1 }
  0xaa   :  { %v396_v1 = vadd.f32 %v395_v63, %v382_v62 }
  0xad   :  { %v409_v2 = vpop.f32.mrf.mxu2 }
  0xae   :  { %v410_v5 = vadd.f32 %v409_v2, %v396_v1  ;;  %v423_v6 = vpop.f32.mrf.mxu3 }
  0xb0   :  { %v424_v8 = vadd.f32 %v423_v6, %v410_v5 }
  0xbe   :  { %v435_v3 = vpop.f32.mrf.mxu0 }
  0xbf   :  { %v436_v9 = vadd.f32 %v435_v3, %v422_v7 }
  0xc1   :  { %v440_v12 = vmax.f32 %v436_v9, 0.0 }
  0xc6   :  { %v437_v10 = vpop.f32.mrf.mxu0 }
  0xc7   :  { %v438_v11 = vadd.f32 %v437_v10, %v424_v8 }
  0xc9   :  { %v441_v13 = vmax.f32 %v438_v11, 0.0 }
  0xcb   :  { %v678_v14 = vpack.c.bf16 %v441_v13, %v440_v12 }
  0xcd   :  { %679 = vst [vmem:[%s860_s3] sm:$0xff] %v678_v14  }

// kernel: _lambda_.37
= control target key start
LH: loop header
LB: loop body
LE: loop exit
PB: predicated region body
PF: predicated region fallthrough
CT: control target
= control target key end

     0   :  { %s878_s1 = inlined_call_operand.vmem [shape: bf16[640,128], index: 1, kind: input, shape index: {}]   ;;  %s879_s2 = inlined_call_operand.vmem [shape: f32[1,128], index: 2, kind: input, shape index: {}]   ;;  %s880_s0 = inlined_call_operand.vmem [shape: bf16[16,640], index: 0, kind: input, shape index: {}]   ;;  %s881_s3 = inlined_call_operand.vmem [shape: bf16[16,128], index: 3, kind: input, shape index: {}]   ;;  %s882_s4 = inlined_call_operand.vmem [shape: bf16[16,128], index: 4, kind: output, shape index: {}]  }
   0x1   :  { %v651_v0 = vld [vmem:[%s878_s1 + $0x38] sm:$0xff]  ;;  %v650_v4 = vld [vmem:[%s878_s1 + $0x30] sm:$0xff]  ;;  %v649_v8 = vld [vmem:[%s878_s1 + $0x28] sm:$0xff] }
   0x2   :  { %v667_v1 = vld [vmem:[%s878_s1 + $0xb8] sm:$0xff]  ;;  %373 = vmatpush.bf16.msra.mxu0 %v651_v0  ;;  %v666_v5 = vld [vmem:[%s878_s1 + $0xb0] sm:$0xff]  ;;  %v665_v9 = vld [vmem:[%s878_s1 + $0xa8] sm:$0xff] }
   0x3   :  { %v675_v2 = vld [vmem:[%s878_s1 + $0xf8] sm:$0xff]  ;;  %401 = vmatpush.bf16.msra.mxu2 %v667_v1  ;;  %v674_v6 = vld [vmem:[%s878_s1 + $0xf0] sm:$0xff]  ;;  %v673_v10 = vld [vmem:[%s878_s1 + $0xe8] sm:$0xff] }
   0x4   :  { %v659_v3 = vld [vmem:[%s878_s1 + $0x78] sm:$0xff]  ;;  %415 = vmatpush.bf16.msra.mxu3 %v675_v2  ;;  %v658_v7 = vld [vmem:[%s878_s1 + $0x70] sm:$0xff]  ;;  %v657_v11 = vld [vmem:[%s878_s1 + $0x68] sm:$0xff] }
   0x5   :  { %387 = vmatpush.bf16.msra.mxu1 %v659_v3  ;;  %v648_v12 = vld [vmem:[%s878_s1 + $0x20] sm:$0xff]  ;;  %v647_v16 = vld [vmem:[%s878_s1 + $0x18] sm:$0xff]  ;;  %v646_v20 = vld [vmem:[%s878_s1 + $0x10] sm:$0xff] }
   0x6   :  { %374 = vmatpush.bf16.msra.mxu0 %v650_v4  ;;  %v664_v13 = vld [vmem:[%s878_s1 + $0xa0] sm:$0xff]  ;;  %v663_v17 = vld [vmem:[%s878_s1 + $0x98] sm:$0xff]  ;;  %v662_v21 = vld [vmem:[%s878_s1 + $0x90] sm:$0xff] }
   0x7   :  { %402 = vmatpush.bf16.msra.mxu2 %v666_v5  ;;  %v672_v14 = vld [vmem:[%s878_s1 + $0xe0] sm:$0xff]  ;;  %v671_v18 = vld [vmem:[%s878_s1 + $0xd8] sm:$0xff]  ;;  %v670_v22 = vld [vmem:[%s878_s1 + $0xd0] sm:$0xff] }
   0x8   :  { %416 = vmatpush.bf16.msra.mxu3 %v674_v6  ;;  %v656_v15 = vld [vmem:[%s878_s1 + $0x60] sm:$0xff]  ;;  %v655_v19 = vld [vmem:[%s878_s1 + $0x58] sm:$0xff]  ;;  %v654_v23 = vld [vmem:[%s878_s1 + $0x50] sm:$0xff] }
   0x9   :  { %388 = vmatpush.bf16.msra.mxu1 %v658_v7  ;;  %v645_v24 = vld [vmem:[%s878_s1 + $0x8] sm:$0xff]  ;;  %v644_v28 = vld [vmem:[%s878_s1] sm:$0xff]  ;;  %v683_v29 = vld [vmem:[%s878_s1 + $0x138] sm:$0xff] }
   0xa   :  { %375 = vmatpush.bf16.msra.mxu0 %v649_v8  ;;  %v661_v25 = vld [vmem:[%s878_s1 + $0x88] sm:$0xff]  ;;  %v660_v30 = vld [vmem:[%s878_s1 + $0x80] sm:$0xff]  ;;  %v642_v32 = vld [vmem:[%s880_s0 + $0x18] sm:$0xf0] }
   0xb   :  { %403 = vmatpush.bf16.msra.mxu2 %v665_v9  ;;  %v669_v26 = vld [vmem:[%s878_s1 + $0xc8] sm:$0xff]  ;;  %v461_v33 = vld [vmem:[%s880_s0] sm:$0xf]  ;;  %v641_v34 = vld [vmem:[%s880_s0 + $0x10] sm:$0xf0] }
   0xc   :  { %417 = vmatpush.bf16.msra.mxu3 %v673_v10  ;;  %v653_v27 = vld [vmem:[%s878_s1 + $0x48] sm:$0xff]  ;;  %v668_v35 = vld [vmem:[%s878_s1 + $0xc0] sm:$0xff]  ;;  %v463_v40 = vld [vmem:[%s880_s0 + $0x14] sm:$0xf0]  ;;  %v462_v42 = vor.u32 %v641_v34, %v461_v33 }
   0xd   :  { %389 = vmatpush.bf16.msra.mxu1 %v657_v11  ;;  %v469_v31 = vld [vmem:[%s880_s0 + $0x8] sm:$0xf]  ;;  %v640_v36 = vld [vmem:[%s880_s0 + $0xc] sm:$0xf]  ;;  %v471_v37 = vld [vmem:[%s880_s0 + $0x1c] sm:$0xf0] }
   0xe   :  { %376 = vmatpush.bf16.msra.mxu0 %v648_v12  ;;  %v652_v38 = vld [vmem:[%s878_s1 + $0x40] sm:$0xff]  ;;  %v470_v41 = vor.u32 %v642_v32, %v469_v31  ;;  %v474_v43 = vor.u32 %v640_v36, %v471_v37  ;;  %v682_v44 = vld [vmem:[%s878_s1 + $0x130] sm:$0xff]  ;;  %v681_v46 = vld [vmem:[%s878_s1 + $0x128] sm:$0xff] }
   0xf   :  { %404 = vmatpush.bf16.msra.mxu2 %v664_v13  ;;  %v639_v39 = vld [vmem:[%s880_s0 + $0x4] sm:$0xf]  ;;  %v679_v48 = vld [vmem:[%s878_s1 + $0x118] sm:$0xff]  ;;  %v678_v49 = vld [vmem:[%s878_s1 + $0x110] sm:$0xff] }
  0x10   :  { %418 = vmatpush.bf16.msra.mxu3 %v672_v14  ;;  %v466_v45 = vor.u32 %v639_v39, %v463_v40  ;;  %v680_v47 = vld [vmem:[%s878_s1 + $0x120] sm:$0xff]  ;;  %v677_v50 = vld [vmem:[%s878_s1 + $0x108] sm:$0xff]  ;;  %v477_v52 = vld [vmem:[%s880_s0 + $0x10] sm:$0xf] }
  0x11   :  { %390 = vmatpush.bf16.msra.mxu1 %v656_v15  ;;  %v676_v51 = vld [vmem:[%s878_s1 + $0x100] sm:$0xff] }
  0x12   :  { %377 = vmatpush.bf16.msra.mxu0 %v647_v16  ;;  %v643_v53 = vld [vmem:[%s880_s0 + $0x20] sm:$0xf0]  ;;  %v693_v57 = vld [vmem:[%s879_s2] ss:$0 sm:$0xff] }
  0x13   :  { %405 = vmatpush.bf16.msra.mxu2 %v663_v17  ;;  %v478_v54 = vor.u32 %v643_v53, %v477_v52  ;;  %v685_v5 = vld [vmem:[%s881_s3] sm:$0xff]  }
  0x14   :  { %419 = vmatpush.bf16.msra.mxu3 %v671_v18  ;;  %v686_v10 = vunpack.c.l.bf16 %v685_v5  ;;  %v687_v12 = vunpack.c.h.bf16 %v685_v5 }
  0x15   :  { %391 = vmatpush.bf16.msra.mxu1 %v655_v19 }
  0x16   :  { %378 = vmatpush.bf16.msra.mxu0 %v646_v20 }
  0x17   :  { %406 = vmatpush.bf16.msra.mxu2 %v662_v21 }
  0x18   :  { %420 = vmatpush.bf16.msra.mxu3 %v670_v22 }
  0x19   :  { %392 = vmatpush.bf16.msra.mxu1 %v654_v23 }
  0x1a   :  { %379 = vmatpush.bf16.msra.mxu0 %v645_v24 }
  0x1b   :  { %407 = vmatpush.bf16.msra.mxu2 %v661_v25 }
  0x1c   :  { %421 = vmatpush.bf16.msra.mxu3 %v669_v26 }
  0x1d   :  { %393 = vmatpush.bf16.msra.mxu1 %v653_v27 }
  0x1e   :  { %380 = vmatpush.bf16.msra.mxu0 %v644_v28 }
  0x1f   :  { %408 = vmatpush.bf16.msra.mxu2 %v660_v30 }
  0x20   :  { %422 = vmatpush.bf16.msra.mxu3 %v668_v35 }
  0x21   :  { %394 = vmatpush.bf16.msra.mxu1 %v652_v38  ;;  %381 = vmatmul.bf16.vlgmr.msra.gmra.mxu0 %v462_v42 }
  0x22   :  { %429 = vmatpush.bf16.msrb.mxu0 %v683_v29  ;;  %409 = vmatmul.bf16.vlgmr.msra.gmra.mxu2 %v470_v41 }
  0x23   :  { %423 = vmatmul.bf16.vlgmr.msra.gmra.mxu3 %v474_v43 }
  0x24   :  { %395 = vmatmul.bf16.vlgmr.msra.gmra.mxu1 %v466_v45 }
  0x26   :  { %430 = vmatpush.bf16.msrb.mxu0 %v682_v44 }
  0x2a   :  { %431 = vmatpush.bf16.msrb.mxu0 %v681_v46 }
  0x2e   :  { %432 = vmatpush.bf16.msrb.mxu0 %v680_v47 }
  0x32   :  { %433 = vmatpush.bf16.msrb.mxu0 %v679_v48 }
  0x36   :  { %434 = vmatpush.bf16.msrb.mxu0 %v678_v49 }
  0x3a   :  { %435 = vmatpush.bf16.msrb.mxu0 %v677_v50 }
  0x3e   :  { %436 = vmatpush.bf16.msrb.mxu0 %v676_v51 }
  0x41   :  { %437 = vmatmul.bf16.vlgmr.msrb.gmra.mxu0 %v478_v54 }
  0x9e   :  { %v382_v55 = vpop.f32.mrf.mxu0 }
  0x9f   :  { %v383_v59 = vadd.f32 %v693_v57, %v382_v55 }
  0xa1   :  { %v396_v56 = vpop.f32.mrf.mxu1 }
  0xa2   :  { %v397_v62 = vadd.f32 %v396_v56, %v383_v59 }
  0xa5   :  { %v410_v58 = vpop.f32.mrf.mxu2 }
  0xa6   :  { %v384_v60 = vpop.f32.mrf.mxu0  ;;  %v424_v61 = vpop.f32.mrf.mxu3  ;;  %v411_v1 = vadd.f32 %v410_v58, %v397_v62 }
  0xa7   :  { %v385_v63 = vadd.f32 %v693_v57, %v384_v60 }
  0xa8   :  { %v425_v6 = vadd.f32 %v424_v61, %v411_v1 }
  0xa9   :  { %v398_v0 = vpop.f32.mrf.mxu1 }
  0xaa   :  { %v399_v2 = vadd.f32 %v398_v0, %v385_v63 }
  0xad   :  { %v412_v3 = vpop.f32.mrf.mxu2 }
  0xae   :  { %v413_v7 = vadd.f32 %v412_v3, %v399_v2  ;;  %v426_v8 = vpop.f32.mrf.mxu3 }
  0xb0   :  { %v427_v11 = vadd.f32 %v426_v8, %v413_v7 }
  0xbe   :  { %v438_v4 = vpop.f32.mrf.mxu0 }
  0xbf   :  { %v439_v9 = vadd.f32 %v438_v4, %v425_v6 }
  0xc1   :  { %v447_v14 = vadd.f32 %v686_v10, %v439_v9 }
  0xc3   :  { %v449_v17 = vmax.f32 %v447_v14, 0.0 }
  0xc6   :  { %v440_v13 = vpop.f32.mrf.mxu0 }
  0xc7   :  { %v441_v15 = vadd.f32 %v440_v13, %v427_v11 }
  0xc9   :  { %v448_v16 = vadd.f32 %v687_v12, %v441_v15 }
  0xcb   :  { %v450_v18 = vmax.f32 %v448_v16, 0.0 }
  0xcd   :  { %v691_v19 = vpack.c.bf16 %v450_v18, %v449_v17 }
  0xcf   :  { %692 = vst [vmem:[%s882_s4] sm:$0xff] %v691_v19  }

</bundles_post_ra>
